<compile_context>
chip_gen: v5e
topology: v5e:2x2
jax: 0.10.0
libtpu: 0.0.40
codegen_flags: <defaults>
</compile_context>

<pallas_src>
from functools import partial

import jax
import jax.numpy as jnp
from jax.experimental import pallas as pl
from jax.experimental.pallas import tpu as pltpu

CARDINALITY = 32
BASE_WIDTH = 4
LANES = 128      # grouped-conv outputs are packed into 128-lane super-groups
GEMM_TM = 512    # M-tile rows for GEMM grids


def _divisor_tile(n, target):
    """Largest tile t <= target with n % t == 0 and (t % 8 == 0 or t == n)."""
    if n <= target:
        return n
    for d in range(target, 0, -1):
        if n % d == 0 and d % 8 == 0:
            return d
    return n


# ----------------------------- Pallas kernels ------------------------------

def _gemm_bn_act_kernel(a_ref, b_ref, s_ref, t_ref, o_ref, *, act):
    # a: (TM, KG) bf16   b: (1, KG, TN) bf16   s,t: (1, 1, TN) f32   o: (TM, TN) bf16
    acc = jnp.dot(a_ref[...], b_ref[0], preferred_element_type=jnp.float32)
    acc = acc * s_ref[0] + t_ref[0]
    if act == "relu":
        acc = jnp.maximum(acc, 0.0)
    elif act == "sigmoid":
        acc = jax.nn.sigmoid(acc)
    o_ref[...] = acc.astype(o_ref.dtype)


def gemm_bn_act(a, b, scale, shift, act="none", out_dtype=jnp.bfloat16):
    """Block GEMM + per-output-channel affine (folded BN / bias) + activation.

    a: (M, SG*KG) bf16, b: (SG, KG, TN) bf16, scale/shift: (SG, 1, TN) f32
       -> (M, SG*TN) bf16.
    SG=1 for dense convs; for grouped convs each SG slab is a block-diagonal weight
    covering 128 output lanes (lane-dense stores, full MXU tiles)."""
    M, ktot = a.shape
    SG, KG, TN = b.shape
    assert ktot == SG * KG
    tm = min(GEMM_TM, M)
    grid = (SG, pl.cdiv(M, tm))          # SG outer -> weights stay resident over M loop
    return pl.pallas_call(
        partial(_gemm_bn_act_kernel, act=act),
        out_shape=jax.ShapeDtypeStruct((M, SG * TN), out_dtype),
        grid=grid,
        in_specs=[
            pl.BlockSpec((tm, KG), lambda sg, m: (m, sg)),
            pl.BlockSpec((1, KG, TN), lambda sg, m: (sg, 0, 0)),
            pl.BlockSpec((1, 1, TN), lambda sg, m: (sg, 0, 0)),
            pl.BlockSpec((1, 1, TN), lambda sg, m: (sg, 0, 0)),
        ],
        out_specs=pl.BlockSpec((tm, TN), lambda sg, m: (m, sg)),
        compiler_params=pltpu.CompilerParams(
            dimension_semantics=("parallel", "parallel")),
    )(a, b, scale, shift)


def _max_reduce_kernel(x_ref, o_ref):
    o_ref[...] = jnp.max(x_ref[...], axis=0)


def max_reduce(x):  # (T, M, C) -> (M, C), tiled over M
    T, M, C = x.shape
    tm = min(512, M)
    return pl.pallas_call(
        _max_reduce_kernel,
        out_shape=jax.ShapeDtypeStruct((M, C), x.dtype),
        grid=(pl.cdiv(M, tm),),
        in_specs=[pl.BlockSpec((T, tm, C), lambda m: (0, m, 0))],
        out_specs=pl.BlockSpec((tm, C), lambda m: (m, 0)),
        compiler_params=pltpu.CompilerParams(dimension_semantics=("parallel",)),
    )(x)


def _se_gate_kernel(x_ref, w1_ref, b1_ref, w2_ref, b2_ref, gate_ref, acc_ref, *, inv_hw):
    # Fused SE tail: global-avg-pool (accumulated over HW tiles) + FC1-relu + FC2-sigmoid.
    step = pl.program_id(0)

    @pl.when(step == 0)
    def _():
        acc_ref[...] = jnp.zeros_like(acc_ref)

    acc_ref[...] += jnp.sum(x_ref[...].astype(jnp.float32), axis=1)

    @pl.when(step == pl.num_programs(0) - 1)
    def _():
        pooled = (acc_ref[...] * inv_hw).astype(jnp.bfloat16)           # (N, C)
        h = jnp.dot(pooled, w1_ref[...], preferred_element_type=jnp.float32)
        h = jnp.maximum(h + b1_ref[...], 0.0).astype(jnp.bfloat16)      # (N, rd)
        g = jnp.dot(h, w2_ref[...], preferred_element_type=jnp.float32)
        gate_ref[...] = jax.nn.sigmoid(g + b2_ref[...])                 # (N, C) f32


def se_gate(x, p):
    """x: (N, H, W, C) bf16 -> gate (N, C) f32, single fused Pallas kernel."""
    N, H, W, C = x.shape
    rd = p["fc1_w"].shape[0]
    w1 = p["fc1_w"].reshape(rd, C).T.astype(jnp.bfloat16)   # (C, rd)
    b1 = p["fc1_b"].reshape(1, rd).astype(jnp.float32)
    w2 = p["fc2_w"].reshape(C, rd).T.astype(jnp.bfloat16)   # (rd, C)
    b2 = p["fc2_b"].reshape(1, C).astype(jnp.float32)
    HW = H * W
    xf = x.reshape(N, HW, C)
    target = max(8, min(1024, (1 << 20) // (N * C * 2)))    # ~1 MiB input block
    thw = _divisor_tile(HW, target)
    return pl.pallas_call(
        partial(_se_gate_kernel, inv_hw=1.0 / HW),
        out_shape=jax.ShapeDtypeStruct((N, C), jnp.float32),
        grid=(HW // thw,),
        in_specs=[
            pl.BlockSpec((N, thw, C), lambda t: (0, t, 0)),
            pl.BlockSpec((C, rd), lambda t: (0, 0)),
            pl.BlockSpec((1, rd), lambda t: (0, 0)),
            pl.BlockSpec((rd, C), lambda t: (0, 0)),
            pl.BlockSpec((1, C), lambda t: (0, 0)),
        ],
        out_specs=pl.BlockSpec((N, C), lambda t: (0, 0)),
        scratch_shapes=[pltpu.VMEM((N, C), jnp.float32)],
        compiler_params=pltpu.CompilerParams(dimension_semantics=("arbitrary",)),
    )(xf, w1, b1, w2, b2)


def _se_residual_kernel(x_ref, g_ref, s_ref, o_ref):
    # x,s: (1, THW, C) bf16   g: (1, 1, C) f32   o: (1, THW, C) bf16
    v = x_ref[...].astype(jnp.float32) * g_ref[...] + s_ref[...].astype(jnp.float32)
    o_ref[...] = jnp.maximum(v, 0.0).astype(o_ref.dtype)


def se_residual_relu(x, gate, shortcut):
    """relu(x * gate + shortcut); x/shortcut (N, HW, C) bf16, gate (N, C) f32."""
    N, HW, C = x.shape
    target = max(8, min(1024, (1 << 19) // (C * 2)))        # ~0.5 MiB per block
    thw = _divisor_tile(HW, target)
    g = gate.reshape(N, 1, C)
    return pl.pallas_call(
        _se_residual_kernel,
        out_shape=jax.ShapeDtypeStruct((N, HW, C), x.dtype),
        grid=(N, HW // thw),
        in_specs=[
            pl.BlockSpec((1, thw, C), lambda n, t: (n, t, 0)),
            pl.BlockSpec((1, 1, C), lambda n, t: (n, 0, 0)),
            pl.BlockSpec((1, thw, C), lambda n, t: (n, t, 0)),
        ],
        out_specs=pl.BlockSpec((1, thw, C), lambda n, t: (n, t, 0)),
        compiler_params=pltpu.CompilerParams(
            dimension_semantics=("parallel", "parallel")),
    )(x, g, shortcut)


# ------------------------------ conv helpers -------------------------------

def fold_bn(bn, eps=1e-5):
    scale = bn["gamma"] / jnp.sqrt(bn["var"] + eps)
    shift = bn["beta"] - bn["mean"] * scale
    return scale, shift


def conv2d_bn_act(x, w, scale, shift, *, stride=1, pad=0, groups=1, act="none"):
    """x: (N, H, W, Cin) NHWC bf16. w: (Cout, Cin//groups, kh, kw) f32 (PyTorch layout).
    scale/shift: (Cout,) folded BN affine (or scale=1 / shift=bias)."""
    N, H, W, Cin = x.shape
    Cout, Cing, kh, kw = w.shape
    G = groups
    assert Cin == Cing * G and Cout % G == 0
    Ho = (H + 2 * pad - kh) // stride + 1
    Wo = (W + 2 * pad - kw) // stride + 1
    M = N * Ho * Wo
    kk = kh * kw

    if kh == 1 and kw == 1 and pad == 0:
        cols = x[:, ::stride, ::stride, :].reshape(M, Cin)
    else:
        xp = jnp.pad(x, ((0, 0), (pad, pad), (pad, pad), (0, 0)))
        patches = []
        for ky in range(kh):
            for kx in range(kw):
                patches.append(
                    xp[:, ky:ky + (Ho - 1) * stride + 1:stride,
                          kx:kx + (Wo - 1) * stride + 1:stride, :])
        # (N, Ho, Wo, Cin, kh*kw): flattened K index = c*kk + ky*kw + kx
        cols = jnp.stack(patches, axis=-1).reshape(M, Cin * kk)
    cols = cols.astype(jnp.bfloat16)

    if G == 1:
        b = w.reshape(Cout, Cin * kk).T.reshape(1, Cin * kk, Cout)
        s = scale.astype(jnp.float32).reshape(1, 1, Cout)
        t = shift.astype(jnp.float32).reshape(1, 1, Cout)
    else:
        # Merge groups into 128-lane super-groups with block-diagonal weights so every
        # output block is lane-dense and a single full MXU tile handles several groups.
        Coutg = Cout // G
        Kg = Cing * kk
        TN = LANES
        assert Cout % TN == 0
        SG = Cout // TN
        Gs = G // SG                              # groups per super-group (TN // Coutg)
        wg = w.reshape(G, Coutg, Kg).transpose(0, 2, 1)       # (G, Kg, Coutg)
        wg = wg.reshape(SG, Gs, Kg, Coutg)
        eye = jnp.eye(Gs, dtype=wg.dtype)
        bd = jnp.einsum("sgkc,gh->sgkhc", wg, eye)            # (SG, Gs, Kg, Gs, Coutg)
        b = bd.reshape(SG, Gs * Kg, TN)                       # block-diag (SG, KG, 128)
        s = scale.astype(jnp.float32).reshape(SG, 1, TN)
        t = shift.astype(jnp.float32).reshape(SG, 1, TN)

    out = gemm_bn_act(cols, b.astype(jnp.bfloat16), s, t, act=act)   # (M, Cout)
    return out.reshape(N, Ho, Wo, Cout)


def maxpool_3x3_s2_p1(x):
    N, H, W, C = x.shape
    Ho = (H + 2 - 3) // 2 + 1
    Wo = (W + 2 - 3) // 2 + 1
    xp = jnp.pad(x, ((0, 0), (1, 1), (1, 1), (0, 0)), constant_values=-jnp.inf)
    patches = [xp[:, ky:ky + (Ho - 1) * 2 + 1:2, kx:kx + (Wo - 1) * 2 + 1:2, :]
               for ky in range(3) for kx in range(3)]
    stacked = jnp.stack(patches, axis=0).reshape(9, N * Ho * Wo, C)
    return max_reduce(stacked).reshape(N, Ho, Wo, C)


# ------------------------------- SE + block --------------------------------

@jax.jit
def stem_forward(stem_w, stem_bn, x):
    s, t = fold_bn(stem_bn)
    x = conv2d_bn_act(x, stem_w, s, t, stride=2, pad=3, act="relu")
    return maxpool_3x3_s2_p1(x)


@partial(jax.jit, static_argnames=("stride",))
def bottleneck_forward(p, x, *, stride):
    shortcut = x
    s1, t1 = fold_bn(p["bn1"])
    out = conv2d_bn_act(x, p["conv1_w"], s1, t1, act="relu")
    s2, t2 = fold_bn(p["bn2"])
    out = conv2d_bn_act(out, p["conv2_w"], s2, t2, stride=stride, pad=1,
                        groups=CARDINALITY, act="relu")
    s3, t3 = fold_bn(p["bn3"])
    out = conv2d_bn_act(out, p["conv3_w"], s3, t3, act="none")
    gate = se_gate(out, p["se"])
    if "down_w" in p:
        sd, td = fold_bn(p["down_bn"])
        shortcut = conv2d_bn_act(shortcut, p["down_w"], sd, td,
                                 stride=stride, act="none")
    N, H, W, C = out.shape
    y = se_residual_relu(out.reshape(N, H * W, C), gate,
                         shortcut.reshape(N, H * W, C))
    return y.reshape(N, H, W, C)


# ------------------------------ parameter init -----------------------------

class KeyGen:
    def __init__(self, seed):
        self._key = jax.random.PRNGKey(seed)
        self._i = 0

    def __call__(self):
        self._i += 1
        return jax.random.fold_in(self._key, self._i)


def init_conv(kg, cout, cin_g, kh, kw):
    fan_in = cin_g * kh * kw
    return (jax.random.normal(kg(), (cout, cin_g, kh, kw), jnp.float32)
            * jnp.sqrt(2.0 / fan_in))


def init_bn(kg, c):
    return {
        "gamma": jax.random.uniform(kg(), (c,), jnp.float32, 0.8, 1.2),
        "beta": jax.random.normal(kg(), (c,), jnp.float32) * 0.05,
        "mean": jax.random.normal(kg(), (c,), jnp.float32) * 0.05,
        "var": jax.random.uniform(kg(), (c,), jnp.float32, 0.9, 1.1),
    }


def init_bottleneck(kg, inplanes, planes, stride):
    width = (planes * BASE_WIDTH // 64) * CARDINALITY
    outplanes = planes * 4
    rd = outplanes // 16  # == timm make_divisible(outplanes * 1/16, 8) for these widths
    p = {
        "conv1_w": init_conv(kg, width, inplanes, 1, 1),
        "bn1": init_bn(kg, width),
        "conv2_w": init_conv(kg, width, width // CARDINALITY, 3, 3),
        "bn2": init_bn(kg, width),
        "conv3_w": init_conv(kg, outplanes, width, 1, 1),
        "bn3": init_bn(kg, outplanes),
        "se": {
            "fc1_w": init_conv(kg, rd, outplanes, 1, 1),
            "fc1_b": jax.random.normal(kg(), (rd,), jnp.float32) * 0.05,
            "fc2_w": init_conv(kg, outplanes, rd, 1, 1),
            "fc2_b": jax.random.normal(kg(), (outplanes,), jnp.float32) * 0.05,
        },
    }
    if stride != 1 or inplanes != outplanes:
        p["down_w"] = init_conv(kg, outplanes, inplanes, 1, 1)
        p["down_bn"] = init_bn(kg, outplanes)
    return p


def init_seresnext101(seed=0):
    kg = KeyGen(seed)
    params = {
        "stem_w": init_conv(kg, 64, 3, 7, 7),
        "stem_bn": init_bn(kg, 64),
        "stages": [],
    }
    inplanes = 64
    for planes, nblocks, stride in zip((64, 128, 256, 512), (3, 4, 23, 3), (1, 2, 2, 2)):
        blocks = []
        for bi in range(nblocks):
            s = stride if bi == 0 else 1
            blocks.append(init_bottleneck(kg, inplanes, planes, s))
            inplanes = planes * 4
        params["stages"].append(blocks)
    return params


# ------------------------------ full forward -------------------------------

def seresnext101_forward_features(params, x_nchw):
    # layout: NCHW in / NCHW out (PyTorch); NHWC bf16 internally.
    x = jnp.transpose(x_nchw, (0, 2, 3, 1)).astype(jnp.bfloat16)
    x = stem_forward(params["stem_w"], params["stem_bn"], x)
    strides = (1, 2, 2, 2)
    for stage_idx, blocks in enumerate(params["stages"]):
        for bi, bp in enumerate(blocks):
            x = bottleneck_forward(bp, x, stride=strides[stage_idx] if bi == 0 else 1)
    return jnp.transpose(x, (0, 3, 1, 2)).astype(jnp.float32)  # (N, 2048, H/32, W/32)


if __name__ == "__main__":
    params = init_seresnext101(seed=0)
    x = jax.random.normal(jax.random.PRNGKey(0), (2, 3, 64, 64), jnp.float32)
    feats = seresnext101_forward_features(params, x)
    feats = jax.block_until_ready(feats)
    assert feats.shape == (2, 2048, 2, 2), feats.shape
    assert bool(jnp.all(jnp.isfinite(feats)))
    print("KERNEL_OK")
</pallas_src>

<mosaic_0001>
module attributes {stable_mosaic.version = 11 : i64} {
  func.func @_gemm_bn_act_kernel(%arg0: i32, %arg1: i32, %arg2: memref<512x147xbf16, #tpu.memory_space<vmem>>, %arg3: memref<1x147x64xbf16, #tpu.memory_space<vmem>>, %arg4: memref<1x1x64xf32, #tpu.memory_space<vmem>>, %arg5: memref<1x1x64xf32, #tpu.memory_space<vmem>>, %arg6: memref<512x64xbf16, #tpu.memory_space<vmem>>) attributes {dimension_semantics = [#tpu.dimension_semantics<parallel>, #tpu.dimension_semantics<parallel>], iteration_bounds = array<i64: 1, 4>, scalar_prefetch = 0 : i64, scratch_operands = 0 : i64, tpu.core_type = #tpu.core_type<tc>, window_params = [{transform_indices = @transform_0, window_bounds = array<i64: 512, 147>}, {transform_indices = @transform_1, window_bounds = array<i64: 1, 147, 64>}, {transform_indices = @transform_2, window_bounds = array<i64: 1, 1, 64>}, {transform_indices = @transform_3, window_bounds = array<i64: 1, 1, 64>}, {transform_indices = @transform_4, window_bounds = array<i64: 512, 64>}]} {
    %c0 = arith.constant 0 : index
    %c0_0 = arith.constant 0 : index
    %0 = vector.load %arg2[%c0, %c0_0] : memref<512x147xbf16, #tpu.memory_space<vmem>>, vector<512x147xbf16>
    %c0_1 = arith.constant 0 : index
    %c0_2 = arith.constant 0 : index
    %c0_3 = arith.constant 0 : index
    %1 = vector.load %arg3[%c0_1, %c0_2, %c0_3] : memref<1x147x64xbf16, #tpu.memory_space<vmem>>, vector<1x147x64xbf16>
    %2 = vector.shape_cast %1 : vector<1x147x64xbf16> to vector<147x64xbf16>
    %cst = arith.constant dense<0.000000e+00> : vector<512x64xf32>
    %3 = tpu.matmul %0, %2, %cst {dimension_numbers = #tpu.dot_dimension_numbers<[1], [0], [0], [1], [0, 0, 1, 1], [], []>} : vector<512x147xbf16>, vector<147x64xbf16>, vector<512x64xf32> -> vector<512x64xf32>
    %c0_4 = arith.constant 0 : index
    %c0_5 = arith.constant 0 : index
    %c0_6 = arith.constant 0 : index
    %4 = vector.load %arg4[%c0_4, %c0_5, %c0_6] : memref<1x1x64xf32, #tpu.memory_space<vmem>>, vector<1x1x64xf32>
    %5 = vector.shape_cast %4 : vector<1x1x64xf32> to vector<1x64xf32>
    %6 = vector.broadcast %5 : vector<1x64xf32> to vector<512x64xf32>
    %7 = arith.mulf %3, %6 : vector<512x64xf32>
    %c0_7 = arith.constant 0 : index
    %c0_8 = arith.constant 0 : index
    %c0_9 = arith.constant 0 : index
    %8 = vector.load %arg5[%c0_7, %c0_8, %c0_9] : memref<1x1x64xf32, #tpu.memory_space<vmem>>, vector<1x1x64xf32>
    %9 = vector.shape_cast %8 : vector<1x1x64xf32> to vector<1x64xf32>
    %10 = vector.broadcast %9 : vector<1x64xf32> to vector<512x64xf32>
    %11 = arith.addf %7, %10 : vector<512x64xf32>
    %cst_10 = arith.constant 0.000000e+00 : f32
    %12 = vector.broadcast %cst_10 : f32 to vector<512x64xf32>
    %13 = arith.maximumf %11, %12 : vector<512x64xf32>
    %14 = arith.truncf %13 : vector<512x64xf32> to vector<512x64xbf16>
    %c0_11 = arith.constant 0 : index
    %c0_12 = arith.constant 0 : index
    %15 = vector.load %arg6[%c0_11, %c0_12] : memref<512x64xbf16, #tpu.memory_space<vmem>>, vector<512x64xbf16>
    tpu.vector_store %arg6[%c0_11, %c0_12], %14 {strides = array<i32>} : memref<512x64xbf16, #tpu.memory_space<vmem>>, vector<512x64xbf16>,
    return
  }
  func.func @transform_0(%arg0: i32, %arg1: i32) -> (i32, i32) {
    %c0_i32 = arith.constant 0 : i32
    return %arg1, %arg0 : i32, i32
  }
  func.func @transform_1(%arg0: i32, %arg1: i32) -> (i32, i32, i32) {
    %c0_i32 = arith.constant 0 : i32
    %c0_i32_0 = arith.constant 0 : i32
    %c0_i32_1 = arith.constant 0 : i32
    return %arg0, %c0_i32, %c0_i32_0 : i32, i32, i32
  }
  func.func @transform_2(%arg0: i32, %arg1: i32) -> (i32, i32, i32) {
    %c0_i32 = arith.constant 0 : i32
    %c0_i32_0 = arith.constant 0 : i32
    %c0_i32_1 = arith.constant 0 : i32
    return %arg0, %c0_i32, %c0_i32_0 : i32, i32, i32
  }
  func.func @transform_3(%arg0: i32, %arg1: i32) -> (i32, i32, i32) {
    %c0_i32 = arith.constant 0 : i32
    %c0_i32_0 = arith.constant 0 : i32
    %c0_i32_1 = arith.constant 0 : i32
    return %arg0, %c0_i32, %c0_i32_0 : i32, i32, i32
  }
  func.func @transform_4(%arg0: i32, %arg1: i32) -> (i32, i32) {
    %c0_i32 = arith.constant 0 : i32
    return %arg1, %arg0 : i32, i32
  }
}

module attributes {stable_mosaic.version = 11 : i64} {
  func.func @_max_reduce_kernel(%arg0: i32, %arg1: memref<9x512x64xbf16, #tpu.memory_space<vmem>>, %arg2: memref<512x64xbf16, #tpu.memory_space<vmem>>) attributes {dimension_semantics = [#tpu.dimension_semantics<parallel>], iteration_bounds = array<i64: 1>, scalar_prefetch = 0 : i64, scratch_operands = 0 : i64, tpu.core_type = #tpu.core_type<tc>, window_params = [{transform_indices = @transform_0, window_bounds = array<i64: 9, 512, 64>}, {transform_indices = @transform_1, window_bounds = array<i64: 512, 64>}]} {
    %c0 = arith.constant 0 : index
    %c0_0 = arith.constant 0 : index
    %c0_1 = arith.constant 0 : index
    %0 = vector.load %arg1[%c0, %c0_0, %c0_1] : memref<9x512x64xbf16, #tpu.memory_space<vmem>>, vector<9x512x64xbf16>
    %cst = arith.constant dense<0xFF80> : vector<512x64xbf16>
    %1 = vector.multi_reduction <maximumf>, %0, %cst [0] : vector<9x512x64xbf16> to vector<512x64xbf16>
    %c0_2 = arith.constant 0 : index
    %c0_3 = arith.constant 0 : index
    %2 = vector.load %arg2[%c0_2, %c0_3] : memref<512x64xbf16, #tpu.memory_space<vmem>>, vector<512x64xbf16>
    tpu.vector_store %arg2[%c0_2, %c0_3], %1 {strides = array<i32>} : memref<512x64xbf16, #tpu.memory_space<vmem>>, vector<512x64xbf16>,
    return
  }
  func.func @transform_0(%arg0: i32) -> (i32, i32, i32) {
    %c0_i32 = arith.constant 0 : i32
    %c0_i32_0 = arith.constant 0 : i32
    %c0_i32_1 = arith.constant 0 : i32
    return %c0_i32, %arg0, %c0_i32_0 : i32, i32, i32
  }
  func.func @transform_1(%arg0: i32) -> (i32, i32) {
    %c0_i32 = arith.constant 0 : i32
    %c0_i32_0 = arith.constant 0 : i32
    return %arg0, %c0_i32 : i32, i32
  }
}

</mosaic_0001>

<bundles_post_ra>
// kernel: stem_forward.2
= control target key start
LH: loop header
LB: loop body
LE: loop exit
PB: predicated region body
PF: predicated region fallthrough
CT: control target
= control target key end

     0   :  { %s2110_s15 = smov 0   ;;  %s2112_s16 = smov 0   ;;  %s2668_s0 = inlined_call_operand.vmem [shape: bf16[2048,147], index: 0, kind: input, shape index: {}]   ;;  %s2669_s1 = inlined_call_operand.vmem [shape: bf16[1,147,64], index: 1, kind: input, shape index: {}]   ;;  %s2670_s2 = inlined_call_operand.vmem [shape: f32[1,1,64], index: 2, kind: input, shape index: {}]   ;;  %s2671_s3 = inlined_call_operand.vmem [shape: f32[1,1,64], index: 3, kind: input, shape index: {}]   ;;  %s2672_s4 = inlined_call_operand.vmem [shape: bf16[2048,64], index: 4, kind: output, shape index: {}]  }
   0x1   :  { %s2114_s17 = smov 0  }
   0x2 LB: > { %s23_s18 = sadd.s32 1, %s2078_s16  ;;  %p1615_p0 = scmp.ge.s32.totalorder %s2082_s17, 1  ;;  %s2082_s17 = sphi %s2114_s17, %s14_s17   ;;  %s2078_s16 = sphi %s2112_s16, %s2674_s16   ;;  %s2074_s15 = sphi %s2110_s15, %s2673_s15  }
   0x3   : > { %p24_p1 = scmp.ge.s32.totalorder %s23_s18, 4  ;;  %p211_p2 = scmp.lt.s32.totalorder %s2082_s17, 5 }
   0x5   : > { %s2676_s18 = smov (%p24_p1, %s23_s18), 0  ;;  %p212_p3 = pnand %p1615_p0, %p211_p2 }
   0x6   : > { %s1616_s23 = sshll.u32 (!%p212_p3), %s2074_s15, 6 }
   0x7   : > { %215 = sbr.rel (%p212_p3) target bundleno = 435 (0x1b3), region = 36  ;;  %p258_p4 = scmp.lt.s32.totalorder (!%p212_p3), %s1616_s23, 255 }
   0xc   : > { %v2019_v0 = vld [vmem:[%s2669_s1 + $0x38] sm:$0xff]  ;;  %v371_v1 = vld [vmem:[%s2669_s1 + $0x48] sm:$0x3]  ;;  %vm814_vm0 = vcmask 1040384   ;;  %vm815_vm1 = vcmask 1041408   ;;  %v2018_v3 = vld [vmem:[%s2669_s1 + $0x30] sm:$0xff] }
   0xd   : > { %v697_v2 = vunpack.c.l.b16 %v371_v1  ;;  %821 = vmatpush.bf16.msra.mxu0 %v2019_v0  ;;  %2021 = vmatpush.bf16.msra.mxu2 %v2019_v0  ;;  %v2084_v4 = vmov 65535   ;;  %s2678_s23 = smov (!%p258_p4, %s1616_s23), 255  ;;  %v2017_v9 = vld [vmem:[%s2669_s1 + $0x28] sm:$0xff]  ;;  %v2020_v10 = vld [vmem:[%s2669_s1 + $0x40] sm:$0xff]  ;;  %vm717_vm2 = vcmask 154624   ;;  %v2015_v18 = vld [vmem:[%s2669_s1 + $0x18] sm:$0xff] }
   0xe   : > { %v816_v5 = vsel %vm814_vm0, 4294967295, %v2084_v4  ;;  %s1947_s28 = sshll.u32 %s2678_s23, 3  ;;  %v2016_v14 = vld [vmem:[%s2669_s1 + $0x20] sm:$0xff]  ;;  %v2014_v19 = vld [vmem:[%s2669_s1 + $0x10] sm:$0xff]  ;;  %v2013_v20 = vld [vmem:[%s2669_s1 + $0x8] sm:$0xff]  ;;  %s1620_s26 = sshll.u32 %s2678_s23, 2 }
   0xf   : > { %v707_v6 = vpack.c.b16 %v697_v2, %v697_v2  ;;  %v817_v7 = vsel %vm815_vm1, %v816_v5, 0  ;;  %s2149_s7 = scalar_lea.vmem %s2668_s0, %s1947_s28  ;;  %v2012_v26 = vld [vmem:[%s2669_s1] sm:$0xff]  ;;  %s2286_s29 = scalar_lea.vmem %s2672_s4, %s1620_s26  ;;  %vm1423_vm3 = vcmask 519168  }
  0x10   : > { %v1948_v11 = vld [vmem:[%s2149_s7 + $0x4] sm:$0xf]  ;;  %v1625_v12 = vld [vmem:[%s2149_s7 + $0x8] sm:$0xf0]  ;;  %v1982_v15 = vld [vmem:[%s2149_s7 + $0x114] sm:$0xf] }
  0x11   : > { %v819_v8 = vand.u32 %v817_v7, %v707_v6  ;;  %822 = vmatpush.bf16.msra.mxu0 %v2018_v3  ;;  %2022 = vmatpush.bf16.msra.mxu2 %v2018_v3  ;;  %v1628_v13 = vor.u32 %v1948_v11, %v1625_v12  ;;  %v1761_v16 = vld [vmem:[%s2149_s7 + $0x118] sm:$0xf0]  ;;  %v1950_v21 = vld [vmem:[%s2149_s7 + $0x14] sm:$0xf]  ;;  %v1984_v23 = vld [vmem:[%s2149_s7 + $0x124] sm:$0xf] }
  0x12   : > { %v1764_v17 = vor.u32 %v1982_v15, %v1761_v16  ;;  %v1633_v22 = vld [vmem:[%s2149_s7 + $0x18] sm:$0xf0]  ;;  %v1769_v24 = vld [vmem:[%s2149_s7 + $0x128] sm:$0xf0]  ;;  %v1623_v27 = vld [vmem:[%s2149_s7] sm:$0xf] }
  0x13   : > { %996 = vmatpush.bf16.msra.mxu1 %v819_v8  ;;  %2029 = vmatpush.bf16.msra.mxu3 %v819_v8  ;;  %v1636_v25 = vor.u32 %v1950_v21, %v1633_v22  ;;  %v1949_v28 = vld [vmem:[%s2149_s7 + $0x4] sm:$0xf0]  ;;  %v1751_v29 = vld [vmem:[%s2149_s7 + $0x100] sm:$0xf]  ;;  %v1772_v31 = vor.u32 %v1984_v23, %v1769_v24  ;;  %v1952_v34 = vld [vmem:[%s2149_s7 + $0x24] sm:$0xf] }
  0x14   : > { %v1981_v30 = vld [vmem:[%s2149_s7 + $0x104] sm:$0xf0]  ;;  %v1624_v32 = vor.u32 %v1949_v28, %v1623_v27  ;;  %v1641_v35 = vld [vmem:[%s2149_s7 + $0x28] sm:$0xf0]  ;;  %v1986_v36 = vld [vmem:[%s2149_s7 + $0x134] sm:$0xf] }
  0x15   : > { %823 = vmatpush.bf16.msra.mxu0 %v2017_v9  ;;  %2023 = vmatpush.bf16.msra.mxu2 %v2017_v9  ;;  %v1752_v33 = vor.u32 %v1981_v30, %v1751_v29  ;;  %v1777_v37 = vld [vmem:[%s2149_s7 + $0x138] sm:$0xf0]  ;;  %v1644_v38 = vor.u32 %v1952_v34, %v1641_v35  ;;  %v1631_v39 = vld [vmem:[%s2149_s7 + $0x10] sm:$0xf]  ;;  %v1951_v40 = vld [vmem:[%s2149_s7 + $0x14] sm:$0xf0] }
  0x16   : > { %v1759_v41 = vld [vmem:[%s2149_s7 + $0x110] sm:$0xf]  ;;  %v1983_v42 = vld [vmem:[%s2149_s7 + $0x114] sm:$0xf0]  ;;  %v1780_v43 = vor.u32 %v1986_v36, %v1777_v37  ;;  %v1632_v44 = vor.u32 %v1951_v40, %v1631_v39  ;;  %v1954_v46 = vld [vmem:[%s2149_s7 + $0x34] sm:$0xf] }
  0x17   : > { %997 = vmatpush.bf16.msra.mxu1 %v2020_v10  ;;  %2030 = vmatpush.bf16.msra.mxu3 %v2020_v10  ;;  %v1760_v45 = vor.u32 %v1983_v42, %v1759_v41  ;;  %v1649_v47 = vld [vmem:[%s2149_s7 + $0x38] sm:$0xf0]  ;;  %v1988_v48 = vld [vmem:[%s2149_s7 + $0x144] sm:$0xf]  ;;  %v1785_v49 = vld [vmem:[%s2149_s7 + $0x148] sm:$0xf0] }
  0x18   : > { %v1652_v50 = vor.u32 %v1954_v46, %v1649_v47  ;;  %v1639_v51 = vld [vmem:[%s2149_s7 + $0x20] sm:$0xf]  ;;  %v1953_v52 = vld [vmem:[%s2149_s7 + $0x24] sm:$0xf0]  ;;  %v1788_v55 = vor.u32 %v1988_v48, %v1785_v49  ;;  %v1956_v58 = vld [vmem:[%s2149_s7 + $0x44] sm:$0xf] }
  0x19   : > { %824 = vmatpush.bf16.msra.mxu0 %v2016_v14  ;;  %2024 = vmatpush.bf16.msra.mxu2 %v2016_v14  ;;  %v1767_v53 = vld [vmem:[%s2149_s7 + $0x120] sm:$0xf]  ;;  %v1985_v54 = vld [vmem:[%s2149_s7 + $0x124] sm:$0xf0]  ;;  %v1640_v56 = vor.u32 %v1953_v52, %v1639_v51  ;;  %v1657_v59 = vld [vmem:[%s2149_s7 + $0x48] sm:$0xf0] }
  0x1a   : > { %1913 = vmatmul.msk.bf16.vlgmr.msra.gmra.mxu1 %vm717_vm2, %v1628_v13  ;;  %1930 = vmatmul.msk.bf16.vlgmr.msra.gmra.mxu3 %vm717_vm2, %v1764_v17  ;;  %v1768_v57 = vor.u32 %v1985_v54, %v1767_v53  ;;  %v1990_v60 = vld [vmem:[%s2149_s7 + $0x154] sm:$0xf]  ;;  %v1793_v61 = vld [vmem:[%s2149_s7 + $0x158] sm:$0xf0]  ;;  %v1660_v62 = vor.u32 %v1956_v58, %v1657_v59  ;;  %v1647_v63 = vld [vmem:[%s2149_s7 + $0x30] sm:$0xf] }
  0x1b   : > { %v1955_v0 = vld [vmem:[%s2149_s7 + $0x34] sm:$0xf0]  ;;  %v1775_v1 = vld [vmem:[%s2149_s7 + $0x130] sm:$0xf]  ;;  %v1796_v3 = vor.u32 %v1990_v60, %v1793_v61  ;;  %v1958_v6 = vld [vmem:[%s2149_s7 + $0x54] sm:$0xf] }
  0x1c   : > { %v1987_v2 = vld [vmem:[%s2149_s7 + $0x134] sm:$0xf0]  ;;  %v1648_v4 = vor.u32 %v1955_v0, %v1647_v63  ;;  %v1665_v7 = vld [vmem:[%s2149_s7 + $0x58] sm:$0xf0]  ;;  %v1992_v8 = vld [vmem:[%s2149_s7 + $0x164] sm:$0xf] }
  0x1d   : > { %825 = vmatpush.bf16.msra.mxu0 %v2015_v18  ;;  %2025 = vmatpush.bf16.msra.mxu2 %v2015_v18  ;;  %v1776_v5 = vor.u32 %v1987_v2, %v1775_v1  ;;  %v1801_v9 = vld [vmem:[%s2149_s7 + $0x168] sm:$0xf0]  ;;  %v1668_v10 = vor.u32 %v1958_v6, %v1665_v7  ;;  %v1655_v11 = vld [vmem:[%s2149_s7 + $0x40] sm:$0xf]  ;;  %v1957_v12 = vld [vmem:[%s2149_s7 + $0x44] sm:$0xf0] }
  0x1e   : > { %v1783_v13 = vld [vmem:[%s2149_s7 + $0x140] sm:$0xf]  ;;  %v1989_v14 = vld [vmem:[%s2149_s7 + $0x144] sm:$0xf0]  ;;  %v1804_v15 = vor.u32 %v1992_v8, %v1801_v9  ;;  %v1656_v16 = vor.u32 %v1957_v12, %v1655_v11  ;;  %v1960_v18 = vld [vmem:[%s2149_s7 + $0x64] sm:$0xf] }
  0x1f   : > { %v1784_v17 = vor.u32 %v1989_v14, %v1783_v13  ;;  %v1809_v21 = vld [vmem:[%s2149_s7 + $0x178] sm:$0xf0]  ;;  %v1663_v23 = vld [vmem:[%s2149_s7 + $0x50] sm:$0xf]  ;;  %v1959_v24 = vld [vmem:[%s2149_s7 + $0x54] sm:$0xf0] }
  0x20   : > { %v1664_v28 = vor.u32 %v1959_v24, %v1663_v23  ;;  %v1962_v30 = vld [vmem:[%s2149_s7 + $0x74] sm:$0xf]  ;;  %v1671_v35 = vld [vmem:[%s2149_s7 + $0x60] sm:$0xf]  ;;  %v1961_v36 = vld [vmem:[%s2149_s7 + $0x64] sm:$0xf0] }
  0x21   : > { %826 = vmatpush.bf16.msra.mxu0 %v2014_v19  ;;  %2026 = vmatpush.bf16.msra.mxu2 %v2014_v19  ;;  %v1673_v19 = vld [vmem:[%s2149_s7 + $0x68] sm:$0xf0]  ;;  %v1799_v37 = vld [vmem:[%s2149_s7 + $0x160] sm:$0xf]  ;;  %v1672_v40 = vor.u32 %v1961_v36, %v1671_v35  ;;  %v1964_v42 = vld [vmem:[%s2149_s7 + $0x84] sm:$0xf] }
  0x22   : > { %v1676_v22 = vor.u32 %v1960_v18, %v1673_v19  ;;  %v1679_v47 = vld [vmem:[%s2149_s7 + $0x70] sm:$0xf]  ;;  %v1963_v48 = vld [vmem:[%s2149_s7 + $0x74] sm:$0xf0]  ;;  %v1697_v58 = vld [vmem:[%s2149_s7 + $0x98] sm:$0xf0] }
  0x23   : > { %v1995_v51 = vld [vmem:[%s2149_s7 + $0x174] sm:$0xf0]  ;;  %v1680_v53 = vor.u32 %v1963_v48, %v1679_v47  ;;  %v2000_v59 = vld [vmem:[%s2149_s7 + $0x1a4] sm:$0xf]  ;;  %v1833_v60 = vld [vmem:[%s2149_s7 + $0x1a8] sm:$0xf0] }
  0x24   : > { %v1965_v63 = vld [vmem:[%s2149_s7 + $0x84] sm:$0xf0]  ;;  %v1815_v2 = vld [vmem:[%s2149_s7 + $0x180] sm:$0xf]  ;;  %v1841_v23 = vld [vmem:[%s2149_s7 + $0x1b8] sm:$0xf0] }
  0x25   : > { %827 = vmatpush.bf16.msra.mxu0 %v2013_v20  ;;  %2027 = vmatpush.bf16.msra.mxu2 %v2013_v20  ;;  %v1994_v20 = vld [vmem:[%s2149_s7 + $0x174] sm:$0xf] }
  0x26   : > { %v1812_v27 = vor.u32 %v1994_v20, %v1809_v21  ;;  %v1968_v20 = vld [vmem:[%s2149_s7 + $0xa4] sm:$0xf]  ;;  %v1705_v21 = vld [vmem:[%s2149_s7 + $0xa8] sm:$0xf0] }
  0x29   : > { %828 = vmatpush.bf16.msra.mxu0 %v2012_v26  ;;  %2028 = vmatpush.bf16.msra.mxu2 %v2012_v26  ;;  %v1991_v26 = vld [vmem:[%s2149_s7 + $0x154] sm:$0xf0] }
  0x2a   : > { %1914 = vmatmul.msk.bf16.gmra.mxu1 %vm717_vm2, %v1636_v25  ;;  %1931 = vmatmul.msk.bf16.gmra.mxu3 %vm717_vm2, %v1772_v31  ;;  %v1791_v25 = vld [vmem:[%s2149_s7 + $0x150] sm:$0xf]  ;;  %v1681_v31 = vld [vmem:[%s2149_s7 + $0x78] sm:$0xf0] }
  0x2b   : > { %v1792_v29 = vor.u32 %v1991_v26, %v1791_v25  ;;  %v1684_v34 = vor.u32 %v1962_v30, %v1681_v31  ;;  %v1708_v25 = vor.u32 %v1968_v20, %v1705_v21  ;;  %v1695_v26 = vld [vmem:[%s2149_s7 + $0x90] sm:$0xf] }
  0x2c   : > { %829 = vmatmul.bf16.vlgmr.msra.gmra.mxu0 %v1624_v32  ;;  %909 = vmatmul.bf16.vlgmr.msra.gmra.mxu2 %v1752_v33  ;;  %v1996_v32 = vld [vmem:[%s2149_s7 + $0x184] sm:$0xf]  ;;  %v1817_v33 = vld [vmem:[%s2149_s7 + $0x188] sm:$0xf0]  ;;  %v1823_v31 = vld [vmem:[%s2149_s7 + $0x190] sm:$0xf] }
  0x2d   : > { %v1820_v39 = vor.u32 %v1996_v32, %v1817_v33  ;;  %v1999_v32 = vld [vmem:[%s2149_s7 + $0x194] sm:$0xf0] }
  0x3a   : > { %1915 = vmatmul.msk.bf16.gmra.mxu1 %vm717_vm2, %v1644_v38  ;;  %1932 = vmatmul.msk.bf16.gmra.mxu3 %vm717_vm2, %v1780_v43  ;;  %v1993_v38 = vld [vmem:[%s2149_s7 + $0x164] sm:$0xf0]  ;;  %v1689_v43 = vld [vmem:[%s2149_s7 + $0x88] sm:$0xf0] }
  0x3b   : > { %v1800_v41 = vor.u32 %v1993_v38, %v1799_v37  ;;  %v1692_v46 = vor.u32 %v1964_v42, %v1689_v43  ;;  %v1824_v38 = vor.u32 %v1999_v32, %v1823_v31  ;;  %v1972_v32 = vld [vmem:[%s2149_s7 + $0xc4] sm:$0xf] }
  0x3c   : > { %834 = vmatmul.bf16.gmra.mxu0 %v1632_v44  ;;  %914 = vmatmul.bf16.gmra.mxu2 %v1760_v45  ;;  %v1998_v44 = vld [vmem:[%s2149_s7 + $0x194] sm:$0xf]  ;;  %v1825_v45 = vld [vmem:[%s2149_s7 + $0x198] sm:$0xf0] }
  0x3d   : > { %v1828_v52 = vor.u32 %v1998_v44, %v1825_v45 }
  0x4a   : > { %1916 = vmatmul.msk.bf16.gmra.mxu1 %vm717_vm2, %v1652_v50  ;;  %1933 = vmatmul.msk.bf16.gmra.mxu3 %vm717_vm2, %v1788_v55  ;;  %v1807_v50 = vld [vmem:[%s2149_s7 + $0x170] sm:$0xf] }
  0x4b   : > { %v1808_v54 = vor.u32 %v1995_v51, %v1807_v50  ;;  %v1970_v51 = vld [vmem:[%s2149_s7 + $0xb4] sm:$0xf] }
  0x4c   : > { %839 = vmatmul.bf16.gmra.mxu0 %v1640_v56  ;;  %919 = vmatmul.bf16.gmra.mxu2 %v1768_v57  ;;  %v1966_v57 = vld [vmem:[%s2149_s7 + $0x94] sm:$0xf] }
  0x4d   : > { %v1700_v61 = vor.u32 %v1966_v57, %v1697_v58 }
  0x5a   : > { %1917 = vmatmul.msk.bf16.gmra.mxu1 %vm717_vm2, %v1660_v62  ;;  %1934 = vmatmul.msk.bf16.gmra.mxu3 %vm717_vm2, %v1796_v3  ;;  %v1687_v62 = vld [vmem:[%s2149_s7 + $0x80] sm:$0xf]  ;;  %v1997_v3 = vld [vmem:[%s2149_s7 + $0x184] sm:$0xf0] }
  0x5b   : > { %v1688_v6 = vor.u32 %v1965_v63, %v1687_v62  ;;  %v1816_v8 = vor.u32 %v1997_v3, %v1815_v2  ;;  %v2001_v2 = vld [vmem:[%s2149_s7 + $0x1a4] sm:$0xf0] }
  0x5c   : > { %844 = vmatmul.bf16.gmra.mxu0 %v1648_v4  ;;  %924 = vmatmul.bf16.gmra.mxu2 %v1776_v5  ;;  %v1836_v4 = vor.u32 %v2000_v59, %v1833_v60  ;;  %v2267_v5 = vld [vmem:[%s2670_s2] ss:$0 sm:$0xff] }
  0x5d   : > { %v1703_v60 = vld [vmem:[%s2149_s7 + $0xa0] sm:$0xf] }
  0x6a   : > { %1918 = vmatmul.msk.bf16.gmra.mxu1 %vm717_vm2, %v1668_v10  ;;  %1935 = vmatmul.msk.bf16.gmra.mxu3 %vm717_vm2, %v1804_v15  ;;  %v2273_v10 = vld [vmem:[%s2671_s3] ss:$0 sm:$0xff] }
  0x6c   : > { %849 = vmatmul.bf16.gmra.mxu0 %v1656_v16  ;;  %929 = vmatmul.bf16.gmra.mxu2 %v1784_v17 }
  0x7a   : > { %1919 = vmatmul.msk.bf16.gmra.mxu1 %vm717_vm2, %v1676_v22  ;;  %1936 = vmatmul.msk.bf16.gmra.mxu3 %vm717_vm2, %v1812_v27  ;;  %v2002_v22 = vld [vmem:[%s2149_s7 + $0x1b4] sm:$0xf]  ;;  %v1967_v27 = vld [vmem:[%s2149_s7 + $0x94] sm:$0xf0] }
  0x7b   : > { %v1844_v33 = vor.u32 %v2002_v22, %v1841_v23  ;;  %v1696_v36 = vor.u32 %v1967_v27, %v1695_v26 }
  0x7c   : > { %854 = vmatmul.bf16.gmra.mxu0 %v1664_v28  ;;  %934 = vmatmul.bf16.gmra.mxu2 %v1792_v29 }
  0x8a   : > { %1920 = vmatmul.msk.bf16.gmra.mxu1 %vm717_vm2, %v1684_v34  ;;  %1937 = vmatmul.msk.bf16.gmra.mxu3 %vm717_vm2, %v1820_v39 }
  0x8c   : > { %859 = vmatmul.bf16.gmra.mxu0 %v1672_v40  ;;  %939 = vmatmul.bf16.gmra.mxu2 %v1800_v41 }
  0x97   : > { %v999_v49 = vpop.f32.mrf.mxu1 }
  0x9a   : > { %1921 = vmatmul.msk.bf16.gmra.mxu1 %vm717_vm2, %v1692_v46  ;;  %1938 = vmatmul.msk.bf16.gmra.mxu3 %vm717_vm2, %v1828_v52  ;;  %v1713_v52 = vld [vmem:[%s2149_s7 + $0xb8] sm:$0xf0] }
  0x9b   : > { %v1716_v59 = vor.u32 %v1970_v51, %v1713_v52 }
  0x9c   : > { %864 = vmatmul.bf16.gmra.mxu0 %v1680_v53  ;;  %944 = vmatmul.bf16.gmra.mxu2 %v1808_v54  ;;  %v2004_v54 = vld [vmem:[%s2149_s7 + $0x1c4] sm:$0xf] }
  0x9d   : > { %v2252_v55 = vpop.f32.mrf.mxu3 }
  0x9f   : > { %v1001_v56 = vpop.f32.mrf.mxu1 }
  0xa5   : > { %v2260_v0 = vpop.f32.mrf.mxu3 }
  0xa7   : > { %v1004_v1 = vpop.f32.mrf.mxu1 }
  0xa9   : > { %v830_v7 = vpop.f32.mrf.mxu0 }
  0xaa   : > { %1922 = vmatmul.msk.bf16.gmra.mxu1 %vm717_vm2, %v1700_v61  ;;  %v1000_v9 = vadd.f32 %v999_v49, %v830_v7  ;;  %1939 = vmatmul.msk.bf16.gmra.mxu3 %vm717_vm2, %v1836_v4 }
  0xac   : > { %v1163_v11 = vmul.f32 %v2267_v5, %v1000_v9  ;;  %869 = vmatmul.bf16.gmra.mxu0 %v1688_v6  ;;  %949 = vmatmul.bf16.gmra.mxu2 %v1816_v8 }
  0xad   : > { %v2277_v12 = vpop.f32.mrf.mxu3 }
  0xae   : > { %v1231_v13 = vadd.f32 %v2273_v10, %v1163_v11 }
  0xaf   : > { %v1006_v14 = vpop.f32.mrf.mxu1  ;;  %v2281_v16 = vpop.f32.mrf.mxu2 }
  0xb0   : > { %v1295_v15 = vmax.f32 %v1231_v13, 0.0 }
  0xb1   : > { %v832_v17 = vpop.f32.mrf.mxu0 }
  0xb2   : > { %v1359_v18 = vpack.c.bf16 %v1295_v15, %v1295_v15  ;;  %v1002_v19 = vadd.f32 %v1001_v56, %v832_v17  ;;  %v1849_v56 = vld [vmem:[%s2149_s7 + $0x1c8] sm:$0xf0] }
  0xb3   : > { %v1852_v3 = vor.u32 %v2004_v54, %v1849_v56 }
  0xb4   : > { %1424 = vst.msk [vmem:[%s2286_s29] sm:$0xf] %vm1423_vm3, %v1359_v18  ;;  %v1164_v24 = vmul.f32 %v2267_v5, %v1002_v19 }
  0xb5   : > { %v2297_v28 = vpop.f32.mrf.mxu3 }
  0xb6   : > { %v1232_v29 = vadd.f32 %v2273_v10, %v1164_v24 }
  0xb7   : > { %v1009_v30 = vpop.f32.mrf.mxu1  ;;  %v2302_v35 = vpop.f32.mrf.mxu2 }
  0xb8   : > { %v1296_v34 = vmax.f32 %v1232_v29, 0.0 }
  0xb9   : > { %v835_v37 = vpop.f32.mrf.mxu0 }
  0xba   : > { %1923 = vmatmul.msk.bf16.gmra.mxu1 %vm717_vm2, %v1708_v25  ;;  %v1360_v39 = vpack.c.bf16 %v1296_v34, %v1296_v34  ;;  %v1005_v40 = vadd.f32 %v1004_v1, %v835_v37  ;;  %1940 = vmatmul.msk.bf16.gmra.mxu3 %vm717_vm2, %v1844_v33  ;;  %v1831_v1 = vld [vmem:[%s2149_s7 + $0x1a0] sm:$0xf]  ;;  %v1721_v33 = vld [vmem:[%s2149_s7 + $0xc8] sm:$0xf0]  ;;  %v1857_v37 = vld [vmem:[%s2149_s7 + $0x1d8] sm:$0xf0] }
  0xbc   : > { %1425 = vst.msk [vmem:[%s2286_s29 + $0x4] sm:$0xf] %vm1423_vm3, %v1360_v39  ;;  %v1165_v41 = vmul.f32 %v2267_v5, %v1005_v40  ;;  %874 = vmatmul.bf16.gmra.mxu0 %v1696_v36  ;;  %954 = vmatmul.bf16.gmra.mxu2 %v1824_v38  ;;  %v2006_v36 = vld [vmem:[%s2149_s7 + $0x1d4] sm:$0xf]  ;;  %v1711_v40 = vld [vmem:[%s2149_s7 + $0xb0] sm:$0xf] }
  0xbd   : > { %v2309_v42 = vpop.f32.mrf.mxu3 }
  0xbe   : > { %v1233_v43 = vadd.f32 %v2273_v10, %v1165_v41  ;;  %v1971_v41 = vld [vmem:[%s2149_s7 + $0xb4] sm:$0xf0] }
  0xbf   : > { %v1011_v44 = vpop.f32.mrf.mxu1  ;;  %v915_v46 = vpop.f32.mrf.mxu2  ;;  %v1712_v52 = vor.u32 %v1971_v41, %v1711_v40 }
  0xc0   : > { %v1297_v45 = vmax.f32 %v1233_v43, 0.0  ;;  %v1085_v47 = vadd.f32 %v2252_v55, %v915_v46  ;;  %v1969_v55 = vld [vmem:[%s2149_s7 + $0xa4] sm:$0xf0]  ;;  %v1839_v46 = vld [vmem:[%s2149_s7 + $0x1b0] sm:$0xf] }
  0xc1   : > { %v837_v48 = vpop.f32.mrf.mxu0  ;;  %v1704_v8 = vor.u32 %v1969_v55, %v1703_v60 }
  0xc2   : > { %v1361_v49 = vpack.c.bf16 %v1297_v45, %v1297_v45  ;;  %v1007_v50 = vadd.f32 %v1006_v14, %v837_v48  ;;  %v1197_v53 = vmul.f32 %v2267_v5, %v1085_v47  ;;  %v1832_v14 = vor.u32 %v2001_v2, %v1831_v1  ;;  %v2003_v47 = vld [vmem:[%s2149_s7 + $0x1b4] sm:$0xf0] }
  0xc3   : > { %v1860_v48 = vor.u32 %v2006_v36, %v1857_v37 }
  0xc4   : > { %1426 = vst.msk [vmem:[%s2286_s29 + $0x8] sm:$0xf] %vm1423_vm3, %v1361_v49  ;;  %v1166_v57 = vmul.f32 %v2267_v5, %v1007_v50  ;;  %v1265_v58 = vadd.f32 %v2273_v10, %v1197_v53 }
  0xc5   : > { %v2324_v61 = vpop.f32.mrf.mxu3 }
  0xc6   : > { %v1234_v62 = vadd.f32 %v2273_v10, %v1166_v57  ;;  %v1329_v4 = vmax.f32 %v1265_v58, 0.0  ;;  %v1840_v57 = vor.u32 %v2003_v47, %v1839_v46 }
  0xc7   : > { %v1014_v63 = vpop.f32.mrf.mxu1  ;;  %v917_v7 = vpop.f32.mrf.mxu2 }
  0xc8   : > { %v1298_v6 = vmax.f32 %v1234_v62, 0.0  ;;  %v1393_v9 = vpack.c.bf16 %v1329_v4, %v1329_v4  ;;  %v1087_v11 = vadd.f32 %v2260_v0, %v917_v7 }
  0xc9   : > { %v840_v13 = vpop.f32.mrf.mxu0 }
  0xca   : > { %1924 = vmatmul.msk.bf16.gmra.mxu1 %vm717_vm2, %v1716_v59  ;;  %v1362_v15 = vpack.c.bf16 %v1298_v6, %v1298_v6  ;;  %v1010_v17 = vadd.f32 %v1009_v30, %v840_v13  ;;  %1941 = vmatmul.msk.bf16.gmra.mxu3 %vm717_vm2, %v1852_v3  ;;  %1458 = vst.msk [vmem:[%s2286_s29 + $0x88] sm:$0xf] %vm1423_vm3, %v1393_v9  ;;  %v1974_v13 = vld [vmem:[%s2149_s7 + $0xd4] sm:$0xf] }
  0xcb   : > { %v1198_v18 = vmul.f32 %v2267_v5, %v1087_v11 }
  0xcc   : > { %1427 = vst.msk [vmem:[%s2286_s29 + $0xc] sm:$0xf] %vm1423_vm3, %v1362_v15  ;;  %v1167_v19 = vmul.f32 %v2267_v5, %v1010_v17  ;;  %879 = vmatmul.bf16.gmra.mxu0 %v1704_v8  ;;  %959 = vmatmul.bf16.gmra.mxu2 %v1832_v14  ;;  %v1729_v14 = vld [vmem:[%s2149_s7 + $0xd8] sm:$0xf0]  ;;  %v2008_v17 = vld [vmem:[%s2149_s7 + $0x1e4] sm:$0xf] }
  0xcd   : > { %v1266_v0 = vadd.f32 %v2273_v10, %v1198_v18  ;;  %v2339_v20 = vpop.f32.mrf.mxu3  ;;  %v1865_v18 = vld [vmem:[%s2149_s7 + $0x1e8] sm:$0xf0] }
  0xce   : > { %v1235_v21 = vadd.f32 %v2273_v10, %v1167_v19 }
  0xcf   : > { %v1016_v22 = vpop.f32.mrf.mxu1  ;;  %v1330_v23 = vmax.f32 %v1266_v0, 0.0  ;;  %v920_v25 = vpop.f32.mrf.mxu2 }
  0xd0   : > { %v1299_v24 = vmax.f32 %v1235_v21, 0.0  ;;  %v1090_v27 = vadd.f32 %v2277_v12, %v920_v25  ;;  %v1724_v12 = vor.u32 %v1972_v32, %v1721_v33  ;;  %v1719_v21 = vld [vmem:[%s2149_s7 + $0xc0] sm:$0xf] }
  0xd1   : > { %v1394_v26 = vpack.c.bf16 %v1330_v23, %v1330_v23  ;;  %v842_v29 = vpop.f32.mrf.mxu0  ;;  %v1973_v23 = vld [vmem:[%s2149_s7 + $0xc4] sm:$0xf0] }
  0xd2   : > { %v1363_v30 = vpack.c.bf16 %v1299_v24, %v1299_v24  ;;  %v1012_v31 = vadd.f32 %v1011_v44, %v842_v29  ;;  %v1199_v34 = vmul.f32 %v2267_v5, %v1090_v27  ;;  %v2005_v27 = vld [vmem:[%s2149_s7 + $0x1c4] sm:$0xf0]  ;;  %v1868_v29 = vor.u32 %v2008_v17, %v1865_v18 }
  0xd3   : > { %1459 = vst.msk [vmem:[%s2286_s29 + $0x8c] sm:$0xf] %vm1423_vm3, %v1394_v26  ;;  %v1847_v26 = vld [vmem:[%s2149_s7 + $0x1c0] sm:$0xf]  ;;  %v1720_v33 = vor.u32 %v1973_v23, %v1719_v21 }
  0xd4   : > { %1428 = vst.msk [vmem:[%s2286_s29 + $0x10] sm:$0xf] %vm1423_vm3, %v1363_v30  ;;  %v1168_v38 = vmul.f32 %v2267_v5, %v1012_v31  ;;  %v1267_v39 = vadd.f32 %v2273_v10, %v1199_v34 }
  0xd5   : > { %v2356_v43 = vpop.f32.mrf.mxu3 }
  0xd6   : > { %v1236_v44 = vadd.f32 %v2273_v10, %v1168_v38  ;;  %v1331_v49 = vmax.f32 %v1267_v39, 0.0  ;;  %v1848_v38 = vor.u32 %v2005_v27, %v1847_v26 }
  0xd7   : > { %v1019_v45 = vpop.f32.mrf.mxu1  ;;  %v922_v51 = vpop.f32.mrf.mxu2 }
  0xd8   : > { %v1300_v50 = vmax.f32 %v1236_v44, 0.0  ;;  %v1395_v53 = vpack.c.bf16 %v1331_v49, %v1331_v49  ;;  %v1092_v54 = vadd.f32 %v2297_v28, %v922_v51 }
  0xd9   : > { %v845_v56 = vpop.f32.mrf.mxu0 }
  0xda   : > { %1925 = vmatmul.msk.bf16.gmra.mxu1 %vm717_vm2, %v1724_v12  ;;  %v1364_v58 = vpack.c.bf16 %v1300_v50, %v1300_v50  ;;  %v1015_v59 = vadd.f32 %v1014_v63, %v845_v56  ;;  %1942 = vmatmul.msk.bf16.gmra.mxu3 %vm717_vm2, %v1860_v48  ;;  %1460 = vst.msk [vmem:[%s2286_s29 + $0x90] sm:$0xf] %vm1423_vm3, %v1395_v53  ;;  %v1976_v56 = vld [vmem:[%s2149_s7 + $0xe4] sm:$0xf] }
  0xdb   : > { %v1200_v60 = vmul.f32 %v2267_v5, %v1092_v54 }
  0xdc   : > { %1429 = vst.msk [vmem:[%s2286_s29 + $0x14] sm:$0xf] %vm1423_vm3, %v1364_v58  ;;  %v1169_v55 = vmul.f32 %v2267_v5, %v1015_v59  ;;  %884 = vmatmul.bf16.gmra.mxu0 %v1712_v52  ;;  %964 = vmatmul.bf16.gmra.mxu2 %v1840_v57  ;;  %v1737_v57 = vld [vmem:[%s2149_s7 + $0xe8] sm:$0xf0]  ;;  %v2010_v59 = vld [vmem:[%s2149_s7 + $0x1f4] sm:$0xf] }
  0xdd   : > { %v1268_v28 = vadd.f32 %v2273_v10, %v1200_v60  ;;  %v2371_v62 = vpop.f32.mrf.mxu3  ;;  %v1873_v60 = vld [vmem:[%s2149_s7 + $0x1f8] sm:$0xf0] }
  0xde   : > { %v1237_v63 = vadd.f32 %v2273_v10, %v1169_v55 }
  0xdf   : > { %v1021_v1 = vpop.f32.mrf.mxu1  ;;  %v1332_v2 = vmax.f32 %v1268_v28, 0.0  ;;  %v925_v4 = vpop.f32.mrf.mxu2 }
  0xe0   : > { %v1301_v3 = vmax.f32 %v1237_v63, 0.0  ;;  %v1095_v7 = vadd.f32 %v2309_v42, %v925_v4  ;;  %v1732_v42 = vor.u32 %v1974_v13, %v1729_v14  ;;  %v1727_v63 = vld [vmem:[%s2149_s7 + $0xd0] sm:$0xf] }
  0xe1   : > { %v1396_v6 = vpack.c.bf16 %v1332_v2, %v1332_v2  ;;  %v847_v8 = vpop.f32.mrf.mxu0  ;;  %v1975_v2 = vld [vmem:[%s2149_s7 + $0xd4] sm:$0xf0] }
  0xe2   : > { %v1365_v9 = vpack.c.bf16 %v1301_v3, %v1301_v3  ;;  %v1017_v11 = vadd.f32 %v1016_v22, %v847_v8  ;;  %v1201_v15 = vmul.f32 %v2267_v5, %v1095_v7  ;;  %v2007_v7 = vld [vmem:[%s2149_s7 + $0x1d4] sm:$0xf0]  ;;  %v1876_v8 = vor.u32 %v2010_v59, %v1873_v60 }
  0xe3   : > { %1461 = vst.msk [vmem:[%s2286_s29 + $0x94] sm:$0xf] %vm1423_vm3, %v1396_v6  ;;  %v1855_v6 = vld [vmem:[%s2149_s7 + $0x1d0] sm:$0xf]  ;;  %v1728_v14 = vor.u32 %v1975_v2, %v1727_v63 }
  0xe4   : > { %1430 = vst.msk [vmem:[%s2286_s29 + $0x18] sm:$0xf] %vm1423_vm3, %v1365_v9  ;;  %v1170_v19 = vmul.f32 %v2267_v5, %v1017_v11  ;;  %v1269_v0 = vadd.f32 %v2273_v10, %v1201_v15 }
  0xe5   : > { %v2388_v22 = vpop.f32.mrf.mxu3 }
  0xe6   : > { %v1238_v24 = vadd.f32 %v2273_v10, %v1170_v19  ;;  %v1333_v30 = vmax.f32 %v1269_v0, 0.0  ;;  %v1856_v19 = vor.u32 %v2007_v7, %v1855_v6 }
  0xe7   : > { %v1024_v25 = vpop.f32.mrf.mxu1  ;;  %v927_v32 = vpop.f32.mrf.mxu2 }
  0xe8   : > { %v1302_v31 = vmax.f32 %v1238_v24, 0.0  ;;  %v1397_v34 = vpack.c.bf16 %v1333_v30, %v1333_v30  ;;  %v1097_v36 = vadd.f32 %v2324_v61, %v927_v32 }
  0xe9   : > { %v850_v37 = vpop.f32.mrf.mxu0 }
  0xea   : > { %1926 = vmatmul.msk.bf16.gmra.mxu1 %vm717_vm2, %v1732_v42  ;;  %v1366_v39 = vpack.c.bf16 %v1302_v31, %v1302_v31  ;;  %v1020_v12 = vadd.f32 %v1019_v45, %v850_v37  ;;  %1943 = vmatmul.msk.bf16.gmra.mxu3 %vm717_vm2, %v1868_v29  ;;  %1462 = vst.msk [vmem:[%s2286_s29 + $0x98] sm:$0xf] %vm1423_vm3, %v1397_v34  ;;  %v1978_v37 = vld [vmem:[%s2149_s7 + $0xf4] sm:$0xf] }
  0xeb   : > { %v1202_v40 = vmul.f32 %v2267_v5, %v1097_v36 }
  0xec   : > { %1431 = vst.msk [vmem:[%s2286_s29 + $0x1c] sm:$0xf] %vm1423_vm3, %v1366_v39  ;;  %v1171_v41 = vmul.f32 %v2267_v5, %v1020_v12  ;;  %889 = vmatmul.bf16.gmra.mxu0 %v1720_v33  ;;  %969 = vmatmul.bf16.gmra.mxu2 %v1848_v38  ;;  %v1745_v38 = vld [vmem:[%s2149_s7 + $0xf8] sm:$0xf0] }
  0xed   : > { %v1270_v61 = vadd.f32 %v2273_v10, %v1202_v40  ;;  %v2403_v44 = vpop.f32.mrf.mxu3 }
  0xee   : > { %v1239_v45 = vadd.f32 %v2273_v10, %v1171_v41  ;;  %v1748_v41 = vor.u32 %v1978_v37, %v1745_v38 }
  0xef   : > { %v1026_v46 = vpop.f32.mrf.mxu1  ;;  %v1334_v47 = vmax.f32 %v1270_v61, 0.0  ;;  %v930_v49 = vpop.f32.mrf.mxu2  ;;  %v1735_v61 = vld [vmem:[%s2149_s7 + $0xe0] sm:$0xf] }
  0xf0   : > { %v1303_v48 = vmax.f32 %v1239_v45, 0.0  ;;  %v1100_v51 = vadd.f32 %v2339_v20, %v930_v49  ;;  %v1740_v20 = vor.u32 %v1976_v56, %v1737_v57 }
  0xf1   : > { %v1398_v50 = vpack.c.bf16 %v1334_v47, %v1334_v47  ;;  %v852_v52 = vpop.f32.mrf.mxu0 }
  0xf2   : > { %v1367_v53 = vpack.c.bf16 %v1303_v48, %v1303_v48  ;;  %v1022_v54 = vadd.f32 %v1021_v1, %v852_v52  ;;  %v1203_v58 = vmul.f32 %v2267_v5, %v1100_v51  ;;  %v2009_v48 = vld [vmem:[%s2149_s7 + $0x1e4] sm:$0xf0] }
  0xf3   : > { %1463 = vst.msk [vmem:[%s2286_s29 + $0x9c] sm:$0xf] %vm1423_vm3, %v1398_v50 }
  0xf4   : > { %1432 = vst.msk [vmem:[%s2286_s29 + $0x20] sm:$0xf] %vm1423_vm3, %v1367_v53  ;;  %v1172_v55 = vmul.f32 %v2267_v5, %v1022_v54  ;;  %v1271_v28 = vadd.f32 %v2273_v10, %v1203_v58 }
  0xf5   : > { %v2420_v1 = vpop.f32.mrf.mxu3 }
  0xf6   : > { %v1240_v3 = vadd.f32 %v2273_v10, %v1172_v55  ;;  %v1335_v9 = vmax.f32 %v1271_v28, 0.0 }
  0xf7   : > { %v1029_v4 = vpop.f32.mrf.mxu1  ;;  %v932_v13 = vpop.f32.mrf.mxu2 }
  0xf8   : > { %v1304_v11 = vmax.f32 %v1240_v3, 0.0  ;;  %v1399_v15 = vpack.c.bf16 %v1335_v9, %v1335_v9  ;;  %v1102_v17 = vadd.f32 %v2356_v43, %v932_v13  ;;  %v1980_v13 = vld [vmem:[%s2149_s7 + $0x104] sm:$0xf] }
  0xf9   : > { %v855_v18 = vpop.f32.mrf.mxu0 }
  0xfa   : > { %1927 = vmatmul.msk.bf16.gmra.mxu1 %vm717_vm2, %v1740_v20  ;;  %v1368_v0 = vpack.c.bf16 %v1304_v11, %v1304_v11  ;;  %v1025_v42 = vadd.f32 %v1024_v25, %v855_v18  ;;  %1944 = vmatmul.msk.bf16.gmra.mxu3 %vm717_vm2, %v1876_v8  ;;  %1464 = vst.msk [vmem:[%s2286_s29 + $0xa0] sm:$0xf] %vm1423_vm3, %v1399_v15 }
  0xfb   : > { %v1204_v21 = vmul.f32 %v2267_v5, %v1102_v17 }
  0xfc   : > { %1433 = vst.msk [vmem:[%s2286_s29 + $0x24] sm:$0xf] %vm1423_vm3, %v1368_v0  ;;  %v1173_v23 = vmul.f32 %v2267_v5, %v1025_v42  ;;  %894 = vmatmul.bf16.gmra.mxu0 %v1728_v14  ;;  %974 = vmatmul.bf16.gmra.mxu2 %v1856_v19  ;;  %v1753_v14 = vld [vmem:[%s2149_s7 + $0x108] sm:$0xf0]  ;;  %v1743_v0 = vld [vmem:[%s2149_s7 + $0xf0] sm:$0xf] }
  0xfd   : > { %v1272_v43 = vadd.f32 %v2273_v10, %v1204_v21  ;;  %v2436_v26 = vpop.f32.mrf.mxu3  ;;  %v1979_v42 = vld [vmem:[%s2149_s7 + $0xf4] sm:$0xf0] }
  0xfe   : > { %v1241_v24 = vadd.f32 %v2273_v10, %v1173_v23 }
  0xff   : > { %v1031_v25 = vpop.f32.mrf.mxu1  ;;  %v1336_v27 = vmax.f32 %v1272_v43, 0.0  ;;  %v935_v30 = vpop.f32.mrf.mxu2  ;;  %v1871_v43 = vld [vmem:[%s2149_s7 + $0x1f0] sm:$0xf] }
 0x100   : > { %v1305_v29 = vmax.f32 %v1241_v24, 0.0  ;;  %v1105_v32 = vadd.f32 %v2371_v62, %v935_v30  ;;  %v1977_v62 = vld [vmem:[%s2149_s7 + $0xe4] sm:$0xf0]  ;;  %v2011_v24 = vld [vmem:[%s2149_s7 + $0x1f4] sm:$0xf0]  ;;  %v1744_v30 = vor.u32 %v1979_v42, %v1743_v0 }
 0x101   : > { %v1400_v31 = vpack.c.bf16 %v1336_v27, %v1336_v27  ;;  %v857_v33 = vpop.f32.mrf.mxu0  ;;  %v1736_v52 = vor.u32 %v1977_v62, %v1735_v61 }
 0x102   : > { %v1369_v34 = vpack.c.bf16 %v1305_v29, %v1305_v29  ;;  %v1027_v36 = vadd.f32 %v1026_v46, %v857_v33  ;;  %v1205_v39 = vmul.f32 %v2267_v5, %v1105_v32  ;;  %v1863_v46 = vld [vmem:[%s2149_s7 + $0x1e0] sm:$0xf] }
 0x103   : > { %1465 = vst.msk [vmem:[%s2286_s29 + $0xa4] sm:$0xf] %vm1423_vm3, %v1400_v31  ;;  %v1864_v58 = vor.u32 %v2009_v48, %v1863_v46 }
 0x104   : > { %1434 = vst.msk [vmem:[%s2286_s29 + $0x28] sm:$0xf] %vm1423_vm3, %v1369_v34  ;;  %v1174_v12 = vmul.f32 %v2267_v5, %v1027_v36  ;;  %v1273_v40 = vadd.f32 %v2273_v10, %v1205_v39  ;;  %v1872_v34 = vor.u32 %v2011_v24, %v1871_v43 }
 0x105   : > { %v2453_v53 = vpop.f32.mrf.mxu3 }
 0x106   : > { %v1242_v45 = vadd.f32 %v2273_v10, %v1174_v12  ;;  %v1337_v49 = vmax.f32 %v1273_v40, 0.0 }
 0x107   : > { %v1034_v47 = vpop.f32.mrf.mxu1  ;;  %v937_v51 = vpop.f32.mrf.mxu2 }
 0x108   : > { %v1306_v50 = vmax.f32 %v1242_v45, 0.0  ;;  %v1401_v54 = vpack.c.bf16 %v1337_v49, %v1337_v49  ;;  %v1107_v56 = vadd.f32 %v2388_v22, %v937_v51 }
 0x109   : > { %v860_v57 = vpop.f32.mrf.mxu0 }
 0x10a   : > { %1928 = vmatmul.msk.bf16.gmra.mxu1 %vm717_vm2, %v1748_v41  ;;  %v1370_v59 = vpack.c.bf16 %v1306_v50, %v1306_v50  ;;  %v1030_v60 = vadd.f32 %v1029_v4, %v860_v57  ;;  %1466 = vst.msk [vmem:[%s2286_s29 + $0xa8] sm:$0xf] %vm1423_vm3, %v1401_v54  ;;  %v1206_v55 = vmul.f32 %v2267_v5, %v1107_v56 }
 0x10c   : > { %1435 = vst.msk [vmem:[%s2286_s29 + $0x2c] sm:$0xf] %vm1423_vm3, %v1370_v59  ;;  %v1175_v28 = vmul.f32 %v2267_v5, %v1030_v60  ;;  %899 = vmatmul.bf16.gmra.mxu0 %v1736_v52  ;;  %v1274_v22 = vadd.f32 %v2273_v10, %v1206_v55  ;;  %979 = vmatmul.bf16.gmra.mxu2 %v1864_v58 }
 0x10d   : > { %v2468_v15 = vpop.f32.mrf.mxu3 }
 0x10e   : > { %v1243_v20 = vadd.f32 %v2273_v10, %v1175_v28  ;;  %v1338_v2 = vmax.f32 %v1274_v22, 0.0 }
 0x10f   : > { %v1036_v63 = vpop.f32.mrf.mxu1  ;;  %v940_v4 = vpop.f32.mrf.mxu2 }
 0x110   : > { %v1307_v3 = vmax.f32 %v1243_v20, 0.0  ;;  %v1402_v6 = vpack.c.bf16 %v1338_v2, %v1338_v2  ;;  %v1110_v7 = vadd.f32 %v2403_v44, %v940_v4  ;;  %v1756_v44 = vor.u32 %v1980_v13, %v1753_v14 }
 0x111   : > { %v862_v8 = vpop.f32.mrf.mxu0 }
 0x112   : > { %v1371_v9 = vpack.c.bf16 %v1307_v3, %v1307_v3  ;;  %v1032_v11 = vadd.f32 %v1031_v25, %v862_v8  ;;  %1467 = vst.msk [vmem:[%s2286_s29 + $0xac] sm:$0xf] %vm1423_vm3, %v1402_v6  ;;  %v1207_v17 = vmul.f32 %v2267_v5, %v1110_v7 }
 0x114   : > { %1436 = vst.msk [vmem:[%s2286_s29 + $0x30] sm:$0xf] %vm1423_vm3, %v1371_v9  ;;  %v1176_v18 = vmul.f32 %v2267_v5, %v1032_v11  ;;  %v1275_v19 = vadd.f32 %v2273_v10, %v1207_v17 }
 0x115   : > { %v1121_v12 = vpop.f32.mrf.mxu3 }
 0x116   : > { %v1244_v21 = vadd.f32 %v2273_v10, %v1176_v18  ;;  %v1339_v25 = vmax.f32 %v1275_v19, 0.0 }
 0x117   : > { %v1039_v23 = vpop.f32.mrf.mxu1  ;;  %v942_v29 = vpop.f32.mrf.mxu2 }
 0x118   : > { %v1308_v27 = vmax.f32 %v1244_v21, 0.0  ;;  %v1403_v31 = vpack.c.bf16 %v1339_v25, %v1339_v25  ;;  %v1112_v32 = vadd.f32 %v2420_v1, %v942_v29 }
 0x119   : > { %v865_v33 = vpop.f32.mrf.mxu0 }
 0x11a   : > { %1929 = vmatmul.msk.bf16.gmra.mxu1 %vm717_vm2, %v1756_v44  ;;  %v1372_v36 = vpack.c.bf16 %v1308_v27, %v1308_v27  ;;  %v1035_v37 = vadd.f32 %v1034_v47, %v865_v33  ;;  %1468 = vst.msk [vmem:[%s2286_s29 + $0xb0] sm:$0xf] %vm1423_vm3, %v1403_v31  ;;  %v1208_v38 = vmul.f32 %v2267_v5, %v1112_v32 }
 0x11c   : > { %1437 = vst.msk [vmem:[%s2286_s29 + $0x34] sm:$0xf] %vm1423_vm3, %v1372_v36  ;;  %v1177_v39 = vmul.f32 %v2267_v5, %v1035_v37  ;;  %904 = vmatmul.bf16.gmra.mxu0 %v1744_v30  ;;  %v1276_v1 = vadd.f32 %v2273_v10, %v1208_v38  ;;  %984 = vmatmul.bf16.gmra.mxu2 %v1872_v34 }
 0x11d   : > { %v1124_v58 = vpop.f32.mrf.mxu3 }
 0x11e   : > { %v1245_v40 = vadd.f32 %v2273_v10, %v1177_v39  ;;  %v1340_v61 = vmax.f32 %v1276_v1, 0.0 }
 0x11f   : > { %v1041_v41 = vpop.f32.mrf.mxu1  ;;  %v945_v45 = vpop.f32.mrf.mxu2 }
 0x120   : > { %v1309_v62 = vmax.f32 %v1245_v40, 0.0  ;;  %v1404_v47 = vpack.c.bf16 %v1340_v61, %v1340_v61  ;;  %v1115_v46 = vadd.f32 %v2436_v26, %v945_v45 }
 0x121   : > { %v867_v48 = vpop.f32.mrf.mxu0 }
 0x122   : > { %v1373_v49 = vpack.c.bf16 %v1309_v62, %v1309_v62  ;;  %v1037_v50 = vadd.f32 %v1036_v63, %v867_v48  ;;  %1469 = vst.msk [vmem:[%s2286_s29 + $0xb4] sm:$0xf] %vm1423_vm3, %v1404_v47  ;;  %v1209_v51 = vmul.f32 %v2267_v5, %v1115_v46 }
 0x124   : > { %1438 = vst.msk [vmem:[%s2286_s29 + $0x38] sm:$0xf] %vm1423_vm3, %v1373_v49  ;;  %v1178_v52 = vmul.f32 %v2267_v5, %v1037_v50  ;;  %v1277_v54 = vadd.f32 %v2273_v10, %v1209_v51 }
 0x125   : > { %v1126_v11 = vpop.f32.mrf.mxu3 }
 0x126   : > { %v1246_v56 = vadd.f32 %v2273_v10, %v1178_v52  ;;  %v1341_v26 = vmax.f32 %v1277_v54, 0.0 }
 0x127   : > { %v1044_v57 = vpop.f32.mrf.mxu1  ;;  %v947_v60 = vpop.f32.mrf.mxu2 }
 0x128   : > { %v1310_v59 = vmax.f32 %v1246_v56, 0.0  ;;  %v1405_v55 = vpack.c.bf16 %v1341_v26, %v1341_v26  ;;  %v1117_v28 = vadd.f32 %v2453_v53, %v947_v60 }
 0x129   : > { %v870_v22 = vpop.f32.mrf.mxu0 }
 0x12a   : > { %v1374_v20 = vpack.c.bf16 %v1310_v59, %v1310_v59  ;;  %v1040_v63 = vadd.f32 %v1039_v23, %v870_v22  ;;  %1470 = vst.msk [vmem:[%s2286_s29 + $0xb8] sm:$0xf] %vm1423_vm3, %v1405_v55  ;;  %v1210_v2 = vmul.f32 %v2267_v5, %v1117_v28 }
 0x12c   : > { %1439 = vst.msk [vmem:[%s2286_s29 + $0x3c] sm:$0xf] %vm1423_vm3, %v1374_v20  ;;  %v1179_v3 = vmul.f32 %v2267_v5, %v1040_v63  ;;  %v1278_v4 = vadd.f32 %v2273_v10, %v1210_v2 }
 0x12d   : > { %v1129_v32 = vpop.f32.mrf.mxu3 }
 0x12e   : > { %v1247_v6 = vadd.f32 %v2273_v10, %v1179_v3  ;;  %v1342_v8 = vmax.f32 %v1278_v4, 0.0 }
 0x12f   : > { %v1046_v7 = vpop.f32.mrf.mxu1  ;;  %v950_v9 = vpop.f32.mrf.mxu2 }
 0x130   : > { %v1311_v53 = vmax.f32 %v1247_v6, 0.0  ;;  %v1406_v13 = vpack.c.bf16 %v1342_v8, %v1342_v8  ;;  %v1120_v14 = vadd.f32 %v2468_v15, %v950_v9 }
 0x131   : > { %v872_v17 = vpop.f32.mrf.mxu0 }
 0x132   : > { %v1375_v18 = vpack.c.bf16 %v1311_v53, %v1311_v53  ;;  %v1042_v19 = vadd.f32 %v1041_v41, %v872_v17  ;;  %1471 = vst.msk [vmem:[%s2286_s29 + $0xbc] sm:$0xf] %vm1423_vm3, %v1406_v13  ;;  %v1211_v44 = vmul.f32 %v2267_v5, %v1120_v14 }
 0x134   : > { %1440 = vst.msk [vmem:[%s2286_s29 + $0x40] sm:$0xf] %vm1423_vm3, %v1375_v18  ;;  %v1180_v0 = vmul.f32 %v2267_v5, %v1042_v19  ;;  %v1279_v42 = vadd.f32 %v2273_v10, %v1211_v44 }
 0x135   : > { %v1131_v48 = vpop.f32.mrf.mxu3 }
 0x136   : > { %v1248_v21 = vadd.f32 %v2273_v10, %v1180_v0  ;;  %v1343_v43 = vmax.f32 %v1279_v42, 0.0 }
 0x137   : > { %v1049_v23 = vpop.f32.mrf.mxu1  ;;  %v952_v24 = vpop.f32.mrf.mxu2 }
 0x138   : > { %v1312_v15 = vmax.f32 %v1248_v21, 0.0  ;;  %v1407_v25 = vpack.c.bf16 %v1343_v43, %v1343_v43  ;;  %v1122_v27 = vadd.f32 %v1121_v12, %v952_v24 }
 0x139   : > { %v875_v29 = vpop.f32.mrf.mxu0 }
 0x13a   : > { %v1376_v30 = vpack.c.bf16 %v1312_v15, %v1312_v15  ;;  %v1045_v31 = vadd.f32 %v1044_v57, %v875_v29  ;;  %1472 = vst.msk [vmem:[%s2286_s29 + $0xc0] sm:$0xf] %vm1423_vm3, %v1407_v25  ;;  %v1212_v33 = vmul.f32 %v2267_v5, %v1122_v27 }
 0x13c   : > { %1441 = vst.msk [vmem:[%s2286_s29 + $0x44] sm:$0xf] %vm1423_vm3, %v1376_v30  ;;  %v1181_v34 = vmul.f32 %v2267_v5, %v1045_v31  ;;  %v1280_v36 = vadd.f32 %v2273_v10, %v1212_v33 }
 0x13d   : > { %v1134_v2 = vpop.f32.mrf.mxu3 }
 0x13e   : > { %v1249_v37 = vadd.f32 %v2273_v10, %v1181_v34  ;;  %v1344_v39 = vmax.f32 %v1280_v36, 0.0 }
 0x13f   : > { %v1051_v38 = vpop.f32.mrf.mxu1  ;;  %v955_v1 = vpop.f32.mrf.mxu2 }
 0x140   : > { %v1313_v12 = vmax.f32 %v1249_v37, 0.0  ;;  %v1408_v40 = vpack.c.bf16 %v1344_v39, %v1344_v39  ;;  %v1125_v41 = vadd.f32 %v1124_v58, %v955_v1 }
 0x141   : > { %v877_v61 = vpop.f32.mrf.mxu0 }
 0x142   : > { %v1377_v62 = vpack.c.bf16 %v1313_v12, %v1313_v12  ;;  %v1047_v45 = vadd.f32 %v1046_v7, %v877_v61  ;;  %1473 = vst.msk [vmem:[%s2286_s29 + $0xc4] sm:$0xf] %vm1423_vm3, %v1408_v40  ;;  %v1213_v47 = vmul.f32 %v2267_v5, %v1125_v41 }
 0x144   : > { %1442 = vst.msk [vmem:[%s2286_s29 + $0x48] sm:$0xf] %vm1423_vm3, %v1377_v62  ;;  %v1182_v46 = vmul.f32 %v2267_v5, %v1047_v45  ;;  %v1281_v49 = vadd.f32 %v2273_v10, %v1213_v47 }
 0x145   : > { %v1136_v21 = vpop.f32.mrf.mxu3 }
 0x146   : > { %v1250_v50 = vadd.f32 %v2273_v10, %v1182_v46  ;;  %v1345_v52 = vmax.f32 %v1281_v49, 0.0 }
 0x147   : > { %v1054_v51 = vpop.f32.mrf.mxu1  ;;  %v957_v56 = vpop.f32.mrf.mxu2 }
 0x148   : > { %v1314_v54 = vmax.f32 %v1250_v50, 0.0  ;;  %v1409_v57 = vpack.c.bf16 %v1345_v52, %v1345_v52  ;;  %v1127_v58 = vadd.f32 %v1126_v11, %v957_v56 }
 0x149   : > { %v880_v26 = vpop.f32.mrf.mxu0 }
 0x14a   : > { %v1378_v59 = vpack.c.bf16 %v1314_v54, %v1314_v54  ;;  %v1050_v60 = vadd.f32 %v1049_v23, %v880_v26  ;;  %1474 = vst.msk [vmem:[%s2286_s29 + $0xc8] sm:$0xf] %vm1423_vm3, %v1409_v57  ;;  %v1214_v55 = vmul.f32 %v2267_v5, %v1127_v58 }
 0x14c   : > { %1443 = vst.msk [vmem:[%s2286_s29 + $0x4c] sm:$0xf] %vm1423_vm3, %v1378_v59  ;;  %v1183_v28 = vmul.f32 %v2267_v5, %v1050_v60  ;;  %v1282_v22 = vadd.f32 %v2273_v10, %v1214_v55 }
 0x14d   : > { %v1139_v40 = vpop.f32.mrf.mxu3 }
 0x14e   : > { %v1251_v20 = vadd.f32 %v2273_v10, %v1183_v28  ;;  %v1346_v3 = vmax.f32 %v1282_v22, 0.0 }
 0x14f   : > { %v1056_v63 = vpop.f32.mrf.mxu1  ;;  %v960_v6 = vpop.f32.mrf.mxu2 }
 0x150   : > { %v1315_v4 = vmax.f32 %v1251_v20, 0.0  ;;  %v1410_v7 = vpack.c.bf16 %v1346_v3, %v1346_v3  ;;  %v1130_v8 = vadd.f32 %v1129_v32, %v960_v6 }
 0x151   : > { %v882_v53 = vpop.f32.mrf.mxu0 }
 0x152   : > { %v1379_v9 = vpack.c.bf16 %v1315_v4, %v1315_v4  ;;  %v1052_v11 = vadd.f32 %v1051_v38, %v882_v53  ;;  %1475 = vst.msk [vmem:[%s2286_s29 + $0xcc] sm:$0xf] %vm1423_vm3, %v1410_v7  ;;  %v1215_v13 = vmul.f32 %v2267_v5, %v1130_v8 }
 0x154   : > { %1444 = vst.msk [vmem:[%s2286_s29 + $0x50] sm:$0xf] %vm1423_vm3, %v1379_v9  ;;  %v1184_v14 = vmul.f32 %v2267_v5, %v1052_v11  ;;  %v1283_v17 = vadd.f32 %v2273_v10, %v1215_v13 }
 0x155   : > { %v1141_v26 = vpop.f32.mrf.mxu3 }
 0x156   : > { %v1252_v18 = vadd.f32 %v2273_v10, %v1184_v14  ;;  %v1347_v44 = vmax.f32 %v1283_v17, 0.0 }
 0x157   : > { %v1059_v19 = vpop.f32.mrf.mxu1  ;;  %v962_v42 = vpop.f32.mrf.mxu2 }
 0x158   : > { %v1316_v0 = vmax.f32 %v1252_v18, 0.0  ;;  %v1411_v23 = vpack.c.bf16 %v1347_v44, %v1347_v44  ;;  %v1132_v43 = vadd.f32 %v1131_v48, %v962_v42 }
 0x159   : > { %v885_v15 = vpop.f32.mrf.mxu0 }
 0x15a   : > { %v1380_v24 = vpack.c.bf16 %v1316_v0, %v1316_v0  ;;  %v1055_v25 = vadd.f32 %v1054_v51, %v885_v15  ;;  %1476 = vst.msk [vmem:[%s2286_s29 + $0xd0] sm:$0xf] %vm1423_vm3, %v1411_v23  ;;  %v1216_v27 = vmul.f32 %v2267_v5, %v1132_v43 }
 0x15c   : > { %1445 = vst.msk [vmem:[%s2286_s29 + $0x54] sm:$0xf] %vm1423_vm3, %v1380_v24  ;;  %v1185_v29 = vmul.f32 %v2267_v5, %v1055_v25  ;;  %v1284_v30 = vadd.f32 %v2273_v10, %v1216_v27 }
 0x15d   : > { %v1144_v13 = vpop.f32.mrf.mxu3 }
 0x15e   : > { %v1253_v31 = vadd.f32 %v2273_v10, %v1185_v29  ;;  %v1348_v33 = vmax.f32 %v1284_v30, 0.0 }
 0x15f   : > { %v1061_v32 = vpop.f32.mrf.mxu1  ;;  %v965_v36 = vpop.f32.mrf.mxu2 }
 0x160   : > { %v1317_v34 = vmax.f32 %v1253_v31, 0.0  ;;  %v1412_v37 = vpack.c.bf16 %v1348_v33, %v1348_v33  ;;  %v1135_v38 = vadd.f32 %v1134_v2, %v965_v36 }
 0x161   : > { %v887_v39 = vpop.f32.mrf.mxu0 }
 0x162   : > { %v1381_v12 = vpack.c.bf16 %v1317_v34, %v1317_v34  ;;  %v1057_v1 = vadd.f32 %v1056_v63, %v887_v39  ;;  %1477 = vst.msk [vmem:[%s2286_s29 + $0xd4] sm:$0xf] %vm1423_vm3, %v1412_v37  ;;  %v1217_v41 = vmul.f32 %v2267_v5, %v1135_v38 }
 0x164   : > { %1446 = vst.msk [vmem:[%s2286_s29 + $0x58] sm:$0xf] %vm1423_vm3, %v1381_v12  ;;  %v1186_v61 = vmul.f32 %v2267_v5, %v1057_v1  ;;  %v1285_v62 = vadd.f32 %v2273_v10, %v1217_v41 }
 0x165   : > { %v1146_v31 = vpop.f32.mrf.mxu3 }
 0x166   : > { %v1254_v45 = vadd.f32 %v2273_v10, %v1186_v61  ;;  %v1349_v46 = vmax.f32 %v1285_v62, 0.0 }
 0x167   : > { %v1064_v47 = vpop.f32.mrf.mxu1  ;;  %v967_v49 = vpop.f32.mrf.mxu2 }
 0x168   : > { %v1318_v48 = vmax.f32 %v1254_v45, 0.0  ;;  %v1413_v50 = vpack.c.bf16 %v1349_v46, %v1349_v46  ;;  %v1137_v51 = vadd.f32 %v1136_v21, %v967_v49 }
 0x169   : > { %v890_v52 = vpop.f32.mrf.mxu0 }
 0x16a   : > { %v1382_v54 = vpack.c.bf16 %v1318_v48, %v1318_v48  ;;  %v1060_v56 = vadd.f32 %v1059_v19, %v890_v52  ;;  %1478 = vst.msk [vmem:[%s2286_s29 + $0xd8] sm:$0xf] %vm1423_vm3, %v1413_v50  ;;  %v1218_v57 = vmul.f32 %v2267_v5, %v1137_v51 }
 0x16c   : > { %1447 = vst.msk [vmem:[%s2286_s29 + $0x5c] sm:$0xf] %vm1423_vm3, %v1382_v54  ;;  %v1187_v58 = vmul.f32 %v2267_v5, %v1060_v56  ;;  %v1286_v59 = vadd.f32 %v2273_v10, %v1218_v57 }
 0x16d   : > { %v1149_v49 = vpop.f32.mrf.mxu3 }
 0x16e   : > { %v1255_v60 = vadd.f32 %v2273_v10, %v1187_v58  ;;  %v1350_v28 = vmax.f32 %v1286_v59, 0.0 }
 0x16f   : > { %v1066_v55 = vpop.f32.mrf.mxu1  ;;  %v970_v20 = vpop.f32.mrf.mxu2 }
 0x170   : > { %v1319_v22 = vmax.f32 %v1255_v60, 0.0  ;;  %v1414_v63 = vpack.c.bf16 %v1350_v28, %v1350_v28  ;;  %v1140_v2 = vadd.f32 %v1139_v40, %v970_v20 }
 0x171   : > { %v892_v3 = vpop.f32.mrf.mxu0 }
 0x172   : > { %v1383_v4 = vpack.c.bf16 %v1319_v22, %v1319_v22  ;;  %v1062_v6 = vadd.f32 %v1061_v32, %v892_v3  ;;  %1479 = vst.msk [vmem:[%s2286_s29 + $0xdc] sm:$0xf] %vm1423_vm3, %v1414_v63  ;;  %v1219_v7 = vmul.f32 %v2267_v5, %v1140_v2 }
 0x174   : > { %1448 = vst.msk [vmem:[%s2286_s29 + $0x60] sm:$0xf] %vm1423_vm3, %v1383_v4  ;;  %v1188_v8 = vmul.f32 %v2267_v5, %v1062_v6  ;;  %v1287_v53 = vadd.f32 %v2273_v10, %v1219_v7  ;;  %v2588_v5 = vld [vmem:[%s2670_s2] ss:$0 sm:$0xff] }
 0x175   : > { %v1151_v2 = vpop.f32.mrf.mxu3 }
 0x176   : > { %v1256_v9 = vadd.f32 %v2273_v10, %v1188_v8  ;;  %v1351_v14 = vmax.f32 %v1287_v53, 0.0 }
 0x177   : > { %v1069_v11 = vpop.f32.mrf.mxu1  ;;  %v972_v18 = vpop.f32.mrf.mxu2 }
 0x178   : > { %v1320_v17 = vmax.f32 %v1256_v9, 0.0  ;;  %v1415_v19 = vpack.c.bf16 %v1351_v14, %v1351_v14  ;;  %v1142_v44 = vadd.f32 %v1141_v26, %v972_v18 }
 0x179   : > { %v895_v0 = vpop.f32.mrf.mxu0 }
 0x17a   : > { %v1384_v42 = vpack.c.bf16 %v1320_v17, %v1320_v17  ;;  %v1065_v21 = vadd.f32 %v1064_v47, %v895_v0  ;;  %1480 = vst.msk [vmem:[%s2286_s29 + $0xe0] sm:$0xf] %vm1423_vm3, %v1415_v19  ;;  %v1220_v23 = vmul.f32 %v2588_v5, %v1142_v44 }
 0x17c   : > { %1449 = vst.msk [vmem:[%s2286_s29 + $0x64] sm:$0xf] %vm1423_vm3, %v1384_v42  ;;  %v1189_v43 = vmul.f32 %v2588_v5, %v1065_v21  ;;  %v1288_v15 = vadd.f32 %v2273_v10, %v1220_v23 }
 0x17e   : > { %v1257_v24 = vadd.f32 %v2273_v10, %v1189_v43  ;;  %v1352_v27 = vmax.f32 %v1288_v15, 0.0  ;;  %v2605_v10 = vld [vmem:[%s2671_s3] ss:$0 sm:$0xff]  ;;  %v1154_v43 = vpop.f32.mrf.mxu3 }
 0x17f   : > { %v1071_v25 = vpop.f32.mrf.mxu1  ;;  %v975_v30 = vpop.f32.mrf.mxu2 }
 0x180   : > { %v1321_v29 = vmax.f32 %v1257_v24, 0.0  ;;  %v1416_v32 = vpack.c.bf16 %v1352_v27, %v1352_v27  ;;  %v1145_v33 = vadd.f32 %v1144_v13, %v975_v30 }
 0x181   : > { %v897_v34 = vpop.f32.mrf.mxu0 }
 0x182   : > { %v1385_v36 = vpack.c.bf16 %v1321_v29, %v1321_v29  ;;  %v1067_v37 = vadd.f32 %v1066_v55, %v897_v34  ;;  %1481 = vst.msk [vmem:[%s2286_s29 + $0xe4] sm:$0xf] %vm1423_vm3, %v1416_v32  ;;  %v1221_v38 = vmul.f32 %v2588_v5, %v1145_v33 }
 0x184   : > { %1450 = vst.msk [vmem:[%s2286_s29 + $0x68] sm:$0xf] %vm1423_vm3, %v1385_v36  ;;  %v1190_v39 = vmul.f32 %v2588_v5, %v1067_v37  ;;  %v1289_v12 = vadd.f32 %v2605_v10, %v1221_v38 }
 0x186   : > { %v1258_v1 = vadd.f32 %v2605_v10, %v1190_v39  ;;  %v1353_v41 = vmax.f32 %v1289_v12, 0.0 }
 0x187   : > { %v1074_v40 = vpop.f32.mrf.mxu1  ;;  %v977_v62 = vpop.f32.mrf.mxu2 }
 0x188   : > { %v1322_v61 = vmax.f32 %v1258_v1, 0.0  ;;  %v1417_v45 = vpack.c.bf16 %v1353_v41, %v1353_v41  ;;  %v1147_v47 = vadd.f32 %v1146_v31, %v977_v62 }
 0x189   : > { %v900_v46 = vpop.f32.mrf.mxu0 }
 0x18a   : > { %v1386_v48 = vpack.c.bf16 %v1322_v61, %v1322_v61  ;;  %v1070_v50 = vadd.f32 %v1069_v11, %v900_v46  ;;  %1482 = vst.msk [vmem:[%s2286_s29 + $0xe8] sm:$0xf] %vm1423_vm3, %v1417_v45  ;;  %v1222_v51 = vmul.f32 %v2588_v5, %v1147_v47  ;;  %v1156_v45 = vpop.f32.mrf.mxu3 }
 0x18c   : > { %1451 = vst.msk [vmem:[%s2286_s29 + $0x6c] sm:$0xf] %vm1423_vm3, %v1386_v48  ;;  %v1191_v52 = vmul.f32 %v2588_v5, %v1070_v50  ;;  %v1290_v54 = vadd.f32 %v2605_v10, %v1222_v51 }
 0x18e   : > { %v1259_v56 = vadd.f32 %v2605_v10, %v1191_v52  ;;  %v1354_v58 = vmax.f32 %v1290_v54, 0.0 }
 0x18f   : > { %v1076_v57 = vpop.f32.mrf.mxu1  ;;  %v980_v59 = vpop.f32.mrf.mxu2 }
 0x190   : > { %v1323_v26 = vmax.f32 %v1259_v56, 0.0  ;;  %v1418_v60 = vpack.c.bf16 %v1354_v58, %v1354_v58  ;;  %v1150_v55 = vadd.f32 %v1149_v49, %v980_v59 }
 0x191   : > { %v902_v28 = vpop.f32.mrf.mxu0 }
 0x192   : > { %v1387_v22 = vpack.c.bf16 %v1323_v26, %v1323_v26  ;;  %v1072_v20 = vadd.f32 %v1071_v25, %v902_v28  ;;  %1483 = vst.msk [vmem:[%s2286_s29 + $0xec] sm:$0xf] %vm1423_vm3, %v1418_v60  ;;  %v1223_v63 = vmul.f32 %v2588_v5, %v1150_v55 }
 0x194   : > { %1452 = vst.msk [vmem:[%s2286_s29 + $0x70] sm:$0xf] %vm1423_vm3, %v1387_v22  ;;  %v1192_v3 = vmul.f32 %v2588_v5, %v1072_v20  ;;  %v1291_v4 = vadd.f32 %v2605_v10, %v1223_v63 }
 0x196   : > { %v1260_v6 = vadd.f32 %v2605_v10, %v1192_v3  ;;  %v1355_v8 = vmax.f32 %v1291_v4, 0.0 }
 0x197   : > { %v1079_v7 = vpop.f32.mrf.mxu1  ;;  %v982_v11 = vpop.f32.mrf.mxu2 }
 0x198   : > { %v1080_v53 = vadd.f32 %v1079_v7, %v2281_v16  ;;  %v1324_v9 = vmax.f32 %v1260_v6, 0.0  ;;  %v1419_v13 = vpack.c.bf16 %v1355_v8, %v1355_v8  ;;  %v1152_v17 = vadd.f32 %v1151_v2, %v982_v11 }
 0x199   : > { %v905_v18 = vpop.f32.mrf.mxu0 }
 0x19a   : > { %v1195_v14 = vmul.f32 %v2588_v5, %v1080_v53  ;;  %v1388_v19 = vpack.c.bf16 %v1324_v9, %v1324_v9  ;;  %v1075_v44 = vadd.f32 %v1074_v40, %v905_v18  ;;  %1484 = vst.msk [vmem:[%s2286_s29 + $0xf0] sm:$0xf] %vm1423_vm3, %v1419_v13  ;;  %v1224_v42 = vmul.f32 %v2588_v5, %v1152_v17 }
 0x19c   : > { %v1263_v0 = vadd.f32 %v2605_v10, %v1195_v14  ;;  %1453 = vst.msk [vmem:[%s2286_s29 + $0x74] sm:$0xf] %vm1423_vm3, %v1388_v19  ;;  %v1193_v16 = vmul.f32 %v2588_v5, %v1075_v44  ;;  %v1292_v23 = vadd.f32 %v2605_v10, %v1224_v42 }
 0x19e   : > { %v1327_v21 = vmax.f32 %v1263_v0, 0.0  ;;  %v1261_v15 = vadd.f32 %v2605_v10, %v1193_v16  ;;  %v1356_v27 = vmax.f32 %v1292_v23, 0.0 }
 0x19f   : > { %v1081_v24 = vpop.f32.mrf.mxu1  ;;  %v985_v31 = vpop.f32.mrf.mxu2 }
 0x1a0   : > { %v1391_v25 = vpack.c.bf16 %v1327_v21, %v1327_v21  ;;  %v1082_v29 = vadd.f32 %v1081_v24, %v2302_v35  ;;  %v1325_v30 = vmax.f32 %v1261_v15, 0.0  ;;  %v1420_v32 = vpack.c.bf16 %v1356_v27, %v1356_v27 }
 0x1a1   : > { %v1155_v34 = vadd.f32 %v1154_v43, %v985_v31  ;;  %v907_v36 = vpop.f32.mrf.mxu0 }
 0x1a2   : > { %1456 = vst.msk [vmem:[%s2286_s29 + $0x80] sm:$0xf] %vm1423_vm3, %v1391_v25  ;;  %v1196_v33 = vmul.f32 %v2588_v5, %v1082_v29  ;;  %v1389_v37 = vpack.c.bf16 %v1325_v30, %v1325_v30  ;;  %v1077_v38 = vadd.f32 %v1076_v57, %v907_v36 }
 0x1a3   : > { %1485 = vst.msk [vmem:[%s2286_s29 + $0xf4] sm:$0xf] %vm1423_vm3, %v1420_v32  ;;  %v1225_v12 = vmul.f32 %v2588_v5, %v1155_v34 }
 0x1a4   : > { %v1264_v39 = vadd.f32 %v2605_v10, %v1196_v33  ;;  %1454 = vst.msk [vmem:[%s2286_s29 + $0x78] sm:$0xf] %vm1423_vm3, %v1389_v37  ;;  %v1194_v35 = vmul.f32 %v2588_v5, %v1077_v38 }
 0x1a5   : > { %v1293_v40 = vadd.f32 %v2605_v10, %v1225_v12 }
 0x1a6   : > { %v1328_v1 = vmax.f32 %v1264_v39, 0.0  ;;  %v1262_v41 = vadd.f32 %v2605_v10, %v1194_v35 }
 0x1a7   : > { %v1357_v62 = vmax.f32 %v1293_v40, 0.0  ;;  %v987_v46 = vpop.f32.mrf.mxu2 }
 0x1a8   : > { %v1392_v61 = vpack.c.bf16 %v1328_v1, %v1328_v1  ;;  %v1326_v47 = vmax.f32 %v1262_v41, 0.0  ;;  %v1157_v49 = vadd.f32 %v1156_v45, %v987_v46 }
 0x1a9   : > { %v1421_v48 = vpack.c.bf16 %v1357_v62, %v1357_v62 }
 0x1aa   : > { %1457 = vst.msk [vmem:[%s2286_s29 + $0x84] sm:$0xf] %vm1423_vm3, %v1392_v61  ;;  %v1390_v50 = vpack.c.bf16 %v1326_v47, %v1326_v47  ;;  %v1226_v51 = vmul.f32 %v2588_v5, %v1157_v49 }
 0x1ab   : > { %1486 = vst.msk [vmem:[%s2286_s29 + $0xf8] sm:$0xf] %vm1423_vm3, %v1421_v48 }
 0x1ac   : > { %1455 = vst.msk [vmem:[%s2286_s29 + $0x7c] sm:$0xf] %vm1423_vm3, %v1390_v50  ;;  %v1294_v52 = vadd.f32 %v2605_v10, %v1226_v51 }
 0x1ae   : > { %v1358_v54 = vmax.f32 %v1294_v52, 0.0 }
 0x1b0   : > { %v1422_v56 = vpack.c.bf16 %v1358_v54, %v1358_v54 }
 0x1b2   : > { %1487 = vst.msk [vmem:[%s2286_s29 + $0xfc] sm:$0xf] %vm1423_vm3, %v1422_v56 }
 0x1b3 PF: > { %s14_s17 = sadd.s32 1, %s2082_s17   ;;  %s2673_s15 = smov %s2078_s16 }
 0x1b4   : > { %p11_p5 = scmp.ge.s32.totalorder %s14_s17, 6   ;;  %s2674_s16 = smov %s2676_s18 }
 0x1b6   :  { %13 = sbr.rel (!%p11_p5) target bundleno = 2 (0x2), region = 75 }

// kernel: stem_forward.3
= control target key start
LH: loop header
LB: loop body
LE: loop exit
PB: predicated region body
PF: predicated region fallthrough
CT: control target
= control target key end

     0   :  { %vm1161_vm0 = vcmask 523264   ;;  %s6005_s0 = inlined_call_operand.vmem [shape: bf16[9,512,64], index: 0, kind: input, shape index: {}]   ;;  %s6006_s1 = inlined_call_operand.hbm [shape: bf16[512,64], index: 1, kind: output, shape index: {}]  }
   0x1   :  { %v2398_v0 = vld [vmem:[%s6005_s0] sm:$0xff]   ;;  %v3921_v35 = vld [vmem:[%s6005_s0 + $0x8] sm:$0xff]  }
   0x2   :  { %v3580_v1 = vld [vmem:[%s6005_s0 + $0x100] sm:$0xff]   ;;  %v2399_v3 = vunpack.c.l.bf16 %v2398_v0  ;;  %v2400_v19 = vunpack.c.h.bf16 %v2398_v0  ;;  %v3926_v36 = vld [vmem:[%s6005_s0 + $0x108] sm:$0xff]   ;;  %v2403_v49 = vunpack.c.l.bf16 %v3921_v35 }
   0x3   :  { %v3612_v2 = vld [vmem:[%s6005_s0 + $0x200] sm:$0xff]   ;;  %v2527_v4 = vunpack.c.l.bf16 %v3580_v1  ;;  %v2528_v20 = vunpack.c.h.bf16 %v3580_v1  ;;  %v3613_v41 = vld [vmem:[%s6005_s0 + $0x208] sm:$0xff]   ;;  %v2531_v50 = vunpack.c.l.bf16 %v3926_v36 }
   0x4   :  { %v2655_v5 = vunpack.c.l.bf16 %v3612_v2  ;;  %v3644_v6 = vld [vmem:[%s6005_s0 + $0x300] sm:$0xff]   ;;  %v1162_v16 = vsel %vm1161_vm0, %v2399_v3, -inf  ;;  %v2656_v25 = vunpack.c.h.bf16 %v3612_v2  ;;  %v1179_v32 = vsel %vm1161_vm0, %v2400_v19, -inf  ;;  %v3934_v42 = vld [vmem:[%s6005_s0 + $0x308] sm:$0xff]  }
   0x5   :  { %v3676_v7 = vld [vmem:[%s6005_s0 + $0x400] sm:$0xff]   ;;  %v2783_v9 = vunpack.c.l.bf16 %v3644_v6  ;;  %v1163_v17 = vsel %vm1161_vm0, %v2527_v4, -inf  ;;  %v2784_v26 = vunpack.c.h.bf16 %v3644_v6  ;;  %v1180_v33 = vsel %vm1161_vm0, %v2528_v20, -inf  ;;  %v3944_v51 = vld [vmem:[%s6005_s0 + $0x408] sm:$0xff]  }
   0x6   :  { %v3708_v8 = vld [vmem:[%s6005_s0 + $0x500] sm:$0xff]   ;;  %v2911_v12 = vunpack.c.l.bf16 %v3676_v7  ;;  %v1165_v18 = vsel %vm1161_vm0, %v2655_v5, -inf  ;;  %v1164_v22 = vmax.f32 %v1162_v16, %v1163_v17  ;;  %v2912_v31 = vunpack.c.h.bf16 %v3676_v7 }
   0x7   :  { %v3740_v10 = vld [vmem:[%s6005_s0 + $0x600] sm:$0xff]   ;;  %v3039_v13 = vunpack.c.l.bf16 %v3708_v8  ;;  %v1167_v24 = vsel %vm1161_vm0, %v2783_v9, -inf  ;;  %v1182_v34 = vsel %vm1161_vm0, %v2656_v25, -inf  ;;  %v3040_v38 = vunpack.c.h.bf16 %v3708_v8 }
   0x8   :  { %v3772_v11 = vld [vmem:[%s6005_s0 + $0x700] sm:$0xff]   ;;  %v3167_v14 = vunpack.c.l.bf16 %v3740_v10  ;;  %v1166_v27 = vmax.f32 %v1164_v22, %v1165_v18  ;;  %v1169_v28 = vsel %vm1161_vm0, %v2911_v12, -inf  ;;  %v3168_v39 = vunpack.c.h.bf16 %v3740_v10 }
   0x9   :  { %v3905_v15 = vld [vmem:[%s6005_s0 + $0x800] sm:$0xff]   ;;  %v3295_v21 = vunpack.c.l.bf16 %v3772_v11  ;;  %v1171_v29 = vsel %vm1161_vm0, %v3039_v13, -inf  ;;  %v1181_v40 = vmax.f32 %v1179_v32, %v1180_v33  ;;  %v3296_v45 = vunpack.c.h.bf16 %v3772_v11 }
   0xa   :  { %v3423_v23 = vunpack.c.l.bf16 %v3905_v15  ;;  %v1173_v30 = vsel %vm1161_vm0, %v3167_v14, -inf  ;;  %v1168_v37 = vmax.f32 %v1166_v27, %v1167_v24  ;;  %v1184_v46 = vsel %vm1161_vm0, %v2784_v26, -inf }
   0xb   :  { %v1175_v43 = vsel %vm1161_vm0, %v3295_v21, -inf  ;;  %v1183_v48 = vmax.f32 %v1181_v40, %v1182_v34 }
   0xc   :  { %v1177_v44 = vsel %vm1161_vm0, %v3423_v23, -inf  ;;  %v1170_v47 = vmax.f32 %v1168_v37, %v1169_v28 }
   0xd   :  { %6 = vsyncpa [#allocation3], 0  ;;  %vm2314_vm1 = vcmask 519168   ;;  %v3424_v52 = vunpack.c.h.bf16 %v3905_v15  ;;  %v1186_v53 = vsel %vm1161_vm0, %v2912_v31, -inf  ;;  %v2659_v54 = vunpack.c.l.bf16 %v3613_v41  ;;  %v3954_v60 = vld [vmem:[%s6005_s0 + $0x508] sm:$0xff]   ;;  %v3993_v32 = vld [vmem:[%s6005_s0 + $0x10] sm:$0xff]  }
   0xe   :  { %v2787_v55 = vunpack.c.l.bf16 %v3934_v42  ;;  %v1172_v56 = vmax.f32 %v1170_v47, %v1171_v29  ;;  %v1185_v57 = vmax.f32 %v1183_v48, %v1184_v46  ;;  %v1188_v58 = vsel %vm1161_vm0, %v3040_v38, -inf  ;;  %v3959_v61 = vld [vmem:[%s6005_s0 + $0x608] sm:$0xff]   ;;  %v3582_v37 = vld [vmem:[%s6005_s0 + $0x110] sm:$0xff]   ;;  %s2385_s5 = sshll.u32 %s6006_s1, 4  ;;  %s3866_s6 = smov 64   ;;  %s2386_s5 = int_to_ptr.hbm [resolvable:$true] %s2385_s5 }
   0xf   :  { %v1190_v59 = vsel %vm1161_vm0, %v3168_v39, -inf  ;;  %v3964_v62 = vld [vmem:[%s6005_s0 + $0x708] sm:$0xff]   ;;  %v2915_v63 = vunpack.c.l.bf16 %v3944_v51  ;;  %v1196_v0 = vsel %vm1161_vm0, %v2403_v49, -inf  ;;  %v1197_v1 = vsel %vm1161_vm0, %v2531_v50, -inf  ;;  %s3867_s7 = smov 4  }
  0x10   :  { %v1199_v2 = vsel %vm1161_vm0, %v2659_v54, -inf  ;;  %v1174_v3 = vmax.f32 %v1172_v56, %v1173_v30  ;;  %v1187_v4 = vmax.f32 %v1185_v57, %v1186_v53  ;;  %v1192_v5 = vsel %vm1161_vm0, %v3296_v45, -inf  ;;  %v3977_v10 = vld [vmem:[%s6005_s0 + $0x808] sm:$0xff]  }
  0x11   :  { %v1198_v6 = vmax.f32 %v1196_v0, %v1197_v1  ;;  %v3043_v7 = vunpack.c.l.bf16 %v3954_v60  ;;  %v3171_v8 = vunpack.c.l.bf16 %v3959_v61  ;;  %v3299_v9 = vunpack.c.l.bf16 %v3964_v62  ;;  %v4039_v0 = vld [vmem:[%s6005_s0 + $0x710] sm:$0xff]  }
  0x12   :  { %v1201_v11 = vsel %vm1161_vm0, %v2787_v55, -inf  ;;  %v1176_v12 = vmax.f32 %v1174_v3, %v1175_v43  ;;  %v1189_v13 = vmax.f32 %v1187_v4, %v1188_v58  ;;  %v1194_v14 = vsel %vm1161_vm0, %v3424_v52, -inf  ;;  %v4010_v43 = vld [vmem:[%s6005_s0 + $0x310] sm:$0xff]  }
  0x13   :  { %v1200_v15 = vmax.f32 %v1198_v6, %v1199_v2  ;;  %v1203_v16 = vsel %vm1161_vm0, %v2915_v63, -inf  ;;  %v2404_v17 = vunpack.c.h.bf16 %v3921_v35  ;;  %v2532_v18 = vunpack.c.h.bf16 %v3926_v36  ;;  %v4019_v52 = vld [vmem:[%s6005_s0 + $0x410] sm:$0xff]  }
  0x14   :  { %v2660_v19 = vunpack.c.h.bf16 %v3613_v41  ;;  %v1178_v20 = vmax.f32 %v1176_v12, %v1177_v44  ;;  %v1191_v21 = vmax.f32 %v1189_v13, %v1190_v59  ;;  %v3427_v22 = vunpack.c.l.bf16 %v3977_v10 }
  0x15   :  { %v1202_v23 = vmax.f32 %v1200_v15, %v1201_v11  ;;  %v1205_v24 = vsel %vm1161_vm0, %v3043_v7, -inf  ;;  %v1207_v25 = vsel %vm1161_vm0, %v3171_v8, -inf  ;;  %v1209_v26 = vsel %vm1161_vm0, %v3299_v9, -inf  ;;  %v3806_v11 = vld [vmem:[%s6005_s0 + $0x810] sm:$0xff]  }
  0x16   :  { %v2788_v27 = vunpack.c.h.bf16 %v3934_v42  ;;  %v2250_v28 = vpack.c.bf16 %v1178_v20, %v1178_v20  ;;  %v1193_v29 = vmax.f32 %v1191_v21, %v1192_v5  ;;  %v1213_v31 = vsel %vm1161_vm0, %v2404_v17, -inf  ;;  %v3614_v42 = vld [vmem:[%s6005_s0 + $0x210] sm:$0xff]  }
  0x17   :  { %v1204_v30 = vmax.f32 %v1202_v23, %v1203_v16  ;;  %v2916_v33 = vunpack.c.h.bf16 %v3944_v51  ;;  %v3044_v34 = vunpack.c.h.bf16 %v3954_v60  ;;  %v1214_v35 = vsel %vm1161_vm0, %v2532_v18, -inf }
  0x18   :  { %v1216_v36 = vsel %vm1161_vm0, %v2660_v19, -inf  ;;  %2315 = vst.msk [vmem:[#allocation2] sm:$0xf] %vm2314_vm1, %v2250_v28  ;;  %v1195_v38 = vmax.f32 %v1193_v29, %v1194_v14  ;;  %v3172_v40 = vunpack.c.h.bf16 %v3959_v61  ;;  %v1215_v41 = vmax.f32 %v1213_v31, %v1214_v35  ;;  %v3710_v61 = vld [vmem:[%s6005_s0 + $0x510] sm:$0xff]  }
  0x19   :  { %v1206_v39 = vmax.f32 %v1204_v30, %v1205_v24  ;;  %v1211_v44 = vsel %vm1161_vm0, %v3427_v22, -inf  ;;  %v3300_v45 = vunpack.c.h.bf16 %v3964_v62  ;;  %v1218_v46 = vsel %vm1161_vm0, %v2788_v27, -inf  ;;  %v4033_v62 = vld [vmem:[%s6005_s0 + $0x610] sm:$0xff]  }
  0x1a   :  { %v2407_v47 = vunpack.c.l.bf16 %v3993_v32  ;;  %v2251_v48 = vpack.c.bf16 %v1195_v38, %v1195_v38  ;;  %v1217_v50 = vmax.f32 %v1215_v41, %v1216_v36  ;;  %v2535_v51 = vunpack.c.l.bf16 %v3582_v37 }
  0x1b   :  { %v1208_v49 = vmax.f32 %v1206_v39, %v1207_v25  ;;  %v3428_v53 = vunpack.c.h.bf16 %v3977_v10  ;;  %v1220_v54 = vsel %vm1161_vm0, %v2916_v33, -inf  ;;  %v2663_v55 = vunpack.c.l.bf16 %v3614_v42  ;;  %v3551_v33 = vld [vmem:[%s6005_s0 + $0x18] sm:$0xff]  }
  0x1c   :  { %v2791_v56 = vunpack.c.l.bf16 %v4010_v43  ;;  %2316 = vst.msk [vmem:[#allocation2 + $0x4] sm:$0xf] %vm2314_vm1, %v2251_v48  ;;  %v1219_v58 = vmax.f32 %v1217_v50, %v1218_v46  ;;  %v1222_v59 = vsel %vm1161_vm0, %v3044_v34, -inf  ;;  %v1224_v60 = vsel %vm1161_vm0, %v3172_v40, -inf  ;;  %v3583_v34 = vld [vmem:[%s6005_s0 + $0x118] sm:$0xff]  }
  0x1d   :  { %v1210_v57 = vmax.f32 %v1208_v49, %v1209_v26  ;;  %v2919_v63 = vunpack.c.l.bf16 %v4019_v52  ;;  %v1230_v1 = vsel %vm1161_vm0, %v2407_v47, -inf  ;;  %v1231_v2 = vsel %vm1161_vm0, %v2535_v51, -inf  ;;  %v3615_v39 = vld [vmem:[%s6005_s0 + $0x218] sm:$0xff]  }
  0x1e   :  { %v1233_v3 = vsel %vm1161_vm0, %v2663_v55, -inf  ;;  %v1221_v5 = vmax.f32 %v1219_v58, %v1220_v54  ;;  %v1226_v6 = vsel %vm1161_vm0, %v3300_v45, -inf  ;;  %v1232_v7 = vmax.f32 %v1230_v1, %v1231_v2  ;;  %v4090_v58 = vld [vmem:[%s6005_s0 + $0x518] sm:$0xff]  }
  0x1f   :  { %v1212_v4 = vmax.f32 %v1210_v57, %v1211_v44  ;;  %v1228_v8 = vsel %vm1161_vm0, %v3428_v53, -inf  ;;  %v3047_v9 = vunpack.c.l.bf16 %v3710_v61  ;;  %v3175_v10 = vunpack.c.l.bf16 %v4033_v62  ;;  %v4078_v44 = vld [vmem:[%s6005_s0 + $0x318] sm:$0xff]  }
  0x20   :  { %v1235_v12 = vsel %vm1161_vm0, %v2791_v56, -inf  ;;  %v1223_v14 = vmax.f32 %v1221_v5, %v1222_v59  ;;  %v3303_v15 = vunpack.c.l.bf16 %v4039_v0  ;;  %v1234_v16 = vmax.f32 %v1232_v7, %v1233_v3  ;;  %v3679_v53 = vld [vmem:[%s6005_s0 + $0x418] sm:$0xff]  }
  0x21   :  { %v2252_v13 = vpack.c.bf16 %v1212_v4, %v1212_v4  ;;  %v1237_v17 = vsel %vm1161_vm0, %v2919_v63, -inf  ;;  %v2408_v18 = vunpack.c.h.bf16 %v3993_v32  ;;  %v2536_v19 = vunpack.c.h.bf16 %v3582_v37  ;;  %v4095_v59 = vld [vmem:[%s6005_s0 + $0x618] sm:$0xff]  }
  0x22   :  { %v2664_v20 = vunpack.c.h.bf16 %v3614_v42  ;;  %v1225_v21 = vmax.f32 %v1223_v14, %v1224_v60  ;;  %v3431_v22 = vunpack.c.l.bf16 %v3806_v11  ;;  %v1236_v23 = vmax.f32 %v1234_v16, %v1235_v12  ;;  %v4103_v63 = vld [vmem:[%s6005_s0 + $0x718] sm:$0xff]  }
  0x23   :  { %2317 = vst.msk [vmem:[#allocation2 + $0x8] sm:$0xf] %vm2314_vm1, %v2252_v13  ;;  %v2792_v24 = vunpack.c.h.bf16 %v4010_v43  ;;  %v1239_v25 = vsel %vm1161_vm0, %v3047_v9, -inf  ;;  %v1241_v26 = vsel %vm1161_vm0, %v3175_v10, -inf  ;;  %v2920_v27 = vunpack.c.h.bf16 %v4019_v52  ;;  %v4115_v12 = vld [vmem:[%s6005_s0 + $0x818] sm:$0xff]  }
  0x24   :  { %v1247_v28 = vsel %vm1161_vm0, %v2408_v18, -inf  ;;  %v1227_v29 = vmax.f32 %v1225_v21, %v1226_v6  ;;  %v1238_v30 = vmax.f32 %v1236_v23, %v1237_v17  ;;  %v1248_v31 = vsel %vm1161_vm0, %v2536_v19, -inf }
  0x25   :  { %v1250_v32 = vsel %vm1161_vm0, %v2664_v20, -inf  ;;  %v1243_v35 = vsel %vm1161_vm0, %v3303_v15, -inf  ;;  %v3048_v36 = vunpack.c.h.bf16 %v3710_v61  ;;  %v3176_v37 = vunpack.c.h.bf16 %v4033_v62 }
  0x26   :  { %v1249_v38 = vmax.f32 %v1247_v28, %v1248_v31  ;;  %v1229_v40 = vmax.f32 %v1227_v29, %v1228_v8  ;;  %v1240_v41 = vmax.f32 %v1238_v30, %v1239_v25  ;;  %v3304_v42 = vunpack.c.h.bf16 %v4039_v0 }
  0x27   :  { %v1252_v43 = vsel %vm1161_vm0, %v2792_v24, -inf  ;;  %v3432_v45 = vunpack.c.h.bf16 %v3806_v11  ;;  %v2411_v47 = vunpack.c.l.bf16 %v3551_v33  ;;  %v2539_v48 = vunpack.c.l.bf16 %v3583_v34 }
  0x28   :  { %v1251_v46 = vmax.f32 %v1249_v38, %v1250_v32  ;;  %v2253_v49 = vpack.c.bf16 %v1229_v40, %v1229_v40  ;;  %v1242_v50 = vmax.f32 %v1240_v41, %v1241_v26  ;;  %v1254_v51 = vsel %vm1161_vm0, %v2920_v27, -inf  ;;  %v4143_v41 = vld [vmem:[%s6005_s0 + $0x320] sm:$0xff]  }
  0x29   :  { %v2667_v52 = vunpack.c.l.bf16 %v3615_v39  ;;  %v1245_v54 = vsel %vm1161_vm0, %v3431_v22, -inf  ;;  %v1256_v56 = vsel %vm1161_vm0, %v3048_v36, -inf  ;;  %v2795_v57 = vunpack.c.l.bf16 %v4078_v44  ;;  %v3616_v36 = vld [vmem:[%s6005_s0 + $0x220] sm:$0xff]  }
  0x2a   :  { %v1253_v55 = vmax.f32 %v1251_v46, %v1252_v43  ;;  %2318 = vst.msk [vmem:[#allocation2 + $0xc] sm:$0xf] %vm2314_vm1, %v2253_v49  ;;  %v1244_v60 = vmax.f32 %v1242_v50, %v1243_v35  ;;  %v1258_v61 = vsel %vm1161_vm0, %v3176_v37, -inf  ;;  %v1260_v62 = vsel %vm1161_vm0, %v3304_v42, -inf  ;;  %v3584_v35 = vld [vmem:[%s6005_s0 + $0x120] sm:$0xff]  }
  0x2b   :  { %v1264_v0 = vsel %vm1161_vm0, %v2411_v47, -inf  ;;  %v2923_v2 = vunpack.c.l.bf16 %v3679_v53  ;;  %v1265_v3 = vsel %vm1161_vm0, %v2539_v48, -inf  ;;  %v1267_v4 = vsel %vm1161_vm0, %v2667_v52, -inf  ;;  %v4150_v46 = vld [vmem:[%s6005_s0 + $0x420] sm:$0xff]  }
  0x2c   :  { %v1255_v1 = vmax.f32 %v1253_v55, %v1254_v51  ;;  %v1246_v5 = vmax.f32 %v1244_v60, %v1245_v54  ;;  %v1262_v6 = vsel %vm1161_vm0, %v3432_v45, -inf  ;;  %v3051_v7 = vunpack.c.l.bf16 %v4090_v58  ;;  %v4157_v55 = vld [vmem:[%s6005_s0 + $0x520] sm:$0xff]  }
  0x2d   :  { %v1266_v8 = vmax.f32 %v1264_v0, %v1265_v3  ;;  %v3179_v10 = vunpack.c.l.bf16 %v4095_v59  ;;  %v3307_v11 = vunpack.c.l.bf16 %v4103_v63  ;;  %v1269_v13 = vsel %vm1161_vm0, %v2795_v57, -inf  ;;  %v4167_v60 = vld [vmem:[%s6005_s0 + $0x620] sm:$0xff]  }
  0x2e   :  { %v1257_v9 = vmax.f32 %v1255_v1, %v1256_v56  ;;  %v2254_v14 = vpack.c.bf16 %v1246_v5, %v1246_v5  ;;  %v2412_v16 = vunpack.c.h.bf16 %v3551_v33  ;;  %v2540_v17 = vunpack.c.h.bf16 %v3583_v34  ;;  %v3552_v34 = vld [vmem:[%s6005_s0 + $0x20] sm:$0xff]  }
  0x2f   :  { %v1268_v15 = vmax.f32 %v1266_v8, %v1267_v4  ;;  %v1271_v19 = vsel %vm1161_vm0, %v2923_v2, -inf  ;;  %v2668_v20 = vunpack.c.h.bf16 %v3615_v39  ;;  %v2796_v21 = vunpack.c.h.bf16 %v4078_v44 }
  0x30   :  { %v1259_v18 = vmax.f32 %v1257_v9, %v1258_v61  ;;  %2319 = vst.msk [vmem:[#allocation2 + $0x10] sm:$0xf] %vm2314_vm1, %v2254_v14  ;;  %v3435_v22 = vunpack.c.l.bf16 %v4115_v12  ;;  %v1273_v24 = vsel %vm1161_vm0, %v3051_v7, -inf  ;;  %v2924_v25 = vunpack.c.h.bf16 %v3679_v53  ;;  %v3808_v9 = vld [vmem:[%s6005_s0 + $0x820] sm:$0xff]  }
  0x31   :  { %v1270_v23 = vmax.f32 %v1268_v15, %v1269_v13  ;;  %v1275_v27 = vsel %vm1161_vm0, %v3179_v10, -inf  ;;  %v1281_v28 = vsel %vm1161_vm0, %v2412_v16, -inf  ;;  %v1282_v29 = vsel %vm1161_vm0, %v2540_v17, -inf }
  0x32   :  { %v1261_v26 = vmax.f32 %v1259_v18, %v1260_v62  ;;  %v1277_v31 = vsel %vm1161_vm0, %v3307_v11, -inf  ;;  %v1283_v32 = vmax.f32 %v1281_v28, %v1282_v29  ;;  %v1284_v33 = vsel %vm1161_vm0, %v2668_v20, -inf }
  0x33   :  { %v1272_v30 = vmax.f32 %v1270_v23, %v1271_v19  ;;  %v3052_v38 = vunpack.c.h.bf16 %v4090_v58  ;;  %v3180_v39 = vunpack.c.h.bf16 %v4095_v59  ;;  %v1286_v40 = vsel %vm1161_vm0, %v2796_v21, -inf }
  0x34   :  { %v1263_v37 = vmax.f32 %v1261_v26, %v1262_v6  ;;  %v3308_v43 = vunpack.c.h.bf16 %v4103_v63  ;;  %v1285_v44 = vmax.f32 %v1283_v32, %v1284_v33  ;;  %v1288_v45 = vsel %vm1161_vm0, %v2924_v25, -inf  ;;  %v4172_v63 = vld [vmem:[%s6005_s0 + $0x720] sm:$0xff]  }
  0x35   :  { %v1274_v42 = vmax.f32 %v1272_v30, %v1273_v24  ;;  %v2415_v48 = vunpack.c.l.bf16 %v3552_v34  ;;  %v2543_v49 = vunpack.c.l.bf16 %v3584_v35  ;;  %v2671_v50 = vunpack.c.l.bf16 %v3616_v36 }
  0x36   :  { %v2255_v47 = vpack.c.bf16 %v1263_v37, %v1263_v37  ;;  %v1279_v52 = vsel %vm1161_vm0, %v3435_v22, -inf  ;;  %v1287_v53 = vmax.f32 %v1285_v44, %v1286_v40  ;;  %v2799_v54 = vunpack.c.l.bf16 %v4143_v41  ;;  %v3617_v37 = vld [vmem:[%s6005_s0 + $0x228] sm:$0xff]  }
  0x37   :  { %v1276_v51 = vmax.f32 %v1274_v42, %v1275_v27  ;;  %v3436_v56 = vunpack.c.h.bf16 %v4115_v12  ;;  %v1290_v57 = vsel %vm1161_vm0, %v3052_v38, -inf  ;;  %v1292_v58 = vsel %vm1161_vm0, %v3180_v39, -inf  ;;  %v4212_v42 = vld [vmem:[%s6005_s0 + $0x328] sm:$0xff]  }
  0x38   :  { %2320 = vst.msk [vmem:[#allocation2 + $0x14] sm:$0xf] %vm2314_vm1, %v2255_v47  ;;  %v2927_v59 = vunpack.c.l.bf16 %v4150_v46  ;;  %v1289_v62 = vmax.f32 %v1287_v53, %v1288_v45  ;;  %v1298_v0 = vsel %vm1161_vm0, %v2415_v48, -inf  ;;  %v1299_v1 = vsel %vm1161_vm0, %v2543_v49, -inf }
  0x39   :  { %v1278_v61 = vmax.f32 %v1276_v51, %v1277_v31  ;;  %v1294_v2 = vsel %vm1161_vm0, %v3308_v43, -inf  ;;  %v3055_v3 = vunpack.c.l.bf16 %v4157_v55  ;;  %v1300_v4 = vmax.f32 %v1298_v0, %v1299_v1  ;;  %v3553_v31 = vld [vmem:[%s6005_s0 + $0x28] sm:$0xff]  }
  0x3a   :  { %v1301_v5 = vsel %vm1161_vm0, %v2671_v50, -inf  ;;  %v1291_v7 = vmax.f32 %v1289_v62, %v1290_v57  ;;  %v3183_v8 = vunpack.c.l.bf16 %v4167_v60  ;;  %v1303_v10 = vsel %vm1161_vm0, %v2799_v54, -inf  ;;  %v3681_v51 = vld [vmem:[%s6005_s0 + $0x428] sm:$0xff]  }
  0x3b   :  { %v1280_v6 = vmax.f32 %v1278_v61, %v1279_v52  ;;  %v3311_v11 = vunpack.c.l.bf16 %v4172_v63  ;;  %v1302_v12 = vmax.f32 %v1300_v4, %v1301_v5  ;;  %v1305_v13 = vsel %vm1161_vm0, %v2927_v59, -inf  ;;  %v4237_v61 = vld [vmem:[%s6005_s0 + $0x728] sm:$0xff]  }
  0x3c   :  { %v2416_v14 = vunpack.c.h.bf16 %v3552_v34  ;;  %v1293_v16 = vmax.f32 %v1291_v7, %v1292_v58  ;;  %v2544_v17 = vunpack.c.h.bf16 %v3584_v35  ;;  %v2672_v18 = vunpack.c.h.bf16 %v3616_v36  ;;  %v3585_v36 = vld [vmem:[%s6005_s0 + $0x128] sm:$0xff]  }
  0x3d   :  { %v2256_v15 = vpack.c.bf16 %v1280_v6, %v1280_v6  ;;  %v1296_v19 = vsel %vm1161_vm0, %v3436_v56, -inf  ;;  %v3439_v20 = vunpack.c.l.bf16 %v3808_v9  ;;  %v1304_v21 = vmax.f32 %v1302_v12, %v1303_v10  ;;  %v4225_v56 = vld [vmem:[%s6005_s0 + $0x528] sm:$0xff]  }
  0x3e   :  { %v2800_v22 = vunpack.c.h.bf16 %v4143_v41  ;;  %v1295_v23 = vmax.f32 %v1293_v16, %v1294_v2  ;;  %v1307_v24 = vsel %vm1161_vm0, %v3055_v3, -inf  ;;  %v1309_v25 = vsel %vm1161_vm0, %v3183_v8, -inf  ;;  %v4249_v10 = vld [vmem:[%s6005_s0 + $0x828] sm:$0xff]  }
  0x3f   :  { %2321 = vst.msk [vmem:[#allocation2 + $0x18] sm:$0xf] %vm2314_vm1, %v2256_v15  ;;  %v2928_v26 = vunpack.c.h.bf16 %v4150_v46  ;;  %v1306_v27 = vmax.f32 %v1304_v21, %v1305_v13  ;;  %v1315_v28 = vsel %vm1161_vm0, %v2416_v14, -inf  ;;  %v1316_v29 = vsel %vm1161_vm0, %v2544_v17, -inf }
  0x40   :  { %v1318_v30 = vsel %vm1161_vm0, %v2672_v18, -inf  ;;  %v1297_v32 = vmax.f32 %v1295_v23, %v1296_v19  ;;  %v1311_v33 = vsel %vm1161_vm0, %v3311_v11, -inf  ;;  %v3056_v34 = vunpack.c.h.bf16 %v4157_v55 }
  0x41   :  { %v1317_v35 = vmax.f32 %v1315_v28, %v1316_v29  ;;  %v1308_v38 = vmax.f32 %v1306_v27, %v1307_v24  ;;  %v3184_v39 = vunpack.c.h.bf16 %v4167_v60  ;;  %v3312_v40 = vunpack.c.h.bf16 %v4172_v63  ;;  %v4232_v60 = vld [vmem:[%s6005_s0 + $0x628] sm:$0xff]  }
  0x42   :  { %v1320_v41 = vsel %vm1161_vm0, %v2800_v22, -inf  ;;  %v2257_v43 = vpack.c.bf16 %v1297_v32, %v1297_v32  ;;  %v3440_v44 = vunpack.c.h.bf16 %v3808_v9  ;;  %v2419_v46 = vunpack.c.l.bf16 %v3553_v31  ;;  %v3554_v32 = vld [vmem:[%s6005_s0 + $0x30] sm:$0xff]  }
  0x43   :  { %v1319_v45 = vmax.f32 %v1317_v35, %v1318_v30  ;;  %v1310_v47 = vmax.f32 %v1308_v38, %v1309_v25  ;;  %v1322_v48 = vsel %vm1161_vm0, %v2928_v26, -inf  ;;  %v2547_v49 = vunpack.c.l.bf16 %v3585_v36 }
  0x44   :  { %v2675_v50 = vunpack.c.l.bf16 %v3617_v37  ;;  %2322 = vst.msk [vmem:[#allocation2 + $0x1c] sm:$0xf] %vm2314_vm1, %v2257_v43  ;;  %v1313_v52 = vsel %vm1161_vm0, %v3439_v20, -inf  ;;  %v1324_v54 = vsel %vm1161_vm0, %v3056_v34, -inf  ;;  %v2803_v55 = vunpack.c.l.bf16 %v4212_v42  ;;  %v3618_v34 = vld [vmem:[%s6005_s0 + $0x230] sm:$0xff]  }
  0x45   :  { %v1321_v53 = vmax.f32 %v1319_v45, %v1320_v41  ;;  %v1312_v57 = vmax.f32 %v1310_v47, %v1311_v33  ;;  %v1326_v58 = vsel %vm1161_vm0, %v3184_v39, -inf  ;;  %v1328_v59 = vsel %vm1161_vm0, %v3312_v40, -inf  ;;  %v3586_v33 = vld [vmem:[%s6005_s0 + $0x130] sm:$0xff]  }
  0x46   :  { %v1332_v62 = vsel %vm1161_vm0, %v2419_v46, -inf  ;;  %v2931_v0 = vunpack.c.l.bf16 %v3681_v51  ;;  %v1333_v1 = vsel %vm1161_vm0, %v2547_v49, -inf  ;;  %v1335_v2 = vsel %vm1161_vm0, %v2675_v50, -inf  ;;  %v4277_v39 = vld [vmem:[%s6005_s0 + $0x330] sm:$0xff]  }
  0x47   :  { %v1323_v63 = vmax.f32 %v1321_v53, %v1322_v48  ;;  %v1314_v3 = vmax.f32 %v1312_v57, %v1313_v52  ;;  %v1330_v4 = vsel %vm1161_vm0, %v3440_v44, -inf  ;;  %v3059_v5 = vunpack.c.l.bf16 %v4225_v56  ;;  %v4284_v44 = vld [vmem:[%s6005_s0 + $0x430] sm:$0xff]  }
  0x48   :  { %v1334_v6 = vmax.f32 %v1332_v62, %v1333_v1  ;;  %v3187_v8 = vunpack.c.l.bf16 %v4232_v60  ;;  %v3315_v9 = vunpack.c.l.bf16 %v4237_v61  ;;  %v1337_v11 = vsel %vm1161_vm0, %v2803_v55, -inf  ;;  %v4291_v53 = vld [vmem:[%s6005_s0 + $0x530] sm:$0xff]  }
  0x49   :  { %v1325_v7 = vmax.f32 %v1323_v63, %v1324_v54  ;;  %v2258_v12 = vpack.c.bf16 %v1314_v3, %v1314_v3  ;;  %v2420_v14 = vunpack.c.h.bf16 %v3553_v31  ;;  %v2548_v15 = vunpack.c.h.bf16 %v3585_v36 }
  0x4a   :  { %v1336_v13 = vmax.f32 %v1334_v6, %v1335_v2  ;;  %v1339_v17 = vsel %vm1161_vm0, %v2931_v0, -inf  ;;  %v2676_v18 = vunpack.c.h.bf16 %v3617_v37  ;;  %v2804_v19 = vunpack.c.h.bf16 %v4212_v42 }
  0x4b   :  { %v1327_v16 = vmax.f32 %v1325_v7, %v1326_v58  ;;  %2323 = vst.msk [vmem:[#allocation2 + $0x20] sm:$0xf] %vm2314_vm1, %v2258_v12  ;;  %v3443_v20 = vunpack.c.l.bf16 %v4249_v10  ;;  %v1341_v22 = vsel %vm1161_vm0, %v3059_v5, -inf  ;;  %v2932_v23 = vunpack.c.h.bf16 %v3681_v51  ;;  %v4301_v58 = vld [vmem:[%s6005_s0 + $0x630] sm:$0xff]  }
  0x4c   :  { %v1338_v21 = vmax.f32 %v1336_v13, %v1337_v11  ;;  %v1343_v25 = vsel %vm1161_vm0, %v3187_v8, -inf  ;;  %v1349_v26 = vsel %vm1161_vm0, %v2420_v14, -inf  ;;  %v1350_v27 = vsel %vm1161_vm0, %v2548_v15, -inf  ;;  %v3810_v7 = vld [vmem:[%s6005_s0 + $0x830] sm:$0xff]  }
  0x4d   :  { %v1329_v24 = vmax.f32 %v1327_v16, %v1328_v59  ;;  %v1345_v29 = vsel %vm1161_vm0, %v3315_v9, -inf  ;;  %v1351_v30 = vmax.f32 %v1349_v26, %v1350_v27  ;;  %v1352_v31 = vsel %vm1161_vm0, %v2676_v18, -inf }
  0x4e   :  { %v1340_v28 = vmax.f32 %v1338_v21, %v1339_v17  ;;  %v3060_v36 = vunpack.c.h.bf16 %v4225_v56  ;;  %v3188_v37 = vunpack.c.h.bf16 %v4232_v60  ;;  %v1354_v38 = vsel %vm1161_vm0, %v2804_v19, -inf }
  0x4f   :  { %v1331_v35 = vmax.f32 %v1329_v24, %v1330_v4  ;;  %v3316_v41 = vunpack.c.h.bf16 %v4237_v61  ;;  %v1353_v42 = vmax.f32 %v1351_v30, %v1352_v31  ;;  %v1356_v43 = vsel %vm1161_vm0, %v2932_v23, -inf  ;;  %v4306_v61 = vld [vmem:[%s6005_s0 + $0x730] sm:$0xff]  }
  0x50   :  { %v1342_v40 = vmax.f32 %v1340_v28, %v1341_v22  ;;  %v2423_v46 = vunpack.c.l.bf16 %v3554_v32  ;;  %v2551_v47 = vunpack.c.l.bf16 %v3586_v33  ;;  %v2679_v48 = vunpack.c.l.bf16 %v3618_v34 }
  0x51   :  { %v2259_v45 = vpack.c.bf16 %v1331_v35, %v1331_v35  ;;  %v1347_v50 = vsel %vm1161_vm0, %v3443_v20, -inf  ;;  %v1355_v51 = vmax.f32 %v1353_v42, %v1354_v38  ;;  %v2807_v52 = vunpack.c.l.bf16 %v4277_v39  ;;  %v3619_v35 = vld [vmem:[%s6005_s0 + $0x238] sm:$0xff]  }
  0x52   :  { %v1344_v49 = vmax.f32 %v1342_v40, %v1343_v25  ;;  %v3444_v54 = vunpack.c.h.bf16 %v4249_v10  ;;  %v1358_v55 = vsel %vm1161_vm0, %v3060_v36, -inf  ;;  %v1360_v56 = vsel %vm1161_vm0, %v3188_v37, -inf  ;;  %v4346_v40 = vld [vmem:[%s6005_s0 + $0x338] sm:$0xff]  }
  0x53   :  { %2324 = vst.msk [vmem:[#allocation2 + $0x24] sm:$0xf] %vm2314_vm1, %v2259_v45  ;;  %v2935_v57 = vunpack.c.l.bf16 %v4284_v44  ;;  %v1357_v60 = vmax.f32 %v1355_v51, %v1356_v43  ;;  %v1366_v62 = vsel %vm1161_vm0, %v2423_v46, -inf  ;;  %v1367_v63 = vsel %vm1161_vm0, %v2551_v47, -inf }
  0x54   :  { %v1346_v59 = vmax.f32 %v1344_v49, %v1345_v29  ;;  %v1362_v0 = vsel %vm1161_vm0, %v3316_v41, -inf  ;;  %v3063_v1 = vunpack.c.l.bf16 %v4291_v53  ;;  %v1368_v2 = vmax.f32 %v1366_v62, %v1367_v63  ;;  %v3555_v29 = vld [vmem:[%s6005_s0 + $0x38] sm:$0xff]  }
  0x55   :  { %v1369_v3 = vsel %vm1161_vm0, %v2679_v48, -inf  ;;  %v1359_v5 = vmax.f32 %v1357_v60, %v1358_v55  ;;  %v3191_v6 = vunpack.c.l.bf16 %v4301_v58  ;;  %v1371_v8 = vsel %vm1161_vm0, %v2807_v52, -inf  ;;  %v3683_v49 = vld [vmem:[%s6005_s0 + $0x438] sm:$0xff]  }
  0x56   :  { %v1348_v4 = vmax.f32 %v1346_v59, %v1347_v50  ;;  %v3319_v9 = vunpack.c.l.bf16 %v4306_v61  ;;  %v1370_v10 = vmax.f32 %v1368_v2, %v1369_v3  ;;  %v1373_v11 = vsel %vm1161_vm0, %v2935_v57, -inf  ;;  %v4371_v59 = vld [vmem:[%s6005_s0 + $0x738] sm:$0xff]  }
  0x57   :  { %v2424_v12 = vunpack.c.h.bf16 %v3554_v32  ;;  %v1361_v14 = vmax.f32 %v1359_v5, %v1360_v56  ;;  %v2552_v15 = vunpack.c.h.bf16 %v3586_v33  ;;  %v2680_v16 = vunpack.c.h.bf16 %v3618_v34  ;;  %v3587_v34 = vld [vmem:[%s6005_s0 + $0x138] sm:$0xff]  }
  0x58   :  { %v2260_v13 = vpack.c.bf16 %v1348_v4, %v1348_v4  ;;  %v1364_v17 = vsel %vm1161_vm0, %v3444_v54, -inf  ;;  %v3447_v18 = vunpack.c.l.bf16 %v3810_v7  ;;  %v1372_v19 = vmax.f32 %v1370_v10, %v1371_v8  ;;  %v4359_v54 = vld [vmem:[%s6005_s0 + $0x538] sm:$0xff]  }
  0x59   :  { %v2808_v20 = vunpack.c.h.bf16 %v4277_v39  ;;  %v1363_v21 = vmax.f32 %v1361_v14, %v1362_v0  ;;  %v1375_v22 = vsel %vm1161_vm0, %v3063_v1, -inf  ;;  %v1377_v23 = vsel %vm1161_vm0, %v3191_v6, -inf  ;;  %v4383_v8 = vld [vmem:[%s6005_s0 + $0x838] sm:$0xff]  }
  0x5a   :  { %2325 = vst.msk [vmem:[#allocation2 + $0x28] sm:$0xf] %vm2314_vm1, %v2260_v13  ;;  %v2936_v24 = vunpack.c.h.bf16 %v4284_v44  ;;  %v1374_v25 = vmax.f32 %v1372_v19, %v1373_v11  ;;  %v1383_v26 = vsel %vm1161_vm0, %v2424_v12, -inf  ;;  %v1384_v27 = vsel %vm1161_vm0, %v2552_v15, -inf }
  0x5b   :  { %v1386_v28 = vsel %vm1161_vm0, %v2680_v16, -inf  ;;  %v1365_v30 = vmax.f32 %v1363_v21, %v1364_v17  ;;  %v1379_v31 = vsel %vm1161_vm0, %v3319_v9, -inf  ;;  %v3064_v32 = vunpack.c.h.bf16 %v4291_v53 }
  0x5c   :  { %v1385_v33 = vmax.f32 %v1383_v26, %v1384_v27  ;;  %v1376_v36 = vmax.f32 %v1374_v25, %v1375_v22  ;;  %v3192_v37 = vunpack.c.h.bf16 %v4301_v58  ;;  %v3320_v38 = vunpack.c.h.bf16 %v4306_v61  ;;  %v4366_v58 = vld [vmem:[%s6005_s0 + $0x638] sm:$0xff]  }
  0x5d   :  { %v1388_v39 = vsel %vm1161_vm0, %v2808_v20, -inf  ;;  %v2261_v41 = vpack.c.bf16 %v1365_v30, %v1365_v30  ;;  %v3448_v42 = vunpack.c.h.bf16 %v3810_v7  ;;  %v2427_v44 = vunpack.c.l.bf16 %v3555_v29  ;;  %v3556_v30 = vld [vmem:[%s6005_s0 + $0x40] sm:$0xff]  }
  0x5e   :  { %v1387_v43 = vmax.f32 %v1385_v33, %v1386_v28  ;;  %v1378_v45 = vmax.f32 %v1376_v36, %v1377_v23  ;;  %v1390_v46 = vsel %vm1161_vm0, %v2936_v24, -inf  ;;  %v2555_v47 = vunpack.c.l.bf16 %v3587_v34 }
  0x5f   :  { %v2683_v48 = vunpack.c.l.bf16 %v3619_v35  ;;  %2326 = vst.msk [vmem:[#allocation2 + $0x2c] sm:$0xf] %vm2314_vm1, %v2261_v41  ;;  %v1381_v50 = vsel %vm1161_vm0, %v3447_v18, -inf  ;;  %v1392_v52 = vsel %vm1161_vm0, %v3064_v32, -inf  ;;  %v2811_v53 = vunpack.c.l.bf16 %v4346_v40  ;;  %v3620_v32 = vld [vmem:[%s6005_s0 + $0x240] sm:$0xff]  }
  0x60   :  { %v1389_v51 = vmax.f32 %v1387_v43, %v1388_v39  ;;  %v1380_v55 = vmax.f32 %v1378_v45, %v1379_v31  ;;  %v1394_v56 = vsel %vm1161_vm0, %v3192_v37, -inf  ;;  %v1396_v57 = vsel %vm1161_vm0, %v3320_v38, -inf  ;;  %v3588_v31 = vld [vmem:[%s6005_s0 + $0x140] sm:$0xff]  }
  0x61   :  { %v1400_v60 = vsel %vm1161_vm0, %v2427_v44, -inf  ;;  %v2939_v62 = vunpack.c.l.bf16 %v3683_v49  ;;  %v1401_v63 = vsel %vm1161_vm0, %v2555_v47, -inf  ;;  %v1403_v0 = vsel %vm1161_vm0, %v2683_v48, -inf  ;;  %v4411_v37 = vld [vmem:[%s6005_s0 + $0x340] sm:$0xff]  }
  0x62   :  { %v1391_v61 = vmax.f32 %v1389_v51, %v1390_v46  ;;  %v1382_v1 = vmax.f32 %v1380_v55, %v1381_v50  ;;  %v1398_v2 = vsel %vm1161_vm0, %v3448_v42, -inf  ;;  %v3067_v3 = vunpack.c.l.bf16 %v4359_v54  ;;  %v4418_v42 = vld [vmem:[%s6005_s0 + $0x440] sm:$0xff]  }
  0x63   :  { %v1402_v4 = vmax.f32 %v1400_v60, %v1401_v63  ;;  %v3195_v6 = vunpack.c.l.bf16 %v4366_v58  ;;  %v3323_v7 = vunpack.c.l.bf16 %v4371_v59  ;;  %v1405_v9 = vsel %vm1161_vm0, %v2811_v53, -inf  ;;  %v4425_v51 = vld [vmem:[%s6005_s0 + $0x540] sm:$0xff]  }
  0x64   :  { %v1393_v5 = vmax.f32 %v1391_v61, %v1392_v52  ;;  %v2262_v10 = vpack.c.bf16 %v1382_v1, %v1382_v1  ;;  %v2428_v12 = vunpack.c.h.bf16 %v3555_v29  ;;  %v2556_v13 = vunpack.c.h.bf16 %v3587_v34 }
  0x65   :  { %v1404_v11 = vmax.f32 %v1402_v4, %v1403_v0  ;;  %v1407_v15 = vsel %vm1161_vm0, %v2939_v62, -inf  ;;  %v2684_v16 = vunpack.c.h.bf16 %v3619_v35  ;;  %v2812_v17 = vunpack.c.h.bf16 %v4346_v40 }
  0x66   :  { %v1395_v14 = vmax.f32 %v1393_v5, %v1394_v56  ;;  %2327 = vst.msk [vmem:[#allocation2 + $0x30] sm:$0xf] %vm2314_vm1, %v2262_v10  ;;  %v3451_v18 = vunpack.c.l.bf16 %v4383_v8  ;;  %v1409_v20 = vsel %vm1161_vm0, %v3067_v3, -inf  ;;  %v2940_v21 = vunpack.c.h.bf16 %v3683_v49  ;;  %v4435_v56 = vld [vmem:[%s6005_s0 + $0x640] sm:$0xff]  }
  0x67   :  { %v1406_v19 = vmax.f32 %v1404_v11, %v1405_v9  ;;  %v1411_v23 = vsel %vm1161_vm0, %v3195_v6, -inf  ;;  %v1417_v24 = vsel %vm1161_vm0, %v2428_v12, -inf  ;;  %v1418_v25 = vsel %vm1161_vm0, %v2556_v13, -inf  ;;  %v3812_v5 = vld [vmem:[%s6005_s0 + $0x840] sm:$0xff]  }
  0x68   :  { %v1397_v22 = vmax.f32 %v1395_v14, %v1396_v57  ;;  %v1413_v27 = vsel %vm1161_vm0, %v3323_v7, -inf  ;;  %v1419_v28 = vmax.f32 %v1417_v24, %v1418_v25  ;;  %v1420_v29 = vsel %vm1161_vm0, %v2684_v16, -inf }
  0x69   :  { %v1408_v26 = vmax.f32 %v1406_v19, %v1407_v15  ;;  %v3068_v34 = vunpack.c.h.bf16 %v4359_v54  ;;  %v3196_v35 = vunpack.c.h.bf16 %v4366_v58  ;;  %v1422_v36 = vsel %vm1161_vm0, %v2812_v17, -inf }
  0x6a   :  { %v1399_v33 = vmax.f32 %v1397_v22, %v1398_v2  ;;  %v3324_v39 = vunpack.c.h.bf16 %v4371_v59  ;;  %v1421_v40 = vmax.f32 %v1419_v28, %v1420_v29  ;;  %v1424_v41 = vsel %vm1161_vm0, %v2940_v21, -inf  ;;  %v4440_v59 = vld [vmem:[%s6005_s0 + $0x740] sm:$0xff]  }
  0x6b   :  { %v1410_v38 = vmax.f32 %v1408_v26, %v1409_v20  ;;  %v2431_v44 = vunpack.c.l.bf16 %v3556_v30  ;;  %v2559_v45 = vunpack.c.l.bf16 %v3588_v31  ;;  %v2687_v46 = vunpack.c.l.bf16 %v3620_v32 }
  0x6c   :  { %v2263_v43 = vpack.c.bf16 %v1399_v33, %v1399_v33  ;;  %v1415_v48 = vsel %vm1161_vm0, %v3451_v18, -inf  ;;  %v1423_v49 = vmax.f32 %v1421_v40, %v1422_v36  ;;  %v2815_v50 = vunpack.c.l.bf16 %v4411_v37  ;;  %v3621_v33 = vld [vmem:[%s6005_s0 + $0x248] sm:$0xff]  }
  0x6d   :  { %v1412_v47 = vmax.f32 %v1410_v38, %v1411_v23  ;;  %v3452_v52 = vunpack.c.h.bf16 %v4383_v8  ;;  %v1426_v53 = vsel %vm1161_vm0, %v3068_v34, -inf  ;;  %v1428_v54 = vsel %vm1161_vm0, %v3196_v35, -inf  ;;  %v4480_v38 = vld [vmem:[%s6005_s0 + $0x348] sm:$0xff]  }
  0x6e   :  { %2328 = vst.msk [vmem:[#allocation2 + $0x34] sm:$0xf] %vm2314_vm1, %v2263_v43  ;;  %v2943_v55 = vunpack.c.l.bf16 %v4418_v42  ;;  %v1425_v58 = vmax.f32 %v1423_v49, %v1424_v41  ;;  %v1434_v60 = vsel %vm1161_vm0, %v2431_v44, -inf  ;;  %v1435_v61 = vsel %vm1161_vm0, %v2559_v45, -inf }
  0x6f   :  { %v1414_v57 = vmax.f32 %v1412_v47, %v1413_v27  ;;  %v1430_v62 = vsel %vm1161_vm0, %v3324_v39, -inf  ;;  %v3071_v63 = vunpack.c.l.bf16 %v4425_v51  ;;  %v1436_v0 = vmax.f32 %v1434_v60, %v1435_v61  ;;  %v3557_v27 = vld [vmem:[%s6005_s0 + $0x48] sm:$0xff]  }
  0x70   :  { %v1437_v1 = vsel %vm1161_vm0, %v2687_v46, -inf  ;;  %v1427_v3 = vmax.f32 %v1425_v58, %v1426_v53  ;;  %v3199_v4 = vunpack.c.l.bf16 %v4435_v56  ;;  %v1439_v6 = vsel %vm1161_vm0, %v2815_v50, -inf  ;;  %v3685_v47 = vld [vmem:[%s6005_s0 + $0x448] sm:$0xff]  }
  0x71   :  { %v1416_v2 = vmax.f32 %v1414_v57, %v1415_v48  ;;  %v3327_v7 = vunpack.c.l.bf16 %v4440_v59  ;;  %v1438_v8 = vmax.f32 %v1436_v0, %v1437_v1  ;;  %v1441_v9 = vsel %vm1161_vm0, %v2943_v55, -inf  ;;  %v4505_v57 = vld [vmem:[%s6005_s0 + $0x748] sm:$0xff]  }
  0x72   :  { %v2432_v10 = vunpack.c.h.bf16 %v3556_v30  ;;  %v1429_v12 = vmax.f32 %v1427_v3, %v1428_v54  ;;  %v2560_v13 = vunpack.c.h.bf16 %v3588_v31  ;;  %v2688_v14 = vunpack.c.h.bf16 %v3620_v32  ;;  %v3589_v32 = vld [vmem:[%s6005_s0 + $0x148] sm:$0xff]  }
  0x73   :  { %v2264_v11 = vpack.c.bf16 %v1416_v2, %v1416_v2  ;;  %v1432_v15 = vsel %vm1161_vm0, %v3452_v52, -inf  ;;  %v3455_v16 = vunpack.c.l.bf16 %v3812_v5  ;;  %v1440_v17 = vmax.f32 %v1438_v8, %v1439_v6  ;;  %v4493_v52 = vld [vmem:[%s6005_s0 + $0x548] sm:$0xff]  }
  0x74   :  { %v2816_v18 = vunpack.c.h.bf16 %v4411_v37  ;;  %v1431_v19 = vmax.f32 %v1429_v12, %v1430_v62  ;;  %v1443_v20 = vsel %vm1161_vm0, %v3071_v63, -inf  ;;  %v1445_v21 = vsel %vm1161_vm0, %v3199_v4, -inf  ;;  %v4517_v6 = vld [vmem:[%s6005_s0 + $0x848] sm:$0xff]  }
  0x75   :  { %2329 = vst.msk [vmem:[#allocation2 + $0x38] sm:$0xf] %vm2314_vm1, %v2264_v11  ;;  %v2944_v22 = vunpack.c.h.bf16 %v4418_v42  ;;  %v1442_v23 = vmax.f32 %v1440_v17, %v1441_v9  ;;  %v1451_v24 = vsel %vm1161_vm0, %v2432_v10, -inf  ;;  %v1452_v25 = vsel %vm1161_vm0, %v2560_v13, -inf }
  0x76   :  { %v1454_v26 = vsel %vm1161_vm0, %v2688_v14, -inf  ;;  %v1433_v28 = vmax.f32 %v1431_v19, %v1432_v15  ;;  %v1447_v29 = vsel %vm1161_vm0, %v3327_v7, -inf  ;;  %v3072_v30 = vunpack.c.h.bf16 %v4425_v51 }
  0x77   :  { %v1453_v31 = vmax.f32 %v1451_v24, %v1452_v25  ;;  %v1444_v34 = vmax.f32 %v1442_v23, %v1443_v20  ;;  %v3200_v35 = vunpack.c.h.bf16 %v4435_v56  ;;  %v3328_v36 = vunpack.c.h.bf16 %v4440_v59  ;;  %v4500_v56 = vld [vmem:[%s6005_s0 + $0x648] sm:$0xff]  }
  0x78   :  { %v1456_v37 = vsel %vm1161_vm0, %v2816_v18, -inf  ;;  %v2265_v39 = vpack.c.bf16 %v1433_v28, %v1433_v28  ;;  %v3456_v40 = vunpack.c.h.bf16 %v3812_v5  ;;  %v2435_v42 = vunpack.c.l.bf16 %v3557_v27  ;;  %v3558_v28 = vld [vmem:[%s6005_s0 + $0x50] sm:$0xff]  }
  0x79   :  { %v1455_v41 = vmax.f32 %v1453_v31, %v1454_v26  ;;  %v1446_v43 = vmax.f32 %v1444_v34, %v1445_v21  ;;  %v1458_v44 = vsel %vm1161_vm0, %v2944_v22, -inf  ;;  %v2563_v45 = vunpack.c.l.bf16 %v3589_v32 }
  0x7a   :  { %v2691_v46 = vunpack.c.l.bf16 %v3621_v33  ;;  %2330 = vst.msk [vmem:[#allocation2 + $0x3c] sm:$0xf] %vm2314_vm1, %v2265_v39  ;;  %v1449_v48 = vsel %vm1161_vm0, %v3455_v16, -inf  ;;  %v1460_v50 = vsel %vm1161_vm0, %v3072_v30, -inf  ;;  %v2819_v51 = vunpack.c.l.bf16 %v4480_v38  ;;  %v3622_v30 = vld [vmem:[%s6005_s0 + $0x250] sm:$0xff]  }
  0x7b   :  { %v1457_v49 = vmax.f32 %v1455_v41, %v1456_v37  ;;  %v1448_v53 = vmax.f32 %v1446_v43, %v1447_v29  ;;  %v1462_v54 = vsel %vm1161_vm0, %v3200_v35, -inf  ;;  %v1464_v55 = vsel %vm1161_vm0, %v3328_v36, -inf  ;;  %v3590_v29 = vld [vmem:[%s6005_s0 + $0x150] sm:$0xff]  }
  0x7c   :  { %v1468_v58 = vsel %vm1161_vm0, %v2435_v42, -inf  ;;  %v2947_v60 = vunpack.c.l.bf16 %v3685_v47  ;;  %v1469_v61 = vsel %vm1161_vm0, %v2563_v45, -inf  ;;  %v1471_v62 = vsel %vm1161_vm0, %v2691_v46, -inf  ;;  %v4545_v35 = vld [vmem:[%s6005_s0 + $0x350] sm:$0xff]  }
  0x7d   :  { %v1459_v59 = vmax.f32 %v1457_v49, %v1458_v44  ;;  %v1450_v63 = vmax.f32 %v1448_v53, %v1449_v48  ;;  %v1466_v0 = vsel %vm1161_vm0, %v3456_v40, -inf  ;;  %v3075_v1 = vunpack.c.l.bf16 %v4493_v52  ;;  %v4552_v40 = vld [vmem:[%s6005_s0 + $0x450] sm:$0xff]  }
  0x7e   :  { %v1470_v2 = vmax.f32 %v1468_v58, %v1469_v61  ;;  %v3203_v4 = vunpack.c.l.bf16 %v4500_v56  ;;  %v3331_v5 = vunpack.c.l.bf16 %v4505_v57  ;;  %v1473_v7 = vsel %vm1161_vm0, %v2819_v51, -inf  ;;  %v4559_v49 = vld [vmem:[%s6005_s0 + $0x550] sm:$0xff]  }
  0x7f   :  { %v1461_v3 = vmax.f32 %v1459_v59, %v1460_v50  ;;  %v2266_v8 = vpack.c.bf16 %v1450_v63, %v1450_v63  ;;  %v2436_v10 = vunpack.c.h.bf16 %v3557_v27  ;;  %v2564_v11 = vunpack.c.h.bf16 %v3589_v32 }
  0x80   :  { %v1472_v9 = vmax.f32 %v1470_v2, %v1471_v62  ;;  %v1475_v13 = vsel %vm1161_vm0, %v2947_v60, -inf  ;;  %v2692_v14 = vunpack.c.h.bf16 %v3621_v33  ;;  %v2820_v15 = vunpack.c.h.bf16 %v4480_v38 }
  0x81   :  { %v1463_v12 = vmax.f32 %v1461_v3, %v1462_v54  ;;  %2331 = vst.msk [vmem:[#allocation2 + $0x40] sm:$0xf] %vm2314_vm1, %v2266_v8  ;;  %v3459_v16 = vunpack.c.l.bf16 %v4517_v6  ;;  %v1477_v18 = vsel %vm1161_vm0, %v3075_v1, -inf  ;;  %v2948_v19 = vunpack.c.h.bf16 %v3685_v47  ;;  %v4569_v54 = vld [vmem:[%s6005_s0 + $0x650] sm:$0xff]  }
  0x82   :  { %v1474_v17 = vmax.f32 %v1472_v9, %v1473_v7  ;;  %v1479_v21 = vsel %vm1161_vm0, %v3203_v4, -inf  ;;  %v1485_v22 = vsel %vm1161_vm0, %v2436_v10, -inf  ;;  %v1486_v23 = vsel %vm1161_vm0, %v2564_v11, -inf  ;;  %v3814_v3 = vld [vmem:[%s6005_s0 + $0x850] sm:$0xff]  }
  0x83   :  { %v1465_v20 = vmax.f32 %v1463_v12, %v1464_v55  ;;  %v1481_v25 = vsel %vm1161_vm0, %v3331_v5, -inf  ;;  %v1487_v26 = vmax.f32 %v1485_v22, %v1486_v23  ;;  %v1488_v27 = vsel %vm1161_vm0, %v2692_v14, -inf }
  0x84   :  { %v1476_v24 = vmax.f32 %v1474_v17, %v1475_v13  ;;  %v3076_v32 = vunpack.c.h.bf16 %v4493_v52  ;;  %v3204_v33 = vunpack.c.h.bf16 %v4500_v56  ;;  %v1490_v34 = vsel %vm1161_vm0, %v2820_v15, -inf }
  0x85   :  { %v1467_v31 = vmax.f32 %v1465_v20, %v1466_v0  ;;  %v3332_v37 = vunpack.c.h.bf16 %v4505_v57  ;;  %v1489_v38 = vmax.f32 %v1487_v26, %v1488_v27  ;;  %v1492_v39 = vsel %vm1161_vm0, %v2948_v19, -inf  ;;  %v4574_v57 = vld [vmem:[%s6005_s0 + $0x750] sm:$0xff]  }
  0x86   :  { %v1478_v36 = vmax.f32 %v1476_v24, %v1477_v18  ;;  %v2439_v42 = vunpack.c.l.bf16 %v3558_v28  ;;  %v2567_v43 = vunpack.c.l.bf16 %v3590_v29  ;;  %v2695_v44 = vunpack.c.l.bf16 %v3622_v30 }
  0x87   :  { %v2267_v41 = vpack.c.bf16 %v1467_v31, %v1467_v31  ;;  %v1483_v46 = vsel %vm1161_vm0, %v3459_v16, -inf  ;;  %v1491_v47 = vmax.f32 %v1489_v38, %v1490_v34  ;;  %v2823_v48 = vunpack.c.l.bf16 %v4545_v35  ;;  %v3623_v31 = vld [vmem:[%s6005_s0 + $0x258] sm:$0xff]  }
  0x88   :  { %v1480_v45 = vmax.f32 %v1478_v36, %v1479_v21  ;;  %v3460_v50 = vunpack.c.h.bf16 %v4517_v6  ;;  %v1494_v51 = vsel %vm1161_vm0, %v3076_v32, -inf  ;;  %v1496_v52 = vsel %vm1161_vm0, %v3204_v33, -inf  ;;  %v4614_v36 = vld [vmem:[%s6005_s0 + $0x358] sm:$0xff]  }
  0x89   :  { %2332 = vst.msk [vmem:[#allocation2 + $0x44] sm:$0xf] %vm2314_vm1, %v2267_v41  ;;  %v2951_v53 = vunpack.c.l.bf16 %v4552_v40  ;;  %v1493_v56 = vmax.f32 %v1491_v47, %v1492_v39  ;;  %v1502_v58 = vsel %vm1161_vm0, %v2439_v42, -inf  ;;  %v1503_v59 = vsel %vm1161_vm0, %v2567_v43, -inf }
  0x8a   :  { %v1482_v55 = vmax.f32 %v1480_v45, %v1481_v25  ;;  %v1498_v60 = vsel %vm1161_vm0, %v3332_v37, -inf  ;;  %v3079_v61 = vunpack.c.l.bf16 %v4559_v49  ;;  %v1504_v62 = vmax.f32 %v1502_v58, %v1503_v59  ;;  %v3559_v25 = vld [vmem:[%s6005_s0 + $0x58] sm:$0xff]  }
  0x8b   :  { %v1505_v63 = vsel %vm1161_vm0, %v2695_v44, -inf  ;;  %v1495_v1 = vmax.f32 %v1493_v56, %v1494_v51  ;;  %v3207_v2 = vunpack.c.l.bf16 %v4569_v54  ;;  %v1507_v4 = vsel %vm1161_vm0, %v2823_v48, -inf  ;;  %v3687_v45 = vld [vmem:[%s6005_s0 + $0x458] sm:$0xff]  }
  0x8c   :  { %v1484_v0 = vmax.f32 %v1482_v55, %v1483_v46  ;;  %v3335_v5 = vunpack.c.l.bf16 %v4574_v57  ;;  %v1506_v6 = vmax.f32 %v1504_v62, %v1505_v63  ;;  %v1509_v7 = vsel %vm1161_vm0, %v2951_v53, -inf  ;;  %v4639_v55 = vld [vmem:[%s6005_s0 + $0x758] sm:$0xff]  }
  0x8d   :  { %v2440_v8 = vunpack.c.h.bf16 %v3558_v28  ;;  %v1497_v10 = vmax.f32 %v1495_v1, %v1496_v52  ;;  %v2568_v11 = vunpack.c.h.bf16 %v3590_v29  ;;  %v2696_v12 = vunpack.c.h.bf16 %v3622_v30  ;;  %v3591_v30 = vld [vmem:[%s6005_s0 + $0x158] sm:$0xff]  }
  0x8e   :  { %v2268_v9 = vpack.c.bf16 %v1484_v0, %v1484_v0  ;;  %v1500_v13 = vsel %vm1161_vm0, %v3460_v50, -inf  ;;  %v3463_v14 = vunpack.c.l.bf16 %v3814_v3  ;;  %v1508_v15 = vmax.f32 %v1506_v6, %v1507_v4  ;;  %v4627_v50 = vld [vmem:[%s6005_s0 + $0x558] sm:$0xff]  }
  0x8f   :  { %v2824_v16 = vunpack.c.h.bf16 %v4545_v35  ;;  %v1499_v17 = vmax.f32 %v1497_v10, %v1498_v60  ;;  %v1511_v18 = vsel %vm1161_vm0, %v3079_v61, -inf  ;;  %v1513_v19 = vsel %vm1161_vm0, %v3207_v2, -inf  ;;  %v4651_v4 = vld [vmem:[%s6005_s0 + $0x858] sm:$0xff]  }
  0x90   :  { %2333 = vst.msk [vmem:[#allocation2 + $0x48] sm:$0xf] %vm2314_vm1, %v2268_v9  ;;  %v2952_v20 = vunpack.c.h.bf16 %v4552_v40  ;;  %v1510_v21 = vmax.f32 %v1508_v15, %v1509_v7  ;;  %v1519_v22 = vsel %vm1161_vm0, %v2440_v8, -inf  ;;  %v1520_v23 = vsel %vm1161_vm0, %v2568_v11, -inf }
  0x91   :  { %v1522_v24 = vsel %vm1161_vm0, %v2696_v12, -inf  ;;  %v1501_v26 = vmax.f32 %v1499_v17, %v1500_v13  ;;  %v1515_v27 = vsel %vm1161_vm0, %v3335_v5, -inf  ;;  %v3080_v28 = vunpack.c.h.bf16 %v4559_v49 }
  0x92   :  { %v1521_v29 = vmax.f32 %v1519_v22, %v1520_v23  ;;  %v1512_v32 = vmax.f32 %v1510_v21, %v1511_v18  ;;  %v3208_v33 = vunpack.c.h.bf16 %v4569_v54  ;;  %v3336_v34 = vunpack.c.h.bf16 %v4574_v57  ;;  %v4634_v54 = vld [vmem:[%s6005_s0 + $0x658] sm:$0xff]  }
  0x93   :  { %v1524_v35 = vsel %vm1161_vm0, %v2824_v16, -inf  ;;  %v2269_v37 = vpack.c.bf16 %v1501_v26, %v1501_v26  ;;  %v3464_v38 = vunpack.c.h.bf16 %v3814_v3  ;;  %v2443_v40 = vunpack.c.l.bf16 %v3559_v25  ;;  %v3560_v26 = vld [vmem:[%s6005_s0 + $0x60] sm:$0xff]  }
  0x94   :  { %v1523_v39 = vmax.f32 %v1521_v29, %v1522_v24  ;;  %v1514_v41 = vmax.f32 %v1512_v32, %v1513_v19  ;;  %v1526_v42 = vsel %vm1161_vm0, %v2952_v20, -inf  ;;  %v2571_v43 = vunpack.c.l.bf16 %v3591_v30 }
  0x95   :  { %v2699_v44 = vunpack.c.l.bf16 %v3623_v31  ;;  %2334 = vst.msk [vmem:[#allocation2 + $0x4c] sm:$0xf] %vm2314_vm1, %v2269_v37  ;;  %v1517_v46 = vsel %vm1161_vm0, %v3463_v14, -inf  ;;  %v1528_v48 = vsel %vm1161_vm0, %v3080_v28, -inf  ;;  %v2827_v49 = vunpack.c.l.bf16 %v4614_v36  ;;  %v3624_v28 = vld [vmem:[%s6005_s0 + $0x260] sm:$0xff]  }
  0x96   :  { %v1525_v47 = vmax.f32 %v1523_v39, %v1524_v35  ;;  %v1516_v51 = vmax.f32 %v1514_v41, %v1515_v27  ;;  %v1530_v52 = vsel %vm1161_vm0, %v3208_v33, -inf  ;;  %v1532_v53 = vsel %vm1161_vm0, %v3336_v34, -inf  ;;  %v3592_v27 = vld [vmem:[%s6005_s0 + $0x160] sm:$0xff]  }
  0x97   :  { %v1536_v56 = vsel %vm1161_vm0, %v2443_v40, -inf  ;;  %v2955_v58 = vunpack.c.l.bf16 %v3687_v45  ;;  %v1537_v59 = vsel %vm1161_vm0, %v2571_v43, -inf  ;;  %v1539_v60 = vsel %vm1161_vm0, %v2699_v44, -inf  ;;  %v4679_v33 = vld [vmem:[%s6005_s0 + $0x360] sm:$0xff]  }
  0x98   :  { %v1527_v57 = vmax.f32 %v1525_v47, %v1526_v42  ;;  %v1518_v61 = vmax.f32 %v1516_v51, %v1517_v46  ;;  %v1534_v62 = vsel %vm1161_vm0, %v3464_v38, -inf  ;;  %v3083_v63 = vunpack.c.l.bf16 %v4627_v50  ;;  %v4686_v38 = vld [vmem:[%s6005_s0 + $0x460] sm:$0xff]  }
  0x99   :  { %v1538_v0 = vmax.f32 %v1536_v56, %v1537_v59  ;;  %v3211_v2 = vunpack.c.l.bf16 %v4634_v54  ;;  %v3339_v3 = vunpack.c.l.bf16 %v4639_v55  ;;  %v1541_v5 = vsel %vm1161_vm0, %v2827_v49, -inf  ;;  %v4693_v47 = vld [vmem:[%s6005_s0 + $0x560] sm:$0xff]  }
  0x9a   :  { %v1529_v1 = vmax.f32 %v1527_v57, %v1528_v48  ;;  %v2270_v6 = vpack.c.bf16 %v1518_v61, %v1518_v61  ;;  %v2444_v8 = vunpack.c.h.bf16 %v3559_v25  ;;  %v2572_v9 = vunpack.c.h.bf16 %v3591_v30 }
  0x9b   :  { %v1540_v7 = vmax.f32 %v1538_v0, %v1539_v60  ;;  %v1543_v11 = vsel %vm1161_vm0, %v2955_v58, -inf  ;;  %v2700_v12 = vunpack.c.h.bf16 %v3623_v31  ;;  %v2828_v13 = vunpack.c.h.bf16 %v4614_v36 }
  0x9c   :  { %v1531_v10 = vmax.f32 %v1529_v1, %v1530_v52  ;;  %2335 = vst.msk [vmem:[#allocation2 + $0x50] sm:$0xf] %vm2314_vm1, %v2270_v6  ;;  %v3467_v14 = vunpack.c.l.bf16 %v4651_v4  ;;  %v1545_v16 = vsel %vm1161_vm0, %v3083_v63, -inf  ;;  %v2956_v17 = vunpack.c.h.bf16 %v3687_v45  ;;  %v4703_v52 = vld [vmem:[%s6005_s0 + $0x660] sm:$0xff]  }
  0x9d   :  { %v1542_v15 = vmax.f32 %v1540_v7, %v1541_v5  ;;  %v1547_v19 = vsel %vm1161_vm0, %v3211_v2, -inf  ;;  %v1553_v20 = vsel %vm1161_vm0, %v2444_v8, -inf  ;;  %v1554_v21 = vsel %vm1161_vm0, %v2572_v9, -inf  ;;  %v3816_v1 = vld [vmem:[%s6005_s0 + $0x860] sm:$0xff]  }
  0x9e   :  { %v1533_v18 = vmax.f32 %v1531_v10, %v1532_v53  ;;  %v1549_v23 = vsel %vm1161_vm0, %v3339_v3, -inf  ;;  %v1555_v24 = vmax.f32 %v1553_v20, %v1554_v21  ;;  %v1556_v25 = vsel %vm1161_vm0, %v2700_v12, -inf }
  0x9f   :  { %v1544_v22 = vmax.f32 %v1542_v15, %v1543_v11  ;;  %v3084_v30 = vunpack.c.h.bf16 %v4627_v50  ;;  %v3212_v31 = vunpack.c.h.bf16 %v4634_v54  ;;  %v1558_v32 = vsel %vm1161_vm0, %v2828_v13, -inf }
  0xa0   :  { %v1535_v29 = vmax.f32 %v1533_v18, %v1534_v62  ;;  %v3340_v35 = vunpack.c.h.bf16 %v4639_v55  ;;  %v1557_v36 = vmax.f32 %v1555_v24, %v1556_v25  ;;  %v1560_v37 = vsel %vm1161_vm0, %v2956_v17, -inf  ;;  %v4708_v55 = vld [vmem:[%s6005_s0 + $0x760] sm:$0xff]  }
  0xa1   :  { %v1546_v34 = vmax.f32 %v1544_v22, %v1545_v16  ;;  %v2447_v40 = vunpack.c.l.bf16 %v3560_v26  ;;  %v2575_v41 = vunpack.c.l.bf16 %v3592_v27  ;;  %v2703_v42 = vunpack.c.l.bf16 %v3624_v28 }
  0xa2   :  { %v2271_v39 = vpack.c.bf16 %v1535_v29, %v1535_v29  ;;  %v1551_v44 = vsel %vm1161_vm0, %v3467_v14, -inf  ;;  %v1559_v45 = vmax.f32 %v1557_v36, %v1558_v32  ;;  %v2831_v46 = vunpack.c.l.bf16 %v4679_v33  ;;  %v3625_v29 = vld [vmem:[%s6005_s0 + $0x268] sm:$0xff]  }
  0xa3   :  { %v1548_v43 = vmax.f32 %v1546_v34, %v1547_v19  ;;  %v3468_v48 = vunpack.c.h.bf16 %v4651_v4  ;;  %v1562_v49 = vsel %vm1161_vm0, %v3084_v30, -inf  ;;  %v1564_v50 = vsel %vm1161_vm0, %v3212_v31, -inf  ;;  %v4748_v34 = vld [vmem:[%s6005_s0 + $0x368] sm:$0xff]  }
  0xa4   :  { %2336 = vst.msk [vmem:[#allocation2 + $0x54] sm:$0xf] %vm2314_vm1, %v2271_v39  ;;  %v2959_v51 = vunpack.c.l.bf16 %v4686_v38  ;;  %v1561_v54 = vmax.f32 %v1559_v45, %v1560_v37  ;;  %v1570_v56 = vsel %vm1161_vm0, %v2447_v40, -inf  ;;  %v1571_v57 = vsel %vm1161_vm0, %v2575_v41, -inf }
  0xa5   :  { %v1550_v53 = vmax.f32 %v1548_v43, %v1549_v23  ;;  %v1566_v58 = vsel %vm1161_vm0, %v3340_v35, -inf  ;;  %v3087_v59 = vunpack.c.l.bf16 %v4693_v47  ;;  %v1572_v60 = vmax.f32 %v1570_v56, %v1571_v57  ;;  %v3561_v23 = vld [vmem:[%s6005_s0 + $0x68] sm:$0xff]  }
  0xa6   :  { %v1573_v61 = vsel %vm1161_vm0, %v2703_v42, -inf  ;;  %v1563_v63 = vmax.f32 %v1561_v54, %v1562_v49  ;;  %v3215_v0 = vunpack.c.l.bf16 %v4703_v52  ;;  %v1575_v2 = vsel %vm1161_vm0, %v2831_v46, -inf  ;;  %v3689_v43 = vld [vmem:[%s6005_s0 + $0x468] sm:$0xff]  }
  0xa7   :  { %v1552_v62 = vmax.f32 %v1550_v53, %v1551_v44  ;;  %v3343_v3 = vunpack.c.l.bf16 %v4708_v55  ;;  %v1574_v4 = vmax.f32 %v1572_v60, %v1573_v61  ;;  %v1577_v5 = vsel %vm1161_vm0, %v2959_v51, -inf  ;;  %v4773_v53 = vld [vmem:[%s6005_s0 + $0x768] sm:$0xff]  }
  0xa8   :  { %v2448_v6 = vunpack.c.h.bf16 %v3560_v26  ;;  %v1565_v8 = vmax.f32 %v1563_v63, %v1564_v50  ;;  %v2576_v9 = vunpack.c.h.bf16 %v3592_v27  ;;  %v2704_v10 = vunpack.c.h.bf16 %v3624_v28  ;;  %v3593_v28 = vld [vmem:[%s6005_s0 + $0x168] sm:$0xff]  }
  0xa9   :  { %v2272_v7 = vpack.c.bf16 %v1552_v62, %v1552_v62  ;;  %v1568_v11 = vsel %vm1161_vm0, %v3468_v48, -inf  ;;  %v3471_v12 = vunpack.c.l.bf16 %v3816_v1  ;;  %v1576_v13 = vmax.f32 %v1574_v4, %v1575_v2  ;;  %v4761_v48 = vld [vmem:[%s6005_s0 + $0x568] sm:$0xff]  }
  0xaa   :  { %v2832_v14 = vunpack.c.h.bf16 %v4679_v33  ;;  %v1567_v15 = vmax.f32 %v1565_v8, %v1566_v58  ;;  %v1579_v16 = vsel %vm1161_vm0, %v3087_v59, -inf  ;;  %v1581_v17 = vsel %vm1161_vm0, %v3215_v0, -inf  ;;  %v4785_v2 = vld [vmem:[%s6005_s0 + $0x868] sm:$0xff]  }
  0xab   :  { %2337 = vst.msk [vmem:[#allocation2 + $0x58] sm:$0xf] %vm2314_vm1, %v2272_v7  ;;  %v2960_v18 = vunpack.c.h.bf16 %v4686_v38  ;;  %v1578_v19 = vmax.f32 %v1576_v13, %v1577_v5  ;;  %v1587_v20 = vsel %vm1161_vm0, %v2448_v6, -inf  ;;  %v1588_v21 = vsel %vm1161_vm0, %v2576_v9, -inf }
  0xac   :  { %v1590_v22 = vsel %vm1161_vm0, %v2704_v10, -inf  ;;  %v1569_v24 = vmax.f32 %v1567_v15, %v1568_v11  ;;  %v1583_v25 = vsel %vm1161_vm0, %v3343_v3, -inf  ;;  %v3088_v26 = vunpack.c.h.bf16 %v4693_v47 }
  0xad   :  { %v1589_v27 = vmax.f32 %v1587_v20, %v1588_v21  ;;  %v1580_v30 = vmax.f32 %v1578_v19, %v1579_v16  ;;  %v3216_v31 = vunpack.c.h.bf16 %v4703_v52  ;;  %v3344_v32 = vunpack.c.h.bf16 %v4708_v55  ;;  %v4768_v52 = vld [vmem:[%s6005_s0 + $0x668] sm:$0xff]  }
  0xae   :  { %v1592_v33 = vsel %vm1161_vm0, %v2832_v14, -inf  ;;  %v2273_v35 = vpack.c.bf16 %v1569_v24, %v1569_v24  ;;  %v3472_v36 = vunpack.c.h.bf16 %v3816_v1  ;;  %v2451_v38 = vunpack.c.l.bf16 %v3561_v23  ;;  %v3562_v24 = vld [vmem:[%s6005_s0 + $0x70] sm:$0xff]  }
  0xaf   :  { %v1591_v37 = vmax.f32 %v1589_v27, %v1590_v22  ;;  %v1582_v39 = vmax.f32 %v1580_v30, %v1581_v17  ;;  %v1594_v40 = vsel %vm1161_vm0, %v2960_v18, -inf  ;;  %v2579_v41 = vunpack.c.l.bf16 %v3593_v28 }
  0xb0   :  { %v2707_v42 = vunpack.c.l.bf16 %v3625_v29  ;;  %2338 = vst.msk [vmem:[#allocation2 + $0x5c] sm:$0xf] %vm2314_vm1, %v2273_v35  ;;  %v1585_v44 = vsel %vm1161_vm0, %v3471_v12, -inf  ;;  %v1596_v46 = vsel %vm1161_vm0, %v3088_v26, -inf  ;;  %v2835_v47 = vunpack.c.l.bf16 %v4748_v34  ;;  %v3626_v26 = vld [vmem:[%s6005_s0 + $0x270] sm:$0xff]  }
  0xb1   :  { %v1593_v45 = vmax.f32 %v1591_v37, %v1592_v33  ;;  %v1584_v49 = vmax.f32 %v1582_v39, %v1583_v25  ;;  %v1598_v50 = vsel %vm1161_vm0, %v3216_v31, -inf  ;;  %v1600_v51 = vsel %vm1161_vm0, %v3344_v32, -inf  ;;  %v3594_v25 = vld [vmem:[%s6005_s0 + $0x170] sm:$0xff]  }
  0xb2   :  { %v1604_v54 = vsel %vm1161_vm0, %v2451_v38, -inf  ;;  %v2963_v56 = vunpack.c.l.bf16 %v3689_v43  ;;  %v1605_v57 = vsel %vm1161_vm0, %v2579_v41, -inf  ;;  %v1607_v58 = vsel %vm1161_vm0, %v2707_v42, -inf  ;;  %v4813_v31 = vld [vmem:[%s6005_s0 + $0x370] sm:$0xff]  }
  0xb3   :  { %v1595_v55 = vmax.f32 %v1593_v45, %v1594_v40  ;;  %v1586_v59 = vmax.f32 %v1584_v49, %v1585_v44  ;;  %v1602_v60 = vsel %vm1161_vm0, %v3472_v36, -inf  ;;  %v3091_v61 = vunpack.c.l.bf16 %v4761_v48  ;;  %v4820_v36 = vld [vmem:[%s6005_s0 + $0x470] sm:$0xff]  }
  0xb4   :  { %v1606_v62 = vmax.f32 %v1604_v54, %v1605_v57  ;;  %v3219_v0 = vunpack.c.l.bf16 %v4768_v52  ;;  %v3347_v1 = vunpack.c.l.bf16 %v4773_v53  ;;  %v1609_v3 = vsel %vm1161_vm0, %v2835_v47, -inf  ;;  %v4827_v45 = vld [vmem:[%s6005_s0 + $0x570] sm:$0xff]  }
  0xb5   :  { %v1597_v63 = vmax.f32 %v1595_v55, %v1596_v46  ;;  %v2274_v4 = vpack.c.bf16 %v1586_v59, %v1586_v59  ;;  %v2452_v6 = vunpack.c.h.bf16 %v3561_v23  ;;  %v2580_v7 = vunpack.c.h.bf16 %v3593_v28 }
  0xb6   :  { %v1608_v5 = vmax.f32 %v1606_v62, %v1607_v58  ;;  %v1611_v9 = vsel %vm1161_vm0, %v2963_v56, -inf  ;;  %v2708_v10 = vunpack.c.h.bf16 %v3625_v29  ;;  %v2836_v11 = vunpack.c.h.bf16 %v4748_v34 }
  0xb7   :  { %v1599_v8 = vmax.f32 %v1597_v63, %v1598_v50  ;;  %2339 = vst.msk [vmem:[#allocation2 + $0x60] sm:$0xf] %vm2314_vm1, %v2274_v4  ;;  %v3475_v12 = vunpack.c.l.bf16 %v4785_v2  ;;  %v1613_v14 = vsel %vm1161_vm0, %v3091_v61, -inf  ;;  %v2964_v15 = vunpack.c.h.bf16 %v3689_v43  ;;  %v4837_v50 = vld [vmem:[%s6005_s0 + $0x670] sm:$0xff]  }
  0xb8   :  { %v1610_v13 = vmax.f32 %v1608_v5, %v1609_v3  ;;  %v1615_v17 = vsel %vm1161_vm0, %v3219_v0, -inf  ;;  %v1621_v18 = vsel %vm1161_vm0, %v2452_v6, -inf  ;;  %v1622_v19 = vsel %vm1161_vm0, %v2580_v7, -inf  ;;  %v3818_v63 = vld [vmem:[%s6005_s0 + $0x870] sm:$0xff]  }
  0xb9   :  { %v1601_v16 = vmax.f32 %v1599_v8, %v1600_v51  ;;  %v1617_v21 = vsel %vm1161_vm0, %v3347_v1, -inf  ;;  %v1623_v22 = vmax.f32 %v1621_v18, %v1622_v19  ;;  %v1624_v23 = vsel %vm1161_vm0, %v2708_v10, -inf }
  0xba   :  { %v1612_v20 = vmax.f32 %v1610_v13, %v1611_v9  ;;  %v3092_v28 = vunpack.c.h.bf16 %v4761_v48  ;;  %v3220_v29 = vunpack.c.h.bf16 %v4768_v52  ;;  %v1626_v30 = vsel %vm1161_vm0, %v2836_v11, -inf }
  0xbb   :  { %v1603_v27 = vmax.f32 %v1601_v16, %v1602_v60  ;;  %v3348_v33 = vunpack.c.h.bf16 %v4773_v53  ;;  %v1625_v34 = vmax.f32 %v1623_v22, %v1624_v23  ;;  %v1628_v35 = vsel %vm1161_vm0, %v2964_v15, -inf  ;;  %v4842_v53 = vld [vmem:[%s6005_s0 + $0x770] sm:$0xff]  }
  0xbc   :  { %v1614_v32 = vmax.f32 %v1612_v20, %v1613_v14  ;;  %v2455_v38 = vunpack.c.l.bf16 %v3562_v24  ;;  %v2583_v39 = vunpack.c.l.bf16 %v3594_v25  ;;  %v2711_v40 = vunpack.c.l.bf16 %v3626_v26 }
  0xbd   :  { %v2275_v37 = vpack.c.bf16 %v1603_v27, %v1603_v27  ;;  %v1619_v42 = vsel %vm1161_vm0, %v3475_v12, -inf  ;;  %v1627_v43 = vmax.f32 %v1625_v34, %v1626_v30  ;;  %v2839_v44 = vunpack.c.l.bf16 %v4813_v31  ;;  %v3627_v27 = vld [vmem:[%s6005_s0 + $0x278] sm:$0xff]  }
  0xbe   :  { %v1616_v41 = vmax.f32 %v1614_v32, %v1615_v17  ;;  %v3476_v46 = vunpack.c.h.bf16 %v4785_v2  ;;  %v1630_v47 = vsel %vm1161_vm0, %v3092_v28, -inf  ;;  %v1632_v48 = vsel %vm1161_vm0, %v3220_v29, -inf  ;;  %v4882_v32 = vld [vmem:[%s6005_s0 + $0x378] sm:$0xff]  }
  0xbf   :  { %2340 = vst.msk [vmem:[#allocation2 + $0x64] sm:$0xf] %vm2314_vm1, %v2275_v37  ;;  %v2967_v49 = vunpack.c.l.bf16 %v4820_v36  ;;  %v1629_v52 = vmax.f32 %v1627_v43, %v1628_v35  ;;  %v1638_v54 = vsel %vm1161_vm0, %v2455_v38, -inf  ;;  %v1639_v55 = vsel %vm1161_vm0, %v2583_v39, -inf }
  0xc0   :  { %v1618_v51 = vmax.f32 %v1616_v41, %v1617_v21  ;;  %v1634_v56 = vsel %vm1161_vm0, %v3348_v33, -inf  ;;  %v3095_v57 = vunpack.c.l.bf16 %v4827_v45  ;;  %v1640_v58 = vmax.f32 %v1638_v54, %v1639_v55  ;;  %v3563_v21 = vld [vmem:[%s6005_s0 + $0x78] sm:$0xff]  }
  0xc1   :  { %v1641_v59 = vsel %vm1161_vm0, %v2711_v40, -inf  ;;  %v1631_v61 = vmax.f32 %v1629_v52, %v1630_v47  ;;  %v3223_v62 = vunpack.c.l.bf16 %v4837_v50  ;;  %v1643_v0 = vsel %vm1161_vm0, %v2839_v44, -inf  ;;  %v3691_v41 = vld [vmem:[%s6005_s0 + $0x478] sm:$0xff]  }
  0xc2   :  { %v1620_v60 = vmax.f32 %v1618_v51, %v1619_v42  ;;  %v3351_v1 = vunpack.c.l.bf16 %v4842_v53  ;;  %v1642_v2 = vmax.f32 %v1640_v58, %v1641_v59  ;;  %v1645_v3 = vsel %vm1161_vm0, %v2967_v49, -inf  ;;  %v4907_v51 = vld [vmem:[%s6005_s0 + $0x778] sm:$0xff]  }
  0xc3   :  { %v2456_v4 = vunpack.c.h.bf16 %v3562_v24  ;;  %v1633_v6 = vmax.f32 %v1631_v61, %v1632_v48  ;;  %v2584_v7 = vunpack.c.h.bf16 %v3594_v25  ;;  %v2712_v8 = vunpack.c.h.bf16 %v3626_v26  ;;  %v3595_v26 = vld [vmem:[%s6005_s0 + $0x178] sm:$0xff]  }
  0xc4   :  { %v2276_v5 = vpack.c.bf16 %v1620_v60, %v1620_v60  ;;  %v1636_v9 = vsel %vm1161_vm0, %v3476_v46, -inf  ;;  %v3479_v10 = vunpack.c.l.bf16 %v3818_v63  ;;  %v1644_v11 = vmax.f32 %v1642_v2, %v1643_v0  ;;  %v4895_v46 = vld [vmem:[%s6005_s0 + $0x578] sm:$0xff]  }
  0xc5   :  { %v2840_v12 = vunpack.c.h.bf16 %v4813_v31  ;;  %v1635_v13 = vmax.f32 %v1633_v6, %v1634_v56  ;;  %v1647_v14 = vsel %vm1161_vm0, %v3095_v57, -inf  ;;  %v1649_v15 = vsel %vm1161_vm0, %v3223_v62, -inf  ;;  %v4919_v0 = vld [vmem:[%s6005_s0 + $0x878] sm:$0xff]  }
  0xc6   :  { %2341 = vst.msk [vmem:[#allocation2 + $0x68] sm:$0xf] %vm2314_vm1, %v2276_v5  ;;  %v2968_v16 = vunpack.c.h.bf16 %v4820_v36  ;;  %v1646_v17 = vmax.f32 %v1644_v11, %v1645_v3  ;;  %v1655_v18 = vsel %vm1161_vm0, %v2456_v4, -inf  ;;  %v1656_v19 = vsel %vm1161_vm0, %v2584_v7, -inf }
  0xc7   :  { %v1658_v20 = vsel %vm1161_vm0, %v2712_v8, -inf  ;;  %v1637_v22 = vmax.f32 %v1635_v13, %v1636_v9  ;;  %v1651_v23 = vsel %vm1161_vm0, %v3351_v1, -inf  ;;  %v3096_v24 = vunpack.c.h.bf16 %v4827_v45 }
  0xc8   :  { %v1657_v25 = vmax.f32 %v1655_v18, %v1656_v19  ;;  %v1648_v28 = vmax.f32 %v1646_v17, %v1647_v14  ;;  %v3224_v29 = vunpack.c.h.bf16 %v4837_v50  ;;  %v3352_v30 = vunpack.c.h.bf16 %v4842_v53  ;;  %v4902_v50 = vld [vmem:[%s6005_s0 + $0x678] sm:$0xff]  }
  0xc9   :  { %v1660_v31 = vsel %vm1161_vm0, %v2840_v12, -inf  ;;  %v2277_v33 = vpack.c.bf16 %v1637_v22, %v1637_v22  ;;  %v3480_v34 = vunpack.c.h.bf16 %v3818_v63  ;;  %v2459_v36 = vunpack.c.l.bf16 %v3563_v21  ;;  %v3564_v22 = vld [vmem:[%s6005_s0 + $0x80] sm:$0xff]  }
  0xca   :  { %v1659_v35 = vmax.f32 %v1657_v25, %v1658_v20  ;;  %v1650_v37 = vmax.f32 %v1648_v28, %v1649_v15  ;;  %v1662_v38 = vsel %vm1161_vm0, %v2968_v16, -inf  ;;  %v2587_v39 = vunpack.c.l.bf16 %v3595_v26 }
  0xcb   :  { %v2715_v40 = vunpack.c.l.bf16 %v3627_v27  ;;  %2342 = vst.msk [vmem:[#allocation2 + $0x6c] sm:$0xf] %vm2314_vm1, %v2277_v33  ;;  %v1653_v42 = vsel %vm1161_vm0, %v3479_v10, -inf  ;;  %v1664_v44 = vsel %vm1161_vm0, %v3096_v24, -inf  ;;  %v2843_v45 = vunpack.c.l.bf16 %v4882_v32  ;;  %v3628_v24 = vld [vmem:[%s6005_s0 + $0x280] sm:$0xff]  }
  0xcc   :  { %v1661_v43 = vmax.f32 %v1659_v35, %v1660_v31  ;;  %v1652_v47 = vmax.f32 %v1650_v37, %v1651_v23  ;;  %v1666_v48 = vsel %vm1161_vm0, %v3224_v29, -inf  ;;  %v1668_v49 = vsel %vm1161_vm0, %v3352_v30, -inf  ;;  %v3596_v23 = vld [vmem:[%s6005_s0 + $0x180] sm:$0xff]  }
  0xcd   :  { %v1672_v52 = vsel %vm1161_vm0, %v2459_v36, -inf  ;;  %v2971_v54 = vunpack.c.l.bf16 %v3691_v41  ;;  %v1673_v55 = vsel %vm1161_vm0, %v2587_v39, -inf  ;;  %v1675_v56 = vsel %vm1161_vm0, %v2715_v40, -inf  ;;  %v4947_v29 = vld [vmem:[%s6005_s0 + $0x380] sm:$0xff]  }
  0xce   :  { %v1663_v53 = vmax.f32 %v1661_v43, %v1662_v38  ;;  %v1654_v57 = vmax.f32 %v1652_v47, %v1653_v42  ;;  %v1670_v58 = vsel %vm1161_vm0, %v3480_v34, -inf  ;;  %v3099_v59 = vunpack.c.l.bf16 %v4895_v46  ;;  %v4954_v34 = vld [vmem:[%s6005_s0 + $0x480] sm:$0xff]  }
  0xcf   :  { %v1674_v60 = vmax.f32 %v1672_v52, %v1673_v55  ;;  %v3227_v62 = vunpack.c.l.bf16 %v4902_v50  ;;  %v3355_v63 = vunpack.c.l.bf16 %v4907_v51  ;;  %v1677_v1 = vsel %vm1161_vm0, %v2843_v45, -inf  ;;  %v4961_v43 = vld [vmem:[%s6005_s0 + $0x580] sm:$0xff]  }
  0xd0   :  { %v1665_v61 = vmax.f32 %v1663_v53, %v1664_v44  ;;  %v2278_v2 = vpack.c.bf16 %v1654_v57, %v1654_v57  ;;  %v2460_v4 = vunpack.c.h.bf16 %v3563_v21  ;;  %v2588_v5 = vunpack.c.h.bf16 %v3595_v26 }
  0xd1   :  { %v1676_v3 = vmax.f32 %v1674_v60, %v1675_v56  ;;  %v1679_v7 = vsel %vm1161_vm0, %v2971_v54, -inf  ;;  %v2716_v8 = vunpack.c.h.bf16 %v3627_v27  ;;  %v2844_v9 = vunpack.c.h.bf16 %v4882_v32 }
  0xd2   :  { %v1667_v6 = vmax.f32 %v1665_v61, %v1666_v48  ;;  %2343 = vst.msk [vmem:[#allocation2 + $0x70] sm:$0xf] %vm2314_vm1, %v2278_v2  ;;  %v3483_v10 = vunpack.c.l.bf16 %v4919_v0  ;;  %v1681_v12 = vsel %vm1161_vm0, %v3099_v59, -inf  ;;  %v2972_v13 = vunpack.c.h.bf16 %v3691_v41  ;;  %v4971_v48 = vld [vmem:[%s6005_s0 + $0x680] sm:$0xff]  }
  0xd3   :  { %v1678_v11 = vmax.f32 %v1676_v3, %v1677_v1  ;;  %v1683_v15 = vsel %vm1161_vm0, %v3227_v62, -inf  ;;  %v1689_v16 = vsel %vm1161_vm0, %v2460_v4, -inf  ;;  %v1690_v17 = vsel %vm1161_vm0, %v2588_v5, -inf  ;;  %v3820_v61 = vld [vmem:[%s6005_s0 + $0x880] sm:$0xff]  }
  0xd4   :  { %v1669_v14 = vmax.f32 %v1667_v6, %v1668_v49  ;;  %v1685_v19 = vsel %vm1161_vm0, %v3355_v63, -inf  ;;  %v1691_v20 = vmax.f32 %v1689_v16, %v1690_v17  ;;  %v1692_v21 = vsel %vm1161_vm0, %v2716_v8, -inf }
  0xd5   :  { %v1680_v18 = vmax.f32 %v1678_v11, %v1679_v7  ;;  %v3100_v26 = vunpack.c.h.bf16 %v4895_v46  ;;  %v3228_v27 = vunpack.c.h.bf16 %v4902_v50  ;;  %v1694_v28 = vsel %vm1161_vm0, %v2844_v9, -inf }
  0xd6   :  { %v1671_v25 = vmax.f32 %v1669_v14, %v1670_v58  ;;  %v3356_v31 = vunpack.c.h.bf16 %v4907_v51  ;;  %v1693_v32 = vmax.f32 %v1691_v20, %v1692_v21  ;;  %v1696_v33 = vsel %vm1161_vm0, %v2972_v13, -inf  ;;  %v4976_v51 = vld [vmem:[%s6005_s0 + $0x780] sm:$0xff]  }
  0xd7   :  { %v1682_v30 = vmax.f32 %v1680_v18, %v1681_v12  ;;  %v2463_v36 = vunpack.c.l.bf16 %v3564_v22  ;;  %v2591_v37 = vunpack.c.l.bf16 %v3596_v23  ;;  %v2719_v38 = vunpack.c.l.bf16 %v3628_v24 }
  0xd8   :  { %v2279_v35 = vpack.c.bf16 %v1671_v25, %v1671_v25  ;;  %v1687_v40 = vsel %vm1161_vm0, %v3483_v10, -inf  ;;  %v1695_v41 = vmax.f32 %v1693_v32, %v1694_v28  ;;  %v2847_v42 = vunpack.c.l.bf16 %v4947_v29  ;;  %v3629_v25 = vld [vmem:[%s6005_s0 + $0x288] sm:$0xff]  }
  0xd9   :  { %v1684_v39 = vmax.f32 %v1682_v30, %v1683_v15  ;;  %v3484_v44 = vunpack.c.h.bf16 %v4919_v0  ;;  %v1698_v45 = vsel %vm1161_vm0, %v3100_v26, -inf  ;;  %v1700_v46 = vsel %vm1161_vm0, %v3228_v27, -inf  ;;  %v5016_v30 = vld [vmem:[%s6005_s0 + $0x388] sm:$0xff]  }
  0xda   :  { %2344 = vst.msk [vmem:[#allocation2 + $0x74] sm:$0xf] %vm2314_vm1, %v2279_v35  ;;  %v2975_v47 = vunpack.c.l.bf16 %v4954_v34  ;;  %v1697_v50 = vmax.f32 %v1695_v41, %v1696_v33  ;;  %v1706_v52 = vsel %vm1161_vm0, %v2463_v36, -inf  ;;  %v1707_v53 = vsel %vm1161_vm0, %v2591_v37, -inf }
  0xdb   :  { %v1686_v49 = vmax.f32 %v1684_v39, %v1685_v19  ;;  %v1702_v54 = vsel %vm1161_vm0, %v3356_v31, -inf  ;;  %v3103_v55 = vunpack.c.l.bf16 %v4961_v43  ;;  %v1708_v56 = vmax.f32 %v1706_v52, %v1707_v53  ;;  %v3565_v19 = vld [vmem:[%s6005_s0 + $0x88] sm:$0xff]  }
  0xdc   :  { %v1709_v57 = vsel %vm1161_vm0, %v2719_v38, -inf  ;;  %v1699_v59 = vmax.f32 %v1697_v50, %v1698_v45  ;;  %v3231_v60 = vunpack.c.l.bf16 %v4971_v48  ;;  %v1711_v62 = vsel %vm1161_vm0, %v2847_v42, -inf  ;;  %v3693_v39 = vld [vmem:[%s6005_s0 + $0x488] sm:$0xff]  }
  0xdd   :  { %v1688_v58 = vmax.f32 %v1686_v49, %v1687_v40  ;;  %v3359_v63 = vunpack.c.l.bf16 %v4976_v51  ;;  %v1710_v0 = vmax.f32 %v1708_v56, %v1709_v57  ;;  %v1713_v1 = vsel %vm1161_vm0, %v2975_v47, -inf  ;;  %v5041_v49 = vld [vmem:[%s6005_s0 + $0x788] sm:$0xff]  }
  0xde   :  { %v2464_v2 = vunpack.c.h.bf16 %v3564_v22  ;;  %v1701_v4 = vmax.f32 %v1699_v59, %v1700_v46  ;;  %v2592_v5 = vunpack.c.h.bf16 %v3596_v23  ;;  %v2720_v6 = vunpack.c.h.bf16 %v3628_v24  ;;  %v3597_v24 = vld [vmem:[%s6005_s0 + $0x188] sm:$0xff]  }
  0xdf   :  { %v2280_v3 = vpack.c.bf16 %v1688_v58, %v1688_v58  ;;  %v1704_v7 = vsel %vm1161_vm0, %v3484_v44, -inf  ;;  %v3487_v8 = vunpack.c.l.bf16 %v3820_v61  ;;  %v1712_v9 = vmax.f32 %v1710_v0, %v1711_v62  ;;  %v5029_v44 = vld [vmem:[%s6005_s0 + $0x588] sm:$0xff]  }
  0xe0   :  { %v2848_v10 = vunpack.c.h.bf16 %v4947_v29  ;;  %v1703_v11 = vmax.f32 %v1701_v4, %v1702_v54  ;;  %v1715_v12 = vsel %vm1161_vm0, %v3103_v55, -inf  ;;  %v1717_v13 = vsel %vm1161_vm0, %v3231_v60, -inf  ;;  %v5053_v62 = vld [vmem:[%s6005_s0 + $0x888] sm:$0xff]  }
  0xe1   :  { %2345 = vst.msk [vmem:[#allocation2 + $0x78] sm:$0xf] %vm2314_vm1, %v2280_v3  ;;  %v2976_v14 = vunpack.c.h.bf16 %v4954_v34  ;;  %v1714_v15 = vmax.f32 %v1712_v9, %v1713_v1  ;;  %v1723_v16 = vsel %vm1161_vm0, %v2464_v2, -inf  ;;  %v1724_v17 = vsel %vm1161_vm0, %v2592_v5, -inf }
  0xe2   :  { %v1726_v18 = vsel %vm1161_vm0, %v2720_v6, -inf  ;;  %v1705_v20 = vmax.f32 %v1703_v11, %v1704_v7  ;;  %v1719_v21 = vsel %vm1161_vm0, %v3359_v63, -inf  ;;  %v3104_v22 = vunpack.c.h.bf16 %v4961_v43 }
  0xe3   :  { %v1725_v23 = vmax.f32 %v1723_v16, %v1724_v17  ;;  %v1716_v26 = vmax.f32 %v1714_v15, %v1715_v12  ;;  %v3232_v27 = vunpack.c.h.bf16 %v4971_v48  ;;  %v3360_v28 = vunpack.c.h.bf16 %v4976_v51  ;;  %v5036_v48 = vld [vmem:[%s6005_s0 + $0x688] sm:$0xff]  }
  0xe4   :  { %v1728_v29 = vsel %vm1161_vm0, %v2848_v10, -inf  ;;  %v2281_v31 = vpack.c.bf16 %v1705_v20, %v1705_v20  ;;  %v3488_v32 = vunpack.c.h.bf16 %v3820_v61  ;;  %v2467_v34 = vunpack.c.l.bf16 %v3565_v19  ;;  %v3566_v20 = vld [vmem:[%s6005_s0 + $0x90] sm:$0xff]  }
  0xe5   :  { %v1727_v33 = vmax.f32 %v1725_v23, %v1726_v18  ;;  %v1718_v35 = vmax.f32 %v1716_v26, %v1717_v13  ;;  %v1730_v36 = vsel %vm1161_vm0, %v2976_v14, -inf  ;;  %v2595_v37 = vunpack.c.l.bf16 %v3597_v24 }
  0xe6   :  { %v2723_v38 = vunpack.c.l.bf16 %v3629_v25  ;;  %2346 = vst.msk [vmem:[#allocation2 + $0x7c] sm:$0xf] %vm2314_vm1, %v2281_v31  ;;  %v1721_v40 = vsel %vm1161_vm0, %v3487_v8, -inf  ;;  %v1732_v42 = vsel %vm1161_vm0, %v3104_v22, -inf  ;;  %v2851_v43 = vunpack.c.l.bf16 %v5016_v30  ;;  %v3630_v22 = vld [vmem:[%s6005_s0 + $0x290] sm:$0xff]  }
  0xe7   :  { %v1729_v41 = vmax.f32 %v1727_v33, %v1728_v29  ;;  %v1720_v45 = vmax.f32 %v1718_v35, %v1719_v21  ;;  %v1734_v46 = vsel %vm1161_vm0, %v3232_v27, -inf  ;;  %v1736_v47 = vsel %vm1161_vm0, %v3360_v28, -inf  ;;  %v3598_v21 = vld [vmem:[%s6005_s0 + $0x190] sm:$0xff]  }
  0xe8   :  { %v1740_v50 = vsel %vm1161_vm0, %v2467_v34, -inf  ;;  %v2979_v52 = vunpack.c.l.bf16 %v3693_v39  ;;  %v1741_v53 = vsel %vm1161_vm0, %v2595_v37, -inf  ;;  %v1743_v54 = vsel %vm1161_vm0, %v2723_v38, -inf  ;;  %v5081_v27 = vld [vmem:[%s6005_s0 + $0x390] sm:$0xff]  }
  0xe9   :  { %v1731_v51 = vmax.f32 %v1729_v41, %v1730_v36  ;;  %v1722_v55 = vmax.f32 %v1720_v45, %v1721_v40  ;;  %v1738_v56 = vsel %vm1161_vm0, %v3488_v32, -inf  ;;  %v3107_v57 = vunpack.c.l.bf16 %v5029_v44  ;;  %v5088_v32 = vld [vmem:[%s6005_s0 + $0x490] sm:$0xff]  }
  0xea   :  { %v1742_v58 = vmax.f32 %v1740_v50, %v1741_v53  ;;  %v3235_v60 = vunpack.c.l.bf16 %v5036_v48  ;;  %v3363_v61 = vunpack.c.l.bf16 %v5041_v49  ;;  %v1745_v63 = vsel %vm1161_vm0, %v2851_v43, -inf  ;;  %v5095_v41 = vld [vmem:[%s6005_s0 + $0x590] sm:$0xff]  }
  0xeb   :  { %v1733_v59 = vmax.f32 %v1731_v51, %v1732_v42  ;;  %v2282_v0 = vpack.c.bf16 %v1722_v55, %v1722_v55  ;;  %v2468_v2 = vunpack.c.h.bf16 %v3565_v19  ;;  %v2596_v3 = vunpack.c.h.bf16 %v3597_v24 }
  0xec   :  { %v1744_v1 = vmax.f32 %v1742_v58, %v1743_v54  ;;  %v1747_v5 = vsel %vm1161_vm0, %v2979_v52, -inf  ;;  %v2724_v6 = vunpack.c.h.bf16 %v3629_v25  ;;  %v2852_v7 = vunpack.c.h.bf16 %v5016_v30 }
  0xed   :  { %v1735_v4 = vmax.f32 %v1733_v59, %v1734_v46  ;;  %2347 = vst.msk [vmem:[#allocation2 + $0x80] sm:$0xf] %vm2314_vm1, %v2282_v0  ;;  %v3491_v8 = vunpack.c.l.bf16 %v5053_v62  ;;  %v1749_v10 = vsel %vm1161_vm0, %v3107_v57, -inf  ;;  %v2980_v11 = vunpack.c.h.bf16 %v3693_v39  ;;  %v5105_v46 = vld [vmem:[%s6005_s0 + $0x690] sm:$0xff]  }
  0xee   :  { %v1746_v9 = vmax.f32 %v1744_v1, %v1745_v63  ;;  %v1751_v13 = vsel %vm1161_vm0, %v3235_v60, -inf  ;;  %v1757_v14 = vsel %vm1161_vm0, %v2468_v2, -inf  ;;  %v1758_v15 = vsel %vm1161_vm0, %v2596_v3, -inf  ;;  %v3822_v59 = vld [vmem:[%s6005_s0 + $0x890] sm:$0xff]  }
  0xef   :  { %v1737_v12 = vmax.f32 %v1735_v4, %v1736_v47  ;;  %v1753_v17 = vsel %vm1161_vm0, %v3363_v61, -inf  ;;  %v1759_v18 = vmax.f32 %v1757_v14, %v1758_v15  ;;  %v1760_v19 = vsel %vm1161_vm0, %v2724_v6, -inf }
  0xf0   :  { %v1748_v16 = vmax.f32 %v1746_v9, %v1747_v5  ;;  %v3108_v24 = vunpack.c.h.bf16 %v5029_v44  ;;  %v3236_v25 = vunpack.c.h.bf16 %v5036_v48  ;;  %v1762_v26 = vsel %vm1161_vm0, %v2852_v7, -inf }
  0xf1   :  { %v1739_v23 = vmax.f32 %v1737_v12, %v1738_v56  ;;  %v3364_v29 = vunpack.c.h.bf16 %v5041_v49  ;;  %v1761_v30 = vmax.f32 %v1759_v18, %v1760_v19  ;;  %v1764_v31 = vsel %vm1161_vm0, %v2980_v11, -inf  ;;  %v5110_v49 = vld [vmem:[%s6005_s0 + $0x790] sm:$0xff]  }
  0xf2   :  { %v1750_v28 = vmax.f32 %v1748_v16, %v1749_v10  ;;  %v2471_v34 = vunpack.c.l.bf16 %v3566_v20  ;;  %v2599_v35 = vunpack.c.l.bf16 %v3598_v21  ;;  %v2727_v36 = vunpack.c.l.bf16 %v3630_v22 }
  0xf3   :  { %v2283_v33 = vpack.c.bf16 %v1739_v23, %v1739_v23  ;;  %v1755_v38 = vsel %vm1161_vm0, %v3491_v8, -inf  ;;  %v1763_v39 = vmax.f32 %v1761_v30, %v1762_v26  ;;  %v2855_v40 = vunpack.c.l.bf16 %v5081_v27  ;;  %v3631_v23 = vld [vmem:[%s6005_s0 + $0x298] sm:$0xff]  }
  0xf4   :  { %v1752_v37 = vmax.f32 %v1750_v28, %v1751_v13  ;;  %v3492_v42 = vunpack.c.h.bf16 %v5053_v62  ;;  %v1766_v43 = vsel %vm1161_vm0, %v3108_v24, -inf  ;;  %v1768_v44 = vsel %vm1161_vm0, %v3236_v25, -inf  ;;  %v5150_v28 = vld [vmem:[%s6005_s0 + $0x398] sm:$0xff]  }
  0xf5   :  { %2348 = vst.msk [vmem:[#allocation2 + $0x84] sm:$0xf] %vm2314_vm1, %v2283_v33  ;;  %v2983_v45 = vunpack.c.l.bf16 %v5088_v32  ;;  %v1765_v48 = vmax.f32 %v1763_v39, %v1764_v31  ;;  %v1774_v50 = vsel %vm1161_vm0, %v2471_v34, -inf  ;;  %v1775_v51 = vsel %vm1161_vm0, %v2599_v35, -inf }
  0xf6   :  { %v1754_v47 = vmax.f32 %v1752_v37, %v1753_v17  ;;  %v1770_v52 = vsel %vm1161_vm0, %v3364_v29, -inf  ;;  %v3111_v53 = vunpack.c.l.bf16 %v5095_v41  ;;  %v1776_v54 = vmax.f32 %v1774_v50, %v1775_v51  ;;  %v3567_v17 = vld [vmem:[%s6005_s0 + $0x98] sm:$0xff]  }
  0xf7   :  { %v1777_v55 = vsel %vm1161_vm0, %v2727_v36, -inf  ;;  %v1767_v57 = vmax.f32 %v1765_v48, %v1766_v43  ;;  %v3239_v58 = vunpack.c.l.bf16 %v5105_v46  ;;  %v1779_v60 = vsel %vm1161_vm0, %v2855_v40, -inf  ;;  %v3695_v37 = vld [vmem:[%s6005_s0 + $0x498] sm:$0xff]  }
  0xf8   :  { %v1756_v56 = vmax.f32 %v1754_v47, %v1755_v38  ;;  %v3367_v61 = vunpack.c.l.bf16 %v5110_v49  ;;  %v1778_v62 = vmax.f32 %v1776_v54, %v1777_v55  ;;  %v1781_v63 = vsel %vm1161_vm0, %v2983_v45, -inf  ;;  %v5175_v47 = vld [vmem:[%s6005_s0 + $0x798] sm:$0xff]  }
  0xf9   :  { %v2472_v0 = vunpack.c.h.bf16 %v3566_v20  ;;  %v1769_v2 = vmax.f32 %v1767_v57, %v1768_v44  ;;  %v2600_v3 = vunpack.c.h.bf16 %v3598_v21  ;;  %v2728_v4 = vunpack.c.h.bf16 %v3630_v22  ;;  %v3599_v22 = vld [vmem:[%s6005_s0 + $0x198] sm:$0xff]  }
  0xfa   :  { %v2284_v1 = vpack.c.bf16 %v1756_v56, %v1756_v56  ;;  %v1772_v5 = vsel %vm1161_vm0, %v3492_v42, -inf  ;;  %v3495_v6 = vunpack.c.l.bf16 %v3822_v59  ;;  %v1780_v7 = vmax.f32 %v1778_v62, %v1779_v60  ;;  %v5163_v42 = vld [vmem:[%s6005_s0 + $0x598] sm:$0xff]  }
  0xfb   :  { %v2856_v8 = vunpack.c.h.bf16 %v5081_v27  ;;  %v1771_v9 = vmax.f32 %v1769_v2, %v1770_v52  ;;  %v1783_v10 = vsel %vm1161_vm0, %v3111_v53, -inf  ;;  %v1785_v11 = vsel %vm1161_vm0, %v3239_v58, -inf  ;;  %v5187_v60 = vld [vmem:[%s6005_s0 + $0x898] sm:$0xff]  }
  0xfc   :  { %2349 = vst.msk [vmem:[#allocation2 + $0x88] sm:$0xf] %vm2314_vm1, %v2284_v1  ;;  %v2984_v12 = vunpack.c.h.bf16 %v5088_v32  ;;  %v1782_v13 = vmax.f32 %v1780_v7, %v1781_v63  ;;  %v1791_v14 = vsel %vm1161_vm0, %v2472_v0, -inf  ;;  %v1792_v15 = vsel %vm1161_vm0, %v2600_v3, -inf }
  0xfd   :  { %v1794_v16 = vsel %vm1161_vm0, %v2728_v4, -inf  ;;  %v1773_v18 = vmax.f32 %v1771_v9, %v1772_v5  ;;  %v1787_v19 = vsel %vm1161_vm0, %v3367_v61, -inf  ;;  %v3112_v20 = vunpack.c.h.bf16 %v5095_v41 }
  0xfe   :  { %v1793_v21 = vmax.f32 %v1791_v14, %v1792_v15  ;;  %v1784_v24 = vmax.f32 %v1782_v13, %v1783_v10  ;;  %v3240_v25 = vunpack.c.h.bf16 %v5105_v46  ;;  %v3368_v26 = vunpack.c.h.bf16 %v5110_v49  ;;  %v5170_v46 = vld [vmem:[%s6005_s0 + $0x698] sm:$0xff]  }
  0xff   :  { %v1796_v27 = vsel %vm1161_vm0, %v2856_v8, -inf  ;;  %v2285_v29 = vpack.c.bf16 %v1773_v18, %v1773_v18  ;;  %v3496_v30 = vunpack.c.h.bf16 %v3822_v59  ;;  %v2475_v32 = vunpack.c.l.bf16 %v3567_v17  ;;  %v3568_v18 = vld [vmem:[%s6005_s0 + $0xa0] sm:$0xff]  }
 0x100   :  { %v1795_v31 = vmax.f32 %v1793_v21, %v1794_v16  ;;  %v1786_v33 = vmax.f32 %v1784_v24, %v1785_v11  ;;  %v1798_v34 = vsel %vm1161_vm0, %v2984_v12, -inf  ;;  %v2603_v35 = vunpack.c.l.bf16 %v3599_v22 }
 0x101   :  { %v2731_v36 = vunpack.c.l.bf16 %v3631_v23  ;;  %2350 = vst.msk [vmem:[#allocation2 + $0x8c] sm:$0xf] %vm2314_vm1, %v2285_v29  ;;  %v1789_v38 = vsel %vm1161_vm0, %v3495_v6, -inf  ;;  %v1800_v40 = vsel %vm1161_vm0, %v3112_v20, -inf  ;;  %v2859_v41 = vunpack.c.l.bf16 %v5150_v28  ;;  %v3632_v20 = vld [vmem:[%s6005_s0 + $0x2a0] sm:$0xff]  }
 0x102   :  { %v1797_v39 = vmax.f32 %v1795_v31, %v1796_v27  ;;  %v1788_v43 = vmax.f32 %v1786_v33, %v1787_v19  ;;  %v1802_v44 = vsel %vm1161_vm0, %v3240_v25, -inf  ;;  %v1804_v45 = vsel %vm1161_vm0, %v3368_v26, -inf  ;;  %v3600_v19 = vld [vmem:[%s6005_s0 + $0x1a0] sm:$0xff]  }
 0x103   :  { %v1808_v48 = vsel %vm1161_vm0, %v2475_v32, -inf  ;;  %v2987_v50 = vunpack.c.l.bf16 %v3695_v37  ;;  %v1809_v51 = vsel %vm1161_vm0, %v2603_v35, -inf  ;;  %v1811_v52 = vsel %vm1161_vm0, %v2731_v36, -inf  ;;  %v5215_v25 = vld [vmem:[%s6005_s0 + $0x3a0] sm:$0xff]  }
 0x104   :  { %v1799_v49 = vmax.f32 %v1797_v39, %v1798_v34  ;;  %v1790_v53 = vmax.f32 %v1788_v43, %v1789_v38  ;;  %v1806_v54 = vsel %vm1161_vm0, %v3496_v30, -inf  ;;  %v3115_v55 = vunpack.c.l.bf16 %v5163_v42  ;;  %v5222_v30 = vld [vmem:[%s6005_s0 + $0x4a0] sm:$0xff]  }
 0x105   :  { %v1810_v56 = vmax.f32 %v1808_v48, %v1809_v51  ;;  %v3243_v58 = vunpack.c.l.bf16 %v5170_v46  ;;  %v3371_v59 = vunpack.c.l.bf16 %v5175_v47  ;;  %v1813_v61 = vsel %vm1161_vm0, %v2859_v41, -inf  ;;  %v5229_v39 = vld [vmem:[%s6005_s0 + $0x5a0] sm:$0xff]  }
 0x106   :  { %v1801_v57 = vmax.f32 %v1799_v49, %v1800_v40  ;;  %v2286_v62 = vpack.c.bf16 %v1790_v53, %v1790_v53  ;;  %v2476_v0 = vunpack.c.h.bf16 %v3567_v17  ;;  %v2604_v1 = vunpack.c.h.bf16 %v3599_v22 }
 0x107   :  { %v1812_v63 = vmax.f32 %v1810_v56, %v1811_v52  ;;  %v1815_v3 = vsel %vm1161_vm0, %v2987_v50, -inf  ;;  %v2732_v4 = vunpack.c.h.bf16 %v3631_v23  ;;  %v2860_v5 = vunpack.c.h.bf16 %v5150_v28 }
 0x108   :  { %v1803_v2 = vmax.f32 %v1801_v57, %v1802_v44  ;;  %2351 = vst.msk [vmem:[#allocation2 + $0x90] sm:$0xf] %vm2314_vm1, %v2286_v62  ;;  %v3499_v6 = vunpack.c.l.bf16 %v5187_v60  ;;  %v1817_v8 = vsel %vm1161_vm0, %v3115_v55, -inf  ;;  %v2988_v9 = vunpack.c.h.bf16 %v3695_v37  ;;  %v5239_v44 = vld [vmem:[%s6005_s0 + $0x6a0] sm:$0xff]  }
 0x109   :  { %v1814_v7 = vmax.f32 %v1812_v63, %v1813_v61  ;;  %v1819_v11 = vsel %vm1161_vm0, %v3243_v58, -inf  ;;  %v1825_v12 = vsel %vm1161_vm0, %v2476_v0, -inf  ;;  %v1826_v13 = vsel %vm1161_vm0, %v2604_v1, -inf  ;;  %v3824_v57 = vld [vmem:[%s6005_s0 + $0x8a0] sm:$0xff]  }
 0x10a   :  { %v1805_v10 = vmax.f32 %v1803_v2, %v1804_v45  ;;  %v1821_v15 = vsel %vm1161_vm0, %v3371_v59, -inf  ;;  %v1827_v16 = vmax.f32 %v1825_v12, %v1826_v13  ;;  %v1828_v17 = vsel %vm1161_vm0, %v2732_v4, -inf }
 0x10b   :  { %v1816_v14 = vmax.f32 %v1814_v7, %v1815_v3  ;;  %v3116_v22 = vunpack.c.h.bf16 %v5163_v42  ;;  %v3244_v23 = vunpack.c.h.bf16 %v5170_v46  ;;  %v1830_v24 = vsel %vm1161_vm0, %v2860_v5, -inf }
 0x10c   :  { %v1807_v21 = vmax.f32 %v1805_v10, %v1806_v54  ;;  %v3372_v27 = vunpack.c.h.bf16 %v5175_v47  ;;  %v1829_v28 = vmax.f32 %v1827_v16, %v1828_v17  ;;  %v1832_v29 = vsel %vm1161_vm0, %v2988_v9, -inf  ;;  %v5244_v47 = vld [vmem:[%s6005_s0 + $0x7a0] sm:$0xff]  }
 0x10d   :  { %v1818_v26 = vmax.f32 %v1816_v14, %v1817_v8  ;;  %v2479_v32 = vunpack.c.l.bf16 %v3568_v18  ;;  %v2607_v33 = vunpack.c.l.bf16 %v3600_v19  ;;  %v2735_v34 = vunpack.c.l.bf16 %v3632_v20 }
 0x10e   :  { %v2287_v31 = vpack.c.bf16 %v1807_v21, %v1807_v21  ;;  %v1823_v36 = vsel %vm1161_vm0, %v3499_v6, -inf  ;;  %v1831_v37 = vmax.f32 %v1829_v28, %v1830_v24  ;;  %v2863_v38 = vunpack.c.l.bf16 %v5215_v25  ;;  %v3633_v21 = vld [vmem:[%s6005_s0 + $0x2a8] sm:$0xff]  }
 0x10f   :  { %v1820_v35 = vmax.f32 %v1818_v26, %v1819_v11  ;;  %v3500_v40 = vunpack.c.h.bf16 %v5187_v60  ;;  %v1834_v41 = vsel %vm1161_vm0, %v3116_v22, -inf  ;;  %v1836_v42 = vsel %vm1161_vm0, %v3244_v23, -inf  ;;  %v5284_v26 = vld [vmem:[%s6005_s0 + $0x3a8] sm:$0xff]  }
 0x110   :  { %2352 = vst.msk [vmem:[#allocation2 + $0x94] sm:$0xf] %vm2314_vm1, %v2287_v31  ;;  %v2991_v43 = vunpack.c.l.bf16 %v5222_v30  ;;  %v1833_v46 = vmax.f32 %v1831_v37, %v1832_v29  ;;  %v1842_v48 = vsel %vm1161_vm0, %v2479_v32, -inf  ;;  %v1843_v49 = vsel %vm1161_vm0, %v2607_v33, -inf }
 0x111   :  { %v1822_v45 = vmax.f32 %v1820_v35, %v1821_v15  ;;  %v1838_v50 = vsel %vm1161_vm0, %v3372_v27, -inf  ;;  %v3119_v51 = vunpack.c.l.bf16 %v5229_v39  ;;  %v1844_v52 = vmax.f32 %v1842_v48, %v1843_v49  ;;  %v3569_v15 = vld [vmem:[%s6005_s0 + $0xa8] sm:$0xff]  }
 0x112   :  { %v1845_v53 = vsel %vm1161_vm0, %v2735_v34, -inf  ;;  %v1835_v55 = vmax.f32 %v1833_v46, %v1834_v41  ;;  %v3247_v56 = vunpack.c.l.bf16 %v5239_v44  ;;  %v1847_v58 = vsel %vm1161_vm0, %v2863_v38, -inf  ;;  %v3697_v35 = vld [vmem:[%s6005_s0 + $0x4a8] sm:$0xff]  }
 0x113   :  { %v1824_v54 = vmax.f32 %v1822_v45, %v1823_v36  ;;  %v3375_v59 = vunpack.c.l.bf16 %v5244_v47  ;;  %v1846_v60 = vmax.f32 %v1844_v52, %v1845_v53  ;;  %v1849_v61 = vsel %vm1161_vm0, %v2991_v43, -inf  ;;  %v5309_v45 = vld [vmem:[%s6005_s0 + $0x7a8] sm:$0xff]  }
 0x114   :  { %v2480_v62 = vunpack.c.h.bf16 %v3568_v18  ;;  %v1837_v0 = vmax.f32 %v1835_v55, %v1836_v42  ;;  %v2608_v1 = vunpack.c.h.bf16 %v3600_v19  ;;  %v2736_v2 = vunpack.c.h.bf16 %v3632_v20  ;;  %v3601_v20 = vld [vmem:[%s6005_s0 + $0x1a8] sm:$0xff]  }
 0x115   :  { %v2288_v63 = vpack.c.bf16 %v1824_v54, %v1824_v54  ;;  %v1840_v3 = vsel %vm1161_vm0, %v3500_v40, -inf  ;;  %v3503_v4 = vunpack.c.l.bf16 %v3824_v57  ;;  %v1848_v5 = vmax.f32 %v1846_v60, %v1847_v58  ;;  %v5297_v40 = vld [vmem:[%s6005_s0 + $0x5a8] sm:$0xff]  }
 0x116   :  { %v2864_v6 = vunpack.c.h.bf16 %v5215_v25  ;;  %v1839_v7 = vmax.f32 %v1837_v0, %v1838_v50  ;;  %v1851_v8 = vsel %vm1161_vm0, %v3119_v51, -inf  ;;  %v1853_v9 = vsel %vm1161_vm0, %v3247_v56, -inf  ;;  %v5321_v58 = vld [vmem:[%s6005_s0 + $0x8a8] sm:$0xff]  }
 0x117   :  { %2353 = vst.msk [vmem:[#allocation2 + $0x98] sm:$0xf] %vm2314_vm1, %v2288_v63  ;;  %v2992_v10 = vunpack.c.h.bf16 %v5222_v30  ;;  %v1850_v11 = vmax.f32 %v1848_v5, %v1849_v61  ;;  %v1859_v12 = vsel %vm1161_vm0, %v2480_v62, -inf  ;;  %v1860_v13 = vsel %vm1161_vm0, %v2608_v1, -inf }
 0x118   :  { %v1862_v14 = vsel %vm1161_vm0, %v2736_v2, -inf  ;;  %v1841_v16 = vmax.f32 %v1839_v7, %v1840_v3  ;;  %v1855_v17 = vsel %vm1161_vm0, %v3375_v59, -inf  ;;  %v3120_v18 = vunpack.c.h.bf16 %v5229_v39 }
 0x119   :  { %v1861_v19 = vmax.f32 %v1859_v12, %v1860_v13  ;;  %v1852_v22 = vmax.f32 %v1850_v11, %v1851_v8  ;;  %v3248_v23 = vunpack.c.h.bf16 %v5239_v44  ;;  %v3376_v24 = vunpack.c.h.bf16 %v5244_v47  ;;  %v5304_v44 = vld [vmem:[%s6005_s0 + $0x6a8] sm:$0xff]  }
 0x11a   :  { %v1864_v25 = vsel %vm1161_vm0, %v2864_v6, -inf  ;;  %v2289_v27 = vpack.c.bf16 %v1841_v16, %v1841_v16  ;;  %v3504_v28 = vunpack.c.h.bf16 %v3824_v57  ;;  %v2483_v30 = vunpack.c.l.bf16 %v3569_v15  ;;  %v3570_v16 = vld [vmem:[%s6005_s0 + $0xb0] sm:$0xff]  }
 0x11b   :  { %v1863_v29 = vmax.f32 %v1861_v19, %v1862_v14  ;;  %v1854_v31 = vmax.f32 %v1852_v22, %v1853_v9  ;;  %v1866_v32 = vsel %vm1161_vm0, %v2992_v10, -inf  ;;  %v2611_v33 = vunpack.c.l.bf16 %v3601_v20 }
 0x11c   :  { %v2739_v34 = vunpack.c.l.bf16 %v3633_v21  ;;  %2354 = vst.msk [vmem:[#allocation2 + $0x9c] sm:$0xf] %vm2314_vm1, %v2289_v27  ;;  %v1857_v36 = vsel %vm1161_vm0, %v3503_v4, -inf  ;;  %v1868_v38 = vsel %vm1161_vm0, %v3120_v18, -inf  ;;  %v2867_v39 = vunpack.c.l.bf16 %v5284_v26  ;;  %v3634_v18 = vld [vmem:[%s6005_s0 + $0x2b0] sm:$0xff]  }
 0x11d   :  { %v1865_v37 = vmax.f32 %v1863_v29, %v1864_v25  ;;  %v1856_v41 = vmax.f32 %v1854_v31, %v1855_v17  ;;  %v1870_v42 = vsel %vm1161_vm0, %v3248_v23, -inf  ;;  %v1872_v43 = vsel %vm1161_vm0, %v3376_v24, -inf  ;;  %v3602_v17 = vld [vmem:[%s6005_s0 + $0x1b0] sm:$0xff]  }
 0x11e   :  { %v1876_v46 = vsel %vm1161_vm0, %v2483_v30, -inf  ;;  %v2995_v48 = vunpack.c.l.bf16 %v3697_v35  ;;  %v1877_v49 = vsel %vm1161_vm0, %v2611_v33, -inf  ;;  %v1879_v50 = vsel %vm1161_vm0, %v2739_v34, -inf  ;;  %v5349_v23 = vld [vmem:[%s6005_s0 + $0x3b0] sm:$0xff]  }
 0x11f   :  { %v1867_v47 = vmax.f32 %v1865_v37, %v1866_v32  ;;  %v1858_v51 = vmax.f32 %v1856_v41, %v1857_v36  ;;  %v1874_v52 = vsel %vm1161_vm0, %v3504_v28, -inf  ;;  %v3123_v53 = vunpack.c.l.bf16 %v5297_v40  ;;  %v5356_v28 = vld [vmem:[%s6005_s0 + $0x4b0] sm:$0xff]  }
 0x120   :  { %v1878_v54 = vmax.f32 %v1876_v46, %v1877_v49  ;;  %v3251_v56 = vunpack.c.l.bf16 %v5304_v44  ;;  %v3379_v57 = vunpack.c.l.bf16 %v5309_v45  ;;  %v1881_v59 = vsel %vm1161_vm0, %v2867_v39, -inf  ;;  %v5363_v37 = vld [vmem:[%s6005_s0 + $0x5b0] sm:$0xff]  }
 0x121   :  { %v1869_v55 = vmax.f32 %v1867_v47, %v1868_v38  ;;  %v2290_v60 = vpack.c.bf16 %v1858_v51, %v1858_v51  ;;  %v2484_v62 = vunpack.c.h.bf16 %v3569_v15  ;;  %v2612_v63 = vunpack.c.h.bf16 %v3601_v20 }
 0x122   :  { %v1880_v61 = vmax.f32 %v1878_v54, %v1879_v50  ;;  %v1883_v1 = vsel %vm1161_vm0, %v2995_v48, -inf  ;;  %v2740_v2 = vunpack.c.h.bf16 %v3633_v21  ;;  %v2868_v3 = vunpack.c.h.bf16 %v5284_v26 }
 0x123   :  { %v1871_v0 = vmax.f32 %v1869_v55, %v1870_v42  ;;  %2355 = vst.msk [vmem:[#allocation2 + $0xa0] sm:$0xf] %vm2314_vm1, %v2290_v60  ;;  %v3507_v4 = vunpack.c.l.bf16 %v5321_v58  ;;  %v1885_v6 = vsel %vm1161_vm0, %v3123_v53, -inf  ;;  %v2996_v7 = vunpack.c.h.bf16 %v3697_v35  ;;  %v5373_v42 = vld [vmem:[%s6005_s0 + $0x6b0] sm:$0xff]  }
 0x124   :  { %v1882_v5 = vmax.f32 %v1880_v61, %v1881_v59  ;;  %v1887_v9 = vsel %vm1161_vm0, %v3251_v56, -inf  ;;  %v1893_v10 = vsel %vm1161_vm0, %v2484_v62, -inf  ;;  %v1894_v11 = vsel %vm1161_vm0, %v2612_v63, -inf  ;;  %v3826_v55 = vld [vmem:[%s6005_s0 + $0x8b0] sm:$0xff]  }
 0x125   :  { %v1873_v8 = vmax.f32 %v1871_v0, %v1872_v43  ;;  %v1889_v13 = vsel %vm1161_vm0, %v3379_v57, -inf  ;;  %v1895_v14 = vmax.f32 %v1893_v10, %v1894_v11  ;;  %v1896_v15 = vsel %vm1161_vm0, %v2740_v2, -inf }
 0x126   :  { %v1884_v12 = vmax.f32 %v1882_v5, %v1883_v1  ;;  %v3124_v20 = vunpack.c.h.bf16 %v5297_v40  ;;  %v3252_v21 = vunpack.c.h.bf16 %v5304_v44  ;;  %v1898_v22 = vsel %vm1161_vm0, %v2868_v3, -inf }
 0x127   :  { %v1875_v19 = vmax.f32 %v1873_v8, %v1874_v52  ;;  %v3380_v25 = vunpack.c.h.bf16 %v5309_v45  ;;  %v1897_v26 = vmax.f32 %v1895_v14, %v1896_v15  ;;  %v1900_v27 = vsel %vm1161_vm0, %v2996_v7, -inf  ;;  %v5378_v45 = vld [vmem:[%s6005_s0 + $0x7b0] sm:$0xff]  }
 0x128   :  { %v1886_v24 = vmax.f32 %v1884_v12, %v1885_v6  ;;  %v2487_v30 = vunpack.c.l.bf16 %v3570_v16  ;;  %v2615_v31 = vunpack.c.l.bf16 %v3602_v17  ;;  %v2743_v32 = vunpack.c.l.bf16 %v3634_v18 }
 0x129   :  { %v2291_v29 = vpack.c.bf16 %v1875_v19, %v1875_v19  ;;  %v1891_v34 = vsel %vm1161_vm0, %v3507_v4, -inf  ;;  %v1899_v35 = vmax.f32 %v1897_v26, %v1898_v22  ;;  %v2871_v36 = vunpack.c.l.bf16 %v5349_v23  ;;  %v3635_v19 = vld [vmem:[%s6005_s0 + $0x2b8] sm:$0xff]  }
 0x12a   :  { %v1888_v33 = vmax.f32 %v1886_v24, %v1887_v9  ;;  %v3508_v38 = vunpack.c.h.bf16 %v5321_v58  ;;  %v1902_v39 = vsel %vm1161_vm0, %v3124_v20, -inf  ;;  %v1904_v40 = vsel %vm1161_vm0, %v3252_v21, -inf  ;;  %v5418_v24 = vld [vmem:[%s6005_s0 + $0x3b8] sm:$0xff]  }
 0x12b   :  { %2356 = vst.msk [vmem:[#allocation2 + $0xa4] sm:$0xf] %vm2314_vm1, %v2291_v29  ;;  %v2999_v41 = vunpack.c.l.bf16 %v5356_v28  ;;  %v1901_v44 = vmax.f32 %v1899_v35, %v1900_v27  ;;  %v1910_v46 = vsel %vm1161_vm0, %v2487_v30, -inf  ;;  %v1911_v47 = vsel %vm1161_vm0, %v2615_v31, -inf }
 0x12c   :  { %v1890_v43 = vmax.f32 %v1888_v33, %v1889_v13  ;;  %v1906_v48 = vsel %vm1161_vm0, %v3380_v25, -inf  ;;  %v3127_v49 = vunpack.c.l.bf16 %v5363_v37  ;;  %v1912_v50 = vmax.f32 %v1910_v46, %v1911_v47  ;;  %v3571_v13 = vld [vmem:[%s6005_s0 + $0xb8] sm:$0xff]  }
 0x12d   :  { %v1913_v51 = vsel %vm1161_vm0, %v2743_v32, -inf  ;;  %v1903_v53 = vmax.f32 %v1901_v44, %v1902_v39  ;;  %v3255_v54 = vunpack.c.l.bf16 %v5373_v42  ;;  %v1915_v56 = vsel %vm1161_vm0, %v2871_v36, -inf  ;;  %v3699_v33 = vld [vmem:[%s6005_s0 + $0x4b8] sm:$0xff]  }
 0x12e   :  { %v1892_v52 = vmax.f32 %v1890_v43, %v1891_v34  ;;  %v3383_v57 = vunpack.c.l.bf16 %v5378_v45  ;;  %v1914_v58 = vmax.f32 %v1912_v50, %v1913_v51  ;;  %v1917_v59 = vsel %vm1161_vm0, %v2999_v41, -inf  ;;  %v5443_v43 = vld [vmem:[%s6005_s0 + $0x7b8] sm:$0xff]  }
 0x12f   :  { %v2488_v60 = vunpack.c.h.bf16 %v3570_v16  ;;  %v1905_v62 = vmax.f32 %v1903_v53, %v1904_v40  ;;  %v2616_v63 = vunpack.c.h.bf16 %v3602_v17  ;;  %v2744_v0 = vunpack.c.h.bf16 %v3634_v18  ;;  %v3603_v18 = vld [vmem:[%s6005_s0 + $0x1b8] sm:$0xff]  }
 0x130   :  { %v2292_v61 = vpack.c.bf16 %v1892_v52, %v1892_v52  ;;  %v1908_v1 = vsel %vm1161_vm0, %v3508_v38, -inf  ;;  %v3511_v2 = vunpack.c.l.bf16 %v3826_v55  ;;  %v1916_v3 = vmax.f32 %v1914_v58, %v1915_v56  ;;  %v5431_v38 = vld [vmem:[%s6005_s0 + $0x5b8] sm:$0xff]  }
 0x131   :  { %v2872_v4 = vunpack.c.h.bf16 %v5349_v23  ;;  %v1907_v5 = vmax.f32 %v1905_v62, %v1906_v48  ;;  %v1919_v6 = vsel %vm1161_vm0, %v3127_v49, -inf  ;;  %v1921_v7 = vsel %vm1161_vm0, %v3255_v54, -inf  ;;  %v5455_v56 = vld [vmem:[%s6005_s0 + $0x8b8] sm:$0xff]  }
 0x132   :  { %2357 = vst.msk [vmem:[#allocation2 + $0xa8] sm:$0xf] %vm2314_vm1, %v2292_v61  ;;  %v3000_v8 = vunpack.c.h.bf16 %v5356_v28  ;;  %v1918_v9 = vmax.f32 %v1916_v3, %v1917_v59  ;;  %v1927_v10 = vsel %vm1161_vm0, %v2488_v60, -inf  ;;  %v1928_v11 = vsel %vm1161_vm0, %v2616_v63, -inf }
 0x133   :  { %v1930_v12 = vsel %vm1161_vm0, %v2744_v0, -inf  ;;  %v1909_v14 = vmax.f32 %v1907_v5, %v1908_v1  ;;  %v1923_v15 = vsel %vm1161_vm0, %v3383_v57, -inf  ;;  %v3128_v16 = vunpack.c.h.bf16 %v5363_v37 }
 0x134   :  { %v1929_v17 = vmax.f32 %v1927_v10, %v1928_v11  ;;  %v1920_v20 = vmax.f32 %v1918_v9, %v1919_v6  ;;  %v3256_v21 = vunpack.c.h.bf16 %v5373_v42  ;;  %v3384_v22 = vunpack.c.h.bf16 %v5378_v45  ;;  %v5438_v42 = vld [vmem:[%s6005_s0 + $0x6b8] sm:$0xff]  }
 0x135   :  { %v1932_v23 = vsel %vm1161_vm0, %v2872_v4, -inf  ;;  %v2293_v25 = vpack.c.bf16 %v1909_v14, %v1909_v14  ;;  %v3512_v26 = vunpack.c.h.bf16 %v3826_v55  ;;  %v2491_v28 = vunpack.c.l.bf16 %v3571_v13  ;;  %v3572_v14 = vld [vmem:[%s6005_s0 + $0xc0] sm:$0xff]  }
 0x136   :  { %v1931_v27 = vmax.f32 %v1929_v17, %v1930_v12  ;;  %v1922_v29 = vmax.f32 %v1920_v20, %v1921_v7  ;;  %v1934_v30 = vsel %vm1161_vm0, %v3000_v8, -inf  ;;  %v2619_v31 = vunpack.c.l.bf16 %v3603_v18 }
 0x137   :  { %v2747_v32 = vunpack.c.l.bf16 %v3635_v19  ;;  %2358 = vst.msk [vmem:[#allocation2 + $0xac] sm:$0xf] %vm2314_vm1, %v2293_v25  ;;  %v1925_v34 = vsel %vm1161_vm0, %v3511_v2, -inf  ;;  %v1936_v36 = vsel %vm1161_vm0, %v3128_v16, -inf  ;;  %v2875_v37 = vunpack.c.l.bf16 %v5418_v24  ;;  %v3636_v16 = vld [vmem:[%s6005_s0 + $0x2c0] sm:$0xff]  }
 0x138   :  { %v1933_v35 = vmax.f32 %v1931_v27, %v1932_v23  ;;  %v1924_v39 = vmax.f32 %v1922_v29, %v1923_v15  ;;  %v1938_v40 = vsel %vm1161_vm0, %v3256_v21, -inf  ;;  %v1940_v41 = vsel %vm1161_vm0, %v3384_v22, -inf  ;;  %v3604_v15 = vld [vmem:[%s6005_s0 + $0x1c0] sm:$0xff]  }
 0x139   :  { %v1944_v44 = vsel %vm1161_vm0, %v2491_v28, -inf  ;;  %v3003_v46 = vunpack.c.l.bf16 %v3699_v33  ;;  %v1945_v47 = vsel %vm1161_vm0, %v2619_v31, -inf  ;;  %v1947_v48 = vsel %vm1161_vm0, %v2747_v32, -inf  ;;  %v5483_v21 = vld [vmem:[%s6005_s0 + $0x3c0] sm:$0xff]  }
 0x13a   :  { %v1935_v45 = vmax.f32 %v1933_v35, %v1934_v30  ;;  %v1926_v49 = vmax.f32 %v1924_v39, %v1925_v34  ;;  %v1942_v50 = vsel %vm1161_vm0, %v3512_v26, -inf  ;;  %v3131_v51 = vunpack.c.l.bf16 %v5431_v38  ;;  %v5490_v26 = vld [vmem:[%s6005_s0 + $0x4c0] sm:$0xff]  }
 0x13b   :  { %v1946_v52 = vmax.f32 %v1944_v44, %v1945_v47  ;;  %v3259_v54 = vunpack.c.l.bf16 %v5438_v42  ;;  %v3387_v55 = vunpack.c.l.bf16 %v5443_v43  ;;  %v1949_v57 = vsel %vm1161_vm0, %v2875_v37, -inf  ;;  %v5497_v35 = vld [vmem:[%s6005_s0 + $0x5c0] sm:$0xff]  }
 0x13c   :  { %v1937_v53 = vmax.f32 %v1935_v45, %v1936_v36  ;;  %v2294_v58 = vpack.c.bf16 %v1926_v49, %v1926_v49  ;;  %v2492_v60 = vunpack.c.h.bf16 %v3571_v13  ;;  %v2620_v61 = vunpack.c.h.bf16 %v3603_v18 }
 0x13d   :  { %v1948_v59 = vmax.f32 %v1946_v52, %v1947_v48  ;;  %v1951_v63 = vsel %vm1161_vm0, %v3003_v46, -inf  ;;  %v2748_v0 = vunpack.c.h.bf16 %v3635_v19  ;;  %v2876_v1 = vunpack.c.h.bf16 %v5418_v24 }
 0x13e   :  { %v1939_v62 = vmax.f32 %v1937_v53, %v1938_v40  ;;  %2359 = vst.msk [vmem:[#allocation2 + $0xb0] sm:$0xf] %vm2314_vm1, %v2294_v58  ;;  %v3515_v2 = vunpack.c.l.bf16 %v5455_v56  ;;  %v1953_v4 = vsel %vm1161_vm0, %v3131_v51, -inf  ;;  %v3004_v5 = vunpack.c.h.bf16 %v3699_v33  ;;  %v5507_v40 = vld [vmem:[%s6005_s0 + $0x6c0] sm:$0xff]  }
 0x13f   :  { %v1950_v3 = vmax.f32 %v1948_v59, %v1949_v57  ;;  %v1955_v7 = vsel %vm1161_vm0, %v3259_v54, -inf  ;;  %v1961_v8 = vsel %vm1161_vm0, %v2492_v60, -inf  ;;  %v1962_v9 = vsel %vm1161_vm0, %v2620_v61, -inf  ;;  %v3828_v53 = vld [vmem:[%s6005_s0 + $0x8c0] sm:$0xff]  }
 0x140   :  { %v1941_v6 = vmax.f32 %v1939_v62, %v1940_v41  ;;  %v1957_v11 = vsel %vm1161_vm0, %v3387_v55, -inf  ;;  %v1963_v12 = vmax.f32 %v1961_v8, %v1962_v9  ;;  %v1964_v13 = vsel %vm1161_vm0, %v2748_v0, -inf }
 0x141   :  { %v1952_v10 = vmax.f32 %v1950_v3, %v1951_v63  ;;  %v3132_v18 = vunpack.c.h.bf16 %v5431_v38  ;;  %v3260_v19 = vunpack.c.h.bf16 %v5438_v42  ;;  %v1966_v20 = vsel %vm1161_vm0, %v2876_v1, -inf }
 0x142   :  { %v1943_v17 = vmax.f32 %v1941_v6, %v1942_v50  ;;  %v3388_v23 = vunpack.c.h.bf16 %v5443_v43  ;;  %v1965_v24 = vmax.f32 %v1963_v12, %v1964_v13  ;;  %v1968_v25 = vsel %vm1161_vm0, %v3004_v5, -inf  ;;  %v5512_v43 = vld [vmem:[%s6005_s0 + $0x7c0] sm:$0xff]  }
 0x143   :  { %v1954_v22 = vmax.f32 %v1952_v10, %v1953_v4  ;;  %v2495_v28 = vunpack.c.l.bf16 %v3572_v14  ;;  %v2623_v29 = vunpack.c.l.bf16 %v3604_v15  ;;  %v2751_v30 = vunpack.c.l.bf16 %v3636_v16 }
 0x144   :  { %v2295_v27 = vpack.c.bf16 %v1943_v17, %v1943_v17  ;;  %v1959_v32 = vsel %vm1161_vm0, %v3515_v2, -inf  ;;  %v1967_v33 = vmax.f32 %v1965_v24, %v1966_v20  ;;  %v2879_v34 = vunpack.c.l.bf16 %v5483_v21  ;;  %v3637_v17 = vld [vmem:[%s6005_s0 + $0x2c8] sm:$0xff]  }
 0x145   :  { %v1956_v31 = vmax.f32 %v1954_v22, %v1955_v7  ;;  %v3516_v36 = vunpack.c.h.bf16 %v5455_v56  ;;  %v1970_v37 = vsel %vm1161_vm0, %v3132_v18, -inf  ;;  %v1972_v38 = vsel %vm1161_vm0, %v3260_v19, -inf  ;;  %v5552_v22 = vld [vmem:[%s6005_s0 + $0x3c8] sm:$0xff]  }
 0x146   :  { %2360 = vst.msk [vmem:[#allocation2 + $0xb4] sm:$0xf] %vm2314_vm1, %v2295_v27  ;;  %v3007_v39 = vunpack.c.l.bf16 %v5490_v26  ;;  %v1969_v42 = vmax.f32 %v1967_v33, %v1968_v25  ;;  %v1978_v44 = vsel %vm1161_vm0, %v2495_v28, -inf  ;;  %v1979_v45 = vsel %vm1161_vm0, %v2623_v29, -inf }
 0x147   :  { %v1958_v41 = vmax.f32 %v1956_v31, %v1957_v11  ;;  %v1974_v46 = vsel %vm1161_vm0, %v3388_v23, -inf  ;;  %v3135_v47 = vunpack.c.l.bf16 %v5497_v35  ;;  %v1980_v48 = vmax.f32 %v1978_v44, %v1979_v45  ;;  %v3573_v11 = vld [vmem:[%s6005_s0 + $0xc8] sm:$0xff]  }
 0x148   :  { %v1981_v49 = vsel %vm1161_vm0, %v2751_v30, -inf  ;;  %v1971_v51 = vmax.f32 %v1969_v42, %v1970_v37  ;;  %v3263_v52 = vunpack.c.l.bf16 %v5507_v40  ;;  %v1983_v54 = vsel %vm1161_vm0, %v2879_v34, -inf  ;;  %v3701_v31 = vld [vmem:[%s6005_s0 + $0x4c8] sm:$0xff]  }
 0x149   :  { %v1960_v50 = vmax.f32 %v1958_v41, %v1959_v32  ;;  %v3391_v55 = vunpack.c.l.bf16 %v5512_v43  ;;  %v1982_v56 = vmax.f32 %v1980_v48, %v1981_v49  ;;  %v1985_v57 = vsel %vm1161_vm0, %v3007_v39, -inf  ;;  %v5577_v41 = vld [vmem:[%s6005_s0 + $0x7c8] sm:$0xff]  }
 0x14a   :  { %v2496_v58 = vunpack.c.h.bf16 %v3572_v14  ;;  %v1973_v60 = vmax.f32 %v1971_v51, %v1972_v38  ;;  %v2624_v61 = vunpack.c.h.bf16 %v3604_v15  ;;  %v2752_v62 = vunpack.c.h.bf16 %v3636_v16  ;;  %v3605_v16 = vld [vmem:[%s6005_s0 + $0x1c8] sm:$0xff]  }
 0x14b   :  { %v2296_v59 = vpack.c.bf16 %v1960_v50, %v1960_v50  ;;  %v1976_v63 = vsel %vm1161_vm0, %v3516_v36, -inf  ;;  %v3519_v0 = vunpack.c.l.bf16 %v3828_v53  ;;  %v1984_v1 = vmax.f32 %v1982_v56, %v1983_v54  ;;  %v5565_v36 = vld [vmem:[%s6005_s0 + $0x5c8] sm:$0xff]  }
 0x14c   :  { %v2880_v2 = vunpack.c.h.bf16 %v5483_v21  ;;  %v1975_v3 = vmax.f32 %v1973_v60, %v1974_v46  ;;  %v1987_v4 = vsel %vm1161_vm0, %v3135_v47, -inf  ;;  %v1989_v5 = vsel %vm1161_vm0, %v3263_v52, -inf  ;;  %v5589_v54 = vld [vmem:[%s6005_s0 + $0x8c8] sm:$0xff]  }
 0x14d   :  { %2361 = vst.msk [vmem:[#allocation2 + $0xb8] sm:$0xf] %vm2314_vm1, %v2296_v59  ;;  %v3008_v6 = vunpack.c.h.bf16 %v5490_v26  ;;  %v1986_v7 = vmax.f32 %v1984_v1, %v1985_v57  ;;  %v1995_v8 = vsel %vm1161_vm0, %v2496_v58, -inf  ;;  %v1996_v9 = vsel %vm1161_vm0, %v2624_v61, -inf }
 0x14e   :  { %v1998_v10 = vsel %vm1161_vm0, %v2752_v62, -inf  ;;  %v1977_v12 = vmax.f32 %v1975_v3, %v1976_v63  ;;  %v1991_v13 = vsel %vm1161_vm0, %v3391_v55, -inf  ;;  %v3136_v14 = vunpack.c.h.bf16 %v5497_v35 }
 0x14f   :  { %v1997_v15 = vmax.f32 %v1995_v8, %v1996_v9  ;;  %v1988_v18 = vmax.f32 %v1986_v7, %v1987_v4  ;;  %v3264_v19 = vunpack.c.h.bf16 %v5507_v40  ;;  %v3392_v20 = vunpack.c.h.bf16 %v5512_v43  ;;  %v5572_v40 = vld [vmem:[%s6005_s0 + $0x6c8] sm:$0xff]  }
 0x150   :  { %v2000_v21 = vsel %vm1161_vm0, %v2880_v2, -inf  ;;  %v2297_v23 = vpack.c.bf16 %v1977_v12, %v1977_v12  ;;  %v3520_v24 = vunpack.c.h.bf16 %v3828_v53  ;;  %v2499_v26 = vunpack.c.l.bf16 %v3573_v11  ;;  %v3574_v12 = vld [vmem:[%s6005_s0 + $0xd0] sm:$0xff]  }
 0x151   :  { %v1999_v25 = vmax.f32 %v1997_v15, %v1998_v10  ;;  %v1990_v27 = vmax.f32 %v1988_v18, %v1989_v5  ;;  %v2002_v28 = vsel %vm1161_vm0, %v3008_v6, -inf  ;;  %v2627_v29 = vunpack.c.l.bf16 %v3605_v16 }
 0x152   :  { %v2755_v30 = vunpack.c.l.bf16 %v3637_v17  ;;  %2362 = vst.msk [vmem:[#allocation2 + $0xbc] sm:$0xf] %vm2314_vm1, %v2297_v23  ;;  %v1993_v32 = vsel %vm1161_vm0, %v3519_v0, -inf  ;;  %v2004_v34 = vsel %vm1161_vm0, %v3136_v14, -inf  ;;  %v2883_v35 = vunpack.c.l.bf16 %v5552_v22  ;;  %v3638_v14 = vld [vmem:[%s6005_s0 + $0x2d0] sm:$0xff]  }
 0x153   :  { %v2001_v33 = vmax.f32 %v1999_v25, %v2000_v21  ;;  %v1992_v37 = vmax.f32 %v1990_v27, %v1991_v13  ;;  %v2006_v38 = vsel %vm1161_vm0, %v3264_v19, -inf  ;;  %v2008_v39 = vsel %vm1161_vm0, %v3392_v20, -inf  ;;  %v3606_v13 = vld [vmem:[%s6005_s0 + $0x1d0] sm:$0xff]  }
 0x154   :  { %v2012_v42 = vsel %vm1161_vm0, %v2499_v26, -inf  ;;  %v3011_v44 = vunpack.c.l.bf16 %v3701_v31  ;;  %v2013_v45 = vsel %vm1161_vm0, %v2627_v29, -inf  ;;  %v2015_v46 = vsel %vm1161_vm0, %v2755_v30, -inf  ;;  %v5617_v19 = vld [vmem:[%s6005_s0 + $0x3d0] sm:$0xff]  }
 0x155   :  { %v2003_v43 = vmax.f32 %v2001_v33, %v2002_v28  ;;  %v1994_v47 = vmax.f32 %v1992_v37, %v1993_v32  ;;  %v2010_v48 = vsel %vm1161_vm0, %v3520_v24, -inf  ;;  %v3139_v49 = vunpack.c.l.bf16 %v5565_v36  ;;  %v5624_v24 = vld [vmem:[%s6005_s0 + $0x4d0] sm:$0xff]  }
 0x156   :  { %v2014_v50 = vmax.f32 %v2012_v42, %v2013_v45  ;;  %v3267_v52 = vunpack.c.l.bf16 %v5572_v40  ;;  %v3395_v53 = vunpack.c.l.bf16 %v5577_v41  ;;  %v2017_v55 = vsel %vm1161_vm0, %v2883_v35, -inf  ;;  %v5631_v33 = vld [vmem:[%s6005_s0 + $0x5d0] sm:$0xff]  }
 0x157   :  { %v2005_v51 = vmax.f32 %v2003_v43, %v2004_v34  ;;  %v2298_v56 = vpack.c.bf16 %v1994_v47, %v1994_v47  ;;  %v2500_v58 = vunpack.c.h.bf16 %v3573_v11  ;;  %v2628_v59 = vunpack.c.h.bf16 %v3605_v16 }
 0x158   :  { %v2016_v57 = vmax.f32 %v2014_v50, %v2015_v46  ;;  %v2019_v61 = vsel %vm1161_vm0, %v3011_v44, -inf  ;;  %v2756_v62 = vunpack.c.h.bf16 %v3637_v17  ;;  %v2884_v63 = vunpack.c.h.bf16 %v5552_v22 }
 0x159   :  { %v2007_v60 = vmax.f32 %v2005_v51, %v2006_v38  ;;  %2363 = vst.msk [vmem:[#allocation2 + $0xc0] sm:$0xf] %vm2314_vm1, %v2298_v56  ;;  %v3523_v0 = vunpack.c.l.bf16 %v5589_v54  ;;  %v2021_v2 = vsel %vm1161_vm0, %v3139_v49, -inf  ;;  %v3012_v3 = vunpack.c.h.bf16 %v3701_v31  ;;  %v5641_v38 = vld [vmem:[%s6005_s0 + $0x6d0] sm:$0xff]  }
 0x15a   :  { %v2018_v1 = vmax.f32 %v2016_v57, %v2017_v55  ;;  %v2023_v5 = vsel %vm1161_vm0, %v3267_v52, -inf  ;;  %v2029_v6 = vsel %vm1161_vm0, %v2500_v58, -inf  ;;  %v2030_v7 = vsel %vm1161_vm0, %v2628_v59, -inf  ;;  %v3830_v51 = vld [vmem:[%s6005_s0 + $0x8d0] sm:$0xff]  }
 0x15b   :  { %v2009_v4 = vmax.f32 %v2007_v60, %v2008_v39  ;;  %v2025_v9 = vsel %vm1161_vm0, %v3395_v53, -inf  ;;  %v2031_v10 = vmax.f32 %v2029_v6, %v2030_v7  ;;  %v2032_v11 = vsel %vm1161_vm0, %v2756_v62, -inf }
 0x15c   :  { %v2020_v8 = vmax.f32 %v2018_v1, %v2019_v61  ;;  %v3140_v16 = vunpack.c.h.bf16 %v5565_v36  ;;  %v3268_v17 = vunpack.c.h.bf16 %v5572_v40  ;;  %v2034_v18 = vsel %vm1161_vm0, %v2884_v63, -inf }
 0x15d   :  { %v2011_v15 = vmax.f32 %v2009_v4, %v2010_v48  ;;  %v3396_v21 = vunpack.c.h.bf16 %v5577_v41  ;;  %v2033_v22 = vmax.f32 %v2031_v10, %v2032_v11  ;;  %v2036_v23 = vsel %vm1161_vm0, %v3012_v3, -inf  ;;  %v5646_v41 = vld [vmem:[%s6005_s0 + $0x7d0] sm:$0xff]  }
 0x15e   :  { %v2022_v20 = vmax.f32 %v2020_v8, %v2021_v2  ;;  %v2503_v26 = vunpack.c.l.bf16 %v3574_v12  ;;  %v2631_v27 = vunpack.c.l.bf16 %v3606_v13  ;;  %v2759_v28 = vunpack.c.l.bf16 %v3638_v14 }
 0x15f   :  { %v2299_v25 = vpack.c.bf16 %v2011_v15, %v2011_v15  ;;  %v2027_v30 = vsel %vm1161_vm0, %v3523_v0, -inf  ;;  %v2035_v31 = vmax.f32 %v2033_v22, %v2034_v18  ;;  %v2887_v32 = vunpack.c.l.bf16 %v5617_v19  ;;  %v3639_v15 = vld [vmem:[%s6005_s0 + $0x2d8] sm:$0xff]  }
 0x160   :  { %v2024_v29 = vmax.f32 %v2022_v20, %v2023_v5  ;;  %v3524_v34 = vunpack.c.h.bf16 %v5589_v54  ;;  %v2038_v35 = vsel %vm1161_vm0, %v3140_v16, -inf  ;;  %v2040_v36 = vsel %vm1161_vm0, %v3268_v17, -inf  ;;  %v5686_v20 = vld [vmem:[%s6005_s0 + $0x3d8] sm:$0xff]  }
 0x161   :  { %2364 = vst.msk [vmem:[#allocation2 + $0xc4] sm:$0xf] %vm2314_vm1, %v2299_v25  ;;  %v3015_v37 = vunpack.c.l.bf16 %v5624_v24  ;;  %v2037_v40 = vmax.f32 %v2035_v31, %v2036_v23  ;;  %v2046_v42 = vsel %vm1161_vm0, %v2503_v26, -inf  ;;  %v2047_v43 = vsel %vm1161_vm0, %v2631_v27, -inf }
 0x162   :  { %v2026_v39 = vmax.f32 %v2024_v29, %v2025_v9  ;;  %v2042_v44 = vsel %vm1161_vm0, %v3396_v21, -inf  ;;  %v3143_v45 = vunpack.c.l.bf16 %v5631_v33  ;;  %v2048_v46 = vmax.f32 %v2046_v42, %v2047_v43  ;;  %v3575_v9 = vld [vmem:[%s6005_s0 + $0xd8] sm:$0xff]  }
 0x163   :  { %v2049_v47 = vsel %vm1161_vm0, %v2759_v28, -inf  ;;  %v2039_v49 = vmax.f32 %v2037_v40, %v2038_v35  ;;  %v3271_v50 = vunpack.c.l.bf16 %v5641_v38  ;;  %v2051_v52 = vsel %vm1161_vm0, %v2887_v32, -inf  ;;  %v3703_v29 = vld [vmem:[%s6005_s0 + $0x4d8] sm:$0xff]  }
 0x164   :  { %v2028_v48 = vmax.f32 %v2026_v39, %v2027_v30  ;;  %v3399_v53 = vunpack.c.l.bf16 %v5646_v41  ;;  %v2050_v54 = vmax.f32 %v2048_v46, %v2049_v47  ;;  %v2053_v55 = vsel %vm1161_vm0, %v3015_v37, -inf  ;;  %v5711_v39 = vld [vmem:[%s6005_s0 + $0x7d8] sm:$0xff]  }
 0x165   :  { %v2504_v56 = vunpack.c.h.bf16 %v3574_v12  ;;  %v2041_v58 = vmax.f32 %v2039_v49, %v2040_v36  ;;  %v2632_v59 = vunpack.c.h.bf16 %v3606_v13  ;;  %v2760_v60 = vunpack.c.h.bf16 %v3638_v14  ;;  %v3607_v14 = vld [vmem:[%s6005_s0 + $0x1d8] sm:$0xff]  }
 0x166   :  { %v2300_v57 = vpack.c.bf16 %v2028_v48, %v2028_v48  ;;  %v2044_v61 = vsel %vm1161_vm0, %v3524_v34, -inf  ;;  %v3527_v62 = vunpack.c.l.bf16 %v3830_v51  ;;  %v2052_v63 = vmax.f32 %v2050_v54, %v2051_v52  ;;  %v5699_v34 = vld [vmem:[%s6005_s0 + $0x5d8] sm:$0xff]  }
 0x167   :  { %v2888_v0 = vunpack.c.h.bf16 %v5617_v19  ;;  %v2043_v1 = vmax.f32 %v2041_v58, %v2042_v44  ;;  %v2055_v2 = vsel %vm1161_vm0, %v3143_v45, -inf  ;;  %v2057_v3 = vsel %vm1161_vm0, %v3271_v50, -inf  ;;  %v5723_v52 = vld [vmem:[%s6005_s0 + $0x8d8] sm:$0xff]  }
 0x168   :  { %2365 = vst.msk [vmem:[#allocation2 + $0xc8] sm:$0xf] %vm2314_vm1, %v2300_v57  ;;  %v3016_v4 = vunpack.c.h.bf16 %v5624_v24  ;;  %v2054_v5 = vmax.f32 %v2052_v63, %v2053_v55  ;;  %v2063_v6 = vsel %vm1161_vm0, %v2504_v56, -inf  ;;  %v2064_v7 = vsel %vm1161_vm0, %v2632_v59, -inf }
 0x169   :  { %v2066_v8 = vsel %vm1161_vm0, %v2760_v60, -inf  ;;  %v2045_v10 = vmax.f32 %v2043_v1, %v2044_v61  ;;  %v2059_v11 = vsel %vm1161_vm0, %v3399_v53, -inf  ;;  %v3144_v12 = vunpack.c.h.bf16 %v5631_v33 }
 0x16a   :  { %v2065_v13 = vmax.f32 %v2063_v6, %v2064_v7  ;;  %v2056_v16 = vmax.f32 %v2054_v5, %v2055_v2  ;;  %v3272_v17 = vunpack.c.h.bf16 %v5641_v38  ;;  %v3400_v18 = vunpack.c.h.bf16 %v5646_v41  ;;  %v5706_v38 = vld [vmem:[%s6005_s0 + $0x6d8] sm:$0xff]  }
 0x16b   :  { %v2068_v19 = vsel %vm1161_vm0, %v2888_v0, -inf  ;;  %v2301_v21 = vpack.c.bf16 %v2045_v10, %v2045_v10  ;;  %v3528_v22 = vunpack.c.h.bf16 %v3830_v51  ;;  %v2507_v24 = vunpack.c.l.bf16 %v3575_v9  ;;  %v3576_v10 = vld [vmem:[%s6005_s0 + $0xe0] sm:$0xff]  }
 0x16c   :  { %v2067_v23 = vmax.f32 %v2065_v13, %v2066_v8  ;;  %v2058_v25 = vmax.f32 %v2056_v16, %v2057_v3  ;;  %v2070_v26 = vsel %vm1161_vm0, %v3016_v4, -inf  ;;  %v2635_v27 = vunpack.c.l.bf16 %v3607_v14 }
 0x16d   :  { %v2763_v28 = vunpack.c.l.bf16 %v3639_v15  ;;  %2366 = vst.msk [vmem:[#allocation2 + $0xcc] sm:$0xf] %vm2314_vm1, %v2301_v21  ;;  %v2061_v30 = vsel %vm1161_vm0, %v3527_v62, -inf  ;;  %v2072_v32 = vsel %vm1161_vm0, %v3144_v12, -inf  ;;  %v2891_v33 = vunpack.c.l.bf16 %v5686_v20  ;;  %v3640_v12 = vld [vmem:[%s6005_s0 + $0x2e0] sm:$0xff]  }
 0x16e   :  { %v2069_v31 = vmax.f32 %v2067_v23, %v2068_v19  ;;  %v2060_v35 = vmax.f32 %v2058_v25, %v2059_v11  ;;  %v2074_v36 = vsel %vm1161_vm0, %v3272_v17, -inf  ;;  %v2076_v37 = vsel %vm1161_vm0, %v3400_v18, -inf  ;;  %v3608_v11 = vld [vmem:[%s6005_s0 + $0x1e0] sm:$0xff]  }
 0x16f   :  { %v2080_v40 = vsel %vm1161_vm0, %v2507_v24, -inf  ;;  %v3019_v42 = vunpack.c.l.bf16 %v3703_v29  ;;  %v2081_v43 = vsel %vm1161_vm0, %v2635_v27, -inf  ;;  %v2083_v44 = vsel %vm1161_vm0, %v2763_v28, -inf  ;;  %v5751_v17 = vld [vmem:[%s6005_s0 + $0x3e0] sm:$0xff]  }
 0x170   :  { %v2071_v41 = vmax.f32 %v2069_v31, %v2070_v26  ;;  %v2062_v45 = vmax.f32 %v2060_v35, %v2061_v30  ;;  %v2078_v46 = vsel %vm1161_vm0, %v3528_v22, -inf  ;;  %v3147_v47 = vunpack.c.l.bf16 %v5699_v34  ;;  %v5758_v22 = vld [vmem:[%s6005_s0 + $0x4e0] sm:$0xff]  }
 0x171   :  { %v2082_v48 = vmax.f32 %v2080_v40, %v2081_v43  ;;  %v3275_v50 = vunpack.c.l.bf16 %v5706_v38  ;;  %v3403_v51 = vunpack.c.l.bf16 %v5711_v39  ;;  %v2085_v53 = vsel %vm1161_vm0, %v2891_v33, -inf  ;;  %v5765_v31 = vld [vmem:[%s6005_s0 + $0x5e0] sm:$0xff]  }
 0x172   :  { %v2073_v49 = vmax.f32 %v2071_v41, %v2072_v32  ;;  %v2302_v54 = vpack.c.bf16 %v2062_v45, %v2062_v45  ;;  %v2508_v56 = vunpack.c.h.bf16 %v3575_v9  ;;  %v2636_v57 = vunpack.c.h.bf16 %v3607_v14 }
 0x173   :  { %v2084_v55 = vmax.f32 %v2082_v48, %v2083_v44  ;;  %v2087_v59 = vsel %vm1161_vm0, %v3019_v42, -inf  ;;  %v2764_v60 = vunpack.c.h.bf16 %v3639_v15  ;;  %v2892_v61 = vunpack.c.h.bf16 %v5686_v20 }
 0x174   :  { %v2075_v58 = vmax.f32 %v2073_v49, %v2074_v36  ;;  %2367 = vst.msk [vmem:[#allocation2 + $0xd0] sm:$0xf] %vm2314_vm1, %v2302_v54  ;;  %v3531_v62 = vunpack.c.l.bf16 %v5723_v52  ;;  %v2089_v0 = vsel %vm1161_vm0, %v3147_v47, -inf  ;;  %v3020_v1 = vunpack.c.h.bf16 %v3703_v29  ;;  %v5775_v36 = vld [vmem:[%s6005_s0 + $0x6e0] sm:$0xff]  }
 0x175   :  { %v2086_v63 = vmax.f32 %v2084_v55, %v2085_v53  ;;  %v2091_v3 = vsel %vm1161_vm0, %v3275_v50, -inf  ;;  %v2097_v4 = vsel %vm1161_vm0, %v2508_v56, -inf  ;;  %v2098_v5 = vsel %vm1161_vm0, %v2636_v57, -inf  ;;  %v3832_v49 = vld [vmem:[%s6005_s0 + $0x8e0] sm:$0xff]  }
 0x176   :  { %v2077_v2 = vmax.f32 %v2075_v58, %v2076_v37  ;;  %v2093_v7 = vsel %vm1161_vm0, %v3403_v51, -inf  ;;  %v2099_v8 = vmax.f32 %v2097_v4, %v2098_v5  ;;  %v2100_v9 = vsel %vm1161_vm0, %v2764_v60, -inf }
 0x177   :  { %v2088_v6 = vmax.f32 %v2086_v63, %v2087_v59  ;;  %v3148_v14 = vunpack.c.h.bf16 %v5699_v34  ;;  %v3276_v15 = vunpack.c.h.bf16 %v5706_v38  ;;  %v2102_v16 = vsel %vm1161_vm0, %v2892_v61, -inf }
 0x178   :  { %v2079_v13 = vmax.f32 %v2077_v2, %v2078_v46  ;;  %v3404_v19 = vunpack.c.h.bf16 %v5711_v39  ;;  %v2101_v20 = vmax.f32 %v2099_v8, %v2100_v9  ;;  %v2104_v21 = vsel %vm1161_vm0, %v3020_v1, -inf  ;;  %v5780_v39 = vld [vmem:[%s6005_s0 + $0x7e0] sm:$0xff]  }
 0x179   :  { %v2090_v18 = vmax.f32 %v2088_v6, %v2089_v0  ;;  %v2511_v24 = vunpack.c.l.bf16 %v3576_v10  ;;  %v2639_v25 = vunpack.c.l.bf16 %v3608_v11  ;;  %v2767_v26 = vunpack.c.l.bf16 %v3640_v12 }
 0x17a   :  { %v2303_v23 = vpack.c.bf16 %v2079_v13, %v2079_v13  ;;  %v2095_v28 = vsel %vm1161_vm0, %v3531_v62, -inf  ;;  %v2103_v29 = vmax.f32 %v2101_v20, %v2102_v16  ;;  %v2895_v30 = vunpack.c.l.bf16 %v5751_v17  ;;  %v3641_v13 = vld [vmem:[%s6005_s0 + $0x2e8] sm:$0xff]  }
 0x17b   :  { %v2092_v27 = vmax.f32 %v2090_v18, %v2091_v3  ;;  %v3532_v32 = vunpack.c.h.bf16 %v5723_v52  ;;  %v2106_v33 = vsel %vm1161_vm0, %v3148_v14, -inf  ;;  %v2108_v34 = vsel %vm1161_vm0, %v3276_v15, -inf  ;;  %v5820_v18 = vld [vmem:[%s6005_s0 + $0x3e8] sm:$0xff]  }
 0x17c   :  { %2368 = vst.msk [vmem:[#allocation2 + $0xd4] sm:$0xf] %vm2314_vm1, %v2303_v23  ;;  %v3023_v35 = vunpack.c.l.bf16 %v5758_v22  ;;  %v2105_v38 = vmax.f32 %v2103_v29, %v2104_v21  ;;  %v2114_v40 = vsel %vm1161_vm0, %v2511_v24, -inf  ;;  %v2115_v41 = vsel %vm1161_vm0, %v2639_v25, -inf }
 0x17d   :  { %v2094_v37 = vmax.f32 %v2092_v27, %v2093_v7  ;;  %v2110_v42 = vsel %vm1161_vm0, %v3404_v19, -inf  ;;  %v3151_v43 = vunpack.c.l.bf16 %v5765_v31  ;;  %v2116_v44 = vmax.f32 %v2114_v40, %v2115_v41  ;;  %v3577_v7 = vld [vmem:[%s6005_s0 + $0xe8] sm:$0xff]  }
 0x17e   :  { %v2117_v45 = vsel %vm1161_vm0, %v2767_v26, -inf  ;;  %v2107_v47 = vmax.f32 %v2105_v38, %v2106_v33  ;;  %v3279_v48 = vunpack.c.l.bf16 %v5775_v36  ;;  %v2119_v50 = vsel %vm1161_vm0, %v2895_v30, -inf  ;;  %v3705_v27 = vld [vmem:[%s6005_s0 + $0x4e8] sm:$0xff]  }
 0x17f   :  { %v2096_v46 = vmax.f32 %v2094_v37, %v2095_v28  ;;  %v3407_v51 = vunpack.c.l.bf16 %v5780_v39  ;;  %v2118_v52 = vmax.f32 %v2116_v44, %v2117_v45  ;;  %v2121_v53 = vsel %vm1161_vm0, %v3023_v35, -inf  ;;  %v5845_v37 = vld [vmem:[%s6005_s0 + $0x7e8] sm:$0xff]  }
 0x180   :  { %v2512_v54 = vunpack.c.h.bf16 %v3576_v10  ;;  %v2109_v56 = vmax.f32 %v2107_v47, %v2108_v34  ;;  %v2640_v57 = vunpack.c.h.bf16 %v3608_v11  ;;  %v2768_v58 = vunpack.c.h.bf16 %v3640_v12  ;;  %v3609_v12 = vld [vmem:[%s6005_s0 + $0x1e8] sm:$0xff]  }
 0x181   :  { %v2304_v55 = vpack.c.bf16 %v2096_v46, %v2096_v46  ;;  %v2112_v59 = vsel %vm1161_vm0, %v3532_v32, -inf  ;;  %v3535_v60 = vunpack.c.l.bf16 %v3832_v49  ;;  %v2120_v61 = vmax.f32 %v2118_v52, %v2119_v50  ;;  %v5833_v32 = vld [vmem:[%s6005_s0 + $0x5e8] sm:$0xff]  }
 0x182   :  { %v2896_v62 = vunpack.c.h.bf16 %v5751_v17  ;;  %v2111_v63 = vmax.f32 %v2109_v56, %v2110_v42  ;;  %v2123_v0 = vsel %vm1161_vm0, %v3151_v43, -inf  ;;  %v2125_v1 = vsel %vm1161_vm0, %v3279_v48, -inf  ;;  %v5857_v50 = vld [vmem:[%s6005_s0 + $0x8e8] sm:$0xff]  }
 0x183   :  { %2369 = vst.msk [vmem:[#allocation2 + $0xd8] sm:$0xf] %vm2314_vm1, %v2304_v55  ;;  %v3024_v2 = vunpack.c.h.bf16 %v5758_v22  ;;  %v2122_v3 = vmax.f32 %v2120_v61, %v2121_v53  ;;  %v2131_v4 = vsel %vm1161_vm0, %v2512_v54, -inf  ;;  %v2132_v5 = vsel %vm1161_vm0, %v2640_v57, -inf }
 0x184   :  { %v2134_v6 = vsel %vm1161_vm0, %v2768_v58, -inf  ;;  %v2113_v8 = vmax.f32 %v2111_v63, %v2112_v59  ;;  %v2127_v9 = vsel %vm1161_vm0, %v3407_v51, -inf  ;;  %v3152_v10 = vunpack.c.h.bf16 %v5765_v31 }
 0x185   :  { %v2133_v11 = vmax.f32 %v2131_v4, %v2132_v5  ;;  %v2124_v14 = vmax.f32 %v2122_v3, %v2123_v0  ;;  %v3280_v15 = vunpack.c.h.bf16 %v5775_v36  ;;  %v3408_v16 = vunpack.c.h.bf16 %v5780_v39  ;;  %v5840_v36 = vld [vmem:[%s6005_s0 + $0x6e8] sm:$0xff]  }
 0x186   :  { %v2136_v17 = vsel %vm1161_vm0, %v2896_v62, -inf  ;;  %v2305_v19 = vpack.c.bf16 %v2113_v8, %v2113_v8  ;;  %v3536_v20 = vunpack.c.h.bf16 %v3832_v49  ;;  %v2515_v22 = vunpack.c.l.bf16 %v3577_v7  ;;  %v3578_v8 = vld [vmem:[%s6005_s0 + $0xf0] sm:$0xff]  }
 0x187   :  { %v2135_v21 = vmax.f32 %v2133_v11, %v2134_v6  ;;  %v2126_v23 = vmax.f32 %v2124_v14, %v2125_v1  ;;  %v2138_v24 = vsel %vm1161_vm0, %v3024_v2, -inf  ;;  %v2643_v25 = vunpack.c.l.bf16 %v3609_v12 }
 0x188   :  { %v2771_v26 = vunpack.c.l.bf16 %v3641_v13  ;;  %2370 = vst.msk [vmem:[#allocation2 + $0xdc] sm:$0xf] %vm2314_vm1, %v2305_v19  ;;  %v2129_v28 = vsel %vm1161_vm0, %v3535_v60, -inf  ;;  %v2140_v30 = vsel %vm1161_vm0, %v3152_v10, -inf  ;;  %v2899_v31 = vunpack.c.l.bf16 %v5820_v18  ;;  %v3642_v10 = vld [vmem:[%s6005_s0 + $0x2f0] sm:$0xff]  }
 0x189   :  { %v2137_v29 = vmax.f32 %v2135_v21, %v2136_v17  ;;  %v2128_v33 = vmax.f32 %v2126_v23, %v2127_v9  ;;  %v2142_v34 = vsel %vm1161_vm0, %v3280_v15, -inf  ;;  %v2144_v35 = vsel %vm1161_vm0, %v3408_v16, -inf  ;;  %v3610_v9 = vld [vmem:[%s6005_s0 + $0x1f0] sm:$0xff]  }
 0x18a   :  { %v2148_v38 = vsel %vm1161_vm0, %v2515_v22, -inf  ;;  %v3027_v40 = vunpack.c.l.bf16 %v3705_v27  ;;  %v2149_v41 = vsel %vm1161_vm0, %v2643_v25, -inf  ;;  %v2151_v42 = vsel %vm1161_vm0, %v2771_v26, -inf  ;;  %v5885_v15 = vld [vmem:[%s6005_s0 + $0x3f0] sm:$0xff]  }
 0x18b   :  { %v2139_v39 = vmax.f32 %v2137_v29, %v2138_v24  ;;  %v2130_v43 = vmax.f32 %v2128_v33, %v2129_v28  ;;  %v2146_v44 = vsel %vm1161_vm0, %v3536_v20, -inf  ;;  %v3155_v45 = vunpack.c.l.bf16 %v5833_v32  ;;  %v5892_v20 = vld [vmem:[%s6005_s0 + $0x4f0] sm:$0xff]  }
 0x18c   :  { %v2150_v46 = vmax.f32 %v2148_v38, %v2149_v41  ;;  %v3283_v48 = vunpack.c.l.bf16 %v5840_v36  ;;  %v3411_v49 = vunpack.c.l.bf16 %v5845_v37  ;;  %v2153_v51 = vsel %vm1161_vm0, %v2899_v31, -inf }
 0x18d   :  { %v2141_v47 = vmax.f32 %v2139_v39, %v2140_v30  ;;  %v2306_v52 = vpack.c.bf16 %v2130_v43, %v2130_v43  ;;  %v2516_v54 = vunpack.c.h.bf16 %v3577_v7  ;;  %v2644_v55 = vunpack.c.h.bf16 %v3609_v12 }
 0x18e   :  { %v2152_v53 = vmax.f32 %v2150_v46, %v2151_v42  ;;  %v2155_v57 = vsel %vm1161_vm0, %v3027_v40, -inf  ;;  %v2772_v58 = vunpack.c.h.bf16 %v3641_v13  ;;  %v2900_v59 = vunpack.c.h.bf16 %v5820_v18 }
 0x18f   :  { %v2143_v56 = vmax.f32 %v2141_v47, %v2142_v34  ;;  %2371 = vst.msk [vmem:[#allocation2 + $0xe0] sm:$0xf] %vm2314_vm1, %v2306_v52  ;;  %v3539_v60 = vunpack.c.l.bf16 %v5857_v50  ;;  %v2157_v62 = vsel %vm1161_vm0, %v3155_v45, -inf  ;;  %v3028_v63 = vunpack.c.h.bf16 %v3705_v27  ;;  %v5919_v45 = vld [vmem:[%s6005_s0 + $0x7f0] sm:$0xff]  }
 0x190   :  { %v2154_v61 = vmax.f32 %v2152_v53, %v2153_v51  ;;  %v2159_v1 = vsel %vm1161_vm0, %v3283_v48, -inf  ;;  %v2165_v2 = vsel %vm1161_vm0, %v2516_v54, -inf  ;;  %v2166_v3 = vsel %vm1161_vm0, %v2644_v55, -inf }
 0x191   :  { %v2145_v0 = vmax.f32 %v2143_v56, %v2144_v35  ;;  %v2161_v5 = vsel %vm1161_vm0, %v3411_v49, -inf  ;;  %v2167_v6 = vmax.f32 %v2165_v2, %v2166_v3  ;;  %v2168_v7 = vsel %vm1161_vm0, %v2772_v58, -inf  ;;  %v5908_v35 = vld [vmem:[%s6005_s0 + $0x6f0] sm:$0xff]   ;;  %v3579_v3 = vld [vmem:[%s6005_s0 + $0xf8] sm:$0xff]  }
 0x192   :  { %v2156_v4 = vmax.f32 %v2154_v61, %v2155_v57  ;;  %v3156_v12 = vunpack.c.h.bf16 %v5833_v32  ;;  %v3284_v13 = vunpack.c.h.bf16 %v5840_v36  ;;  %v2170_v14 = vsel %vm1161_vm0, %v2900_v59, -inf  ;;  %v5903_v32 = vld [vmem:[%s6005_s0 + $0x5f0] sm:$0xff]  }
 0x193   :  { %v2147_v11 = vmax.f32 %v2145_v0, %v2146_v44  ;;  %v3412_v17 = vunpack.c.h.bf16 %v5845_v37  ;;  %v2169_v18 = vmax.f32 %v2167_v6, %v2168_v7  ;;  %v2172_v19 = vsel %vm1161_vm0, %v3028_v63, -inf  ;;  %v5929_v57 = vld [vmem:[%s6005_s0 + $0x8f0] sm:$0xff]  }
 0x194   :  { %v2158_v16 = vmax.f32 %v2156_v4, %v2157_v62  ;;  %v2519_v22 = vunpack.c.l.bf16 %v3578_v8  ;;  %v2647_v23 = vunpack.c.l.bf16 %v3610_v9  ;;  %v2775_v24 = vunpack.c.l.bf16 %v3642_v10 }
 0x195   :  { %v2307_v21 = vpack.c.bf16 %v2147_v11, %v2147_v11  ;;  %v2171_v26 = vmax.f32 %v2169_v18, %v2170_v14  ;;  %v2903_v27 = vunpack.c.l.bf16 %v5885_v15  ;;  %v2163_v28 = vsel %vm1161_vm0, %v3539_v60, -inf  ;;  %v3675_v14 = vld [vmem:[%s6005_s0 + $0x3f8] sm:$0xff]  }
 0x196   :  { %v2160_v25 = vmax.f32 %v2158_v16, %v2159_v1  ;;  %v3540_v29 = vunpack.c.h.bf16 %v5857_v50  ;;  %v2174_v30 = vsel %vm1161_vm0, %v3156_v12, -inf  ;;  %v3031_v31 = vunpack.c.l.bf16 %v5892_v20 }
 0x197   :  { %2372 = vst.msk [vmem:[#allocation2 + $0xe4] sm:$0xf] %vm2314_vm1, %v2307_v21  ;;  %v2173_v34 = vmax.f32 %v2171_v26, %v2172_v19  ;;  %v2182_v36 = vsel %vm1161_vm0, %v2519_v22, -inf  ;;  %v2183_v37 = vsel %vm1161_vm0, %v2647_v23, -inf  ;;  %v2176_v38 = vsel %vm1161_vm0, %v3284_v13, -inf  ;;  %v3707_v23 = vld [vmem:[%s6005_s0 + $0x4f8] sm:$0xff]  }
 0x198   :  { %v2162_v33 = vmax.f32 %v2160_v25, %v2161_v5  ;;  %v2178_v39 = vsel %vm1161_vm0, %v3412_v17, -inf  ;;  %v2184_v40 = vmax.f32 %v2182_v36, %v2183_v37  ;;  %v2185_v41 = vsel %vm1161_vm0, %v2775_v24, -inf }
 0x199   :  { %v2175_v43 = vmax.f32 %v2173_v34, %v2174_v30  ;;  %v3159_v44 = vunpack.c.l.bf16 %v5903_v32  ;;  %v2187_v46 = vsel %vm1161_vm0, %v2903_v27, -inf  ;;  %v3287_v47 = vunpack.c.l.bf16 %v5908_v35 }
 0x19a   :  { %v2164_v42 = vmax.f32 %v2162_v33, %v2163_v28  ;;  %v2186_v48 = vmax.f32 %v2184_v40, %v2185_v41  ;;  %v2189_v49 = vsel %vm1161_vm0, %v3031_v31, -inf  ;;  %v2520_v50 = vunpack.c.h.bf16 %v3578_v8  ;;  %v3611_v8 = vld [vmem:[%s6005_s0 + $0x1f8] sm:$0xff]  }
 0x19b   :  { %v2177_v52 = vmax.f32 %v2175_v43, %v2176_v38  ;;  %v2648_v53 = vunpack.c.h.bf16 %v3610_v9  ;;  %v2776_v54 = vunpack.c.h.bf16 %v3642_v10  ;;  %v2180_v55 = vsel %vm1161_vm0, %v3540_v29, -inf  ;;  %v3643_v9 = vld [vmem:[%s6005_s0 + $0x2f8] sm:$0xff]  }
 0x19c   :  { %v2308_v51 = vpack.c.bf16 %v2164_v42, %v2164_v42  ;;  %v3415_v56 = vunpack.c.l.bf16 %v5919_v45  ;;  %v2188_v58 = vmax.f32 %v2186_v48, %v2187_v46  ;;  %v2904_v59 = vunpack.c.h.bf16 %v5885_v15  ;;  %v3739_v28 = vld [vmem:[%s6005_s0 + $0x5f8] sm:$0xff]  }
 0x19d   :  { %v2179_v60 = vmax.f32 %v2177_v52, %v2178_v39  ;;  %v2191_v61 = vsel %vm1161_vm0, %v3159_v44, -inf  ;;  %v3032_v62 = vunpack.c.h.bf16 %v5892_v20  ;;  %v2199_v0 = vsel %vm1161_vm0, %v2520_v50, -inf  ;;  %v3835_v52 = vld [vmem:[%s6005_s0 + $0x8f8] sm:$0xff]  }
 0x19e   :  { %2373 = vst.msk [vmem:[#allocation2 + $0xe8] sm:$0xf] %vm2314_vm1, %v2308_v51  ;;  %v2190_v63 = vmax.f32 %v2188_v58, %v2189_v49  ;;  %v2200_v1 = vsel %vm1161_vm0, %v2648_v53, -inf  ;;  %v2202_v2 = vsel %vm1161_vm0, %v2776_v54, -inf  ;;  %v3543_v5 = vunpack.c.l.bf16 %v5929_v57 }
 0x19f   :  { %v2181_v4 = vmax.f32 %v2179_v60, %v2180_v55  ;;  %v2193_v6 = vsel %vm1161_vm0, %v3287_v47, -inf  ;;  %v2201_v7 = vmax.f32 %v2199_v0, %v2200_v1  ;;  %v2195_v11 = vsel %vm1161_vm0, %v3415_v56, -inf }
 0x1a0   :  { %v2192_v10 = vmax.f32 %v2190_v63, %v2191_v61  ;;  %v3160_v12 = vunpack.c.h.bf16 %v5903_v32  ;;  %v2204_v13 = vsel %vm1161_vm0, %v2904_v59, -inf  ;;  %v3288_v16 = vunpack.c.h.bf16 %v5908_v35  ;;  %v3771_v32 = vld [vmem:[%s6005_s0 + $0x6f8] sm:$0xff]  }
 0x1a1   :  { %v2309_v15 = vpack.c.bf16 %v2181_v4, %v2181_v4  ;;  %v2203_v17 = vmax.f32 %v2201_v7, %v2202_v2  ;;  %v2523_v18 = vunpack.c.l.bf16 %v3579_v3  ;;  %v2206_v20 = vsel %vm1161_vm0, %v3032_v62, -inf }
 0x1a2   :  { %v2194_v19 = vmax.f32 %v2192_v10, %v2193_v6  ;;  %v2651_v21 = vunpack.c.l.bf16 %v3611_v8  ;;  %v2779_v22 = vunpack.c.l.bf16 %v3643_v9  ;;  %v2197_v24 = vsel %vm1161_vm0, %v3543_v5, -inf }
 0x1a3   :  { %2374 = vst.msk [vmem:[#allocation2 + $0xec] sm:$0xf] %vm2314_vm1, %v2309_v15  ;;  %v3416_v25 = vunpack.c.h.bf16 %v5919_v45  ;;  %v2205_v26 = vmax.f32 %v2203_v17, %v2204_v13  ;;  %v2907_v27 = vunpack.c.l.bf16 %v3675_v14  ;;  %v3544_v30 = vunpack.c.h.bf16 %v5929_v57  ;;  %v3803_v45 = vld [vmem:[%s6005_s0 + $0x7f8] sm:$0xff]   ;;  %s3865_s0 = smov [#allocation2]  }
 0x1a4   :  { %v2196_v29 = vmax.f32 %v2194_v19, %v2195_v11  ;;  %v2208_v31 = vsel %vm1161_vm0, %v3160_v12, -inf  ;;  %v2216_v33 = vsel %vm1161_vm0, %v2523_v18, -inf  ;;  %v3035_v35 = vunpack.c.l.bf16 %v3707_v23  ;;  %s2383_s2 = sshll.u32 %s3865_s0, 4  ;;  %s2384_s2 = int_to_ptr.vmem [resolvable:$true] %s2383_s2 }
 0x1a5   :  { %v2207_v34 = vmax.f32 %v2205_v26, %v2206_v20  ;;  %v2217_v36 = vsel %vm1161_vm0, %v2651_v21, -inf  ;;  %v2219_v37 = vsel %vm1161_vm0, %v2779_v22, -inf  ;;  %v2210_v39 = vsel %vm1161_vm0, %v3288_v16, -inf }
 0x1a6   :  { %v2198_v38 = vmax.f32 %v2196_v29, %v2197_v24  ;;  %v3163_v40 = vunpack.c.l.bf16 %v3739_v28  ;;  %v2218_v41 = vmax.f32 %v2216_v33, %v2217_v36  ;;  %v2212_v43 = vsel %vm1161_vm0, %v3416_v25, -inf }
 0x1a7   :  { %v2209_v42 = vmax.f32 %v2207_v34, %v2208_v31  ;;  %v3291_v44 = vunpack.c.l.bf16 %v3771_v32  ;;  %v2221_v46 = vsel %vm1161_vm0, %v2907_v27, -inf  ;;  %v2524_v49 = vunpack.c.h.bf16 %v3579_v3 }
 0x1a8   :  { %v2310_v47 = vpack.c.bf16 %v2198_v38, %v2198_v38  ;;  %v2220_v48 = vmax.f32 %v2218_v41, %v2219_v37  ;;  %v2652_v50 = vunpack.c.h.bf16 %v3611_v8  ;;  %v2223_v53 = vsel %vm1161_vm0, %v3035_v35, -inf }
 0x1a9   :  { %v2211_v51 = vmax.f32 %v2209_v42, %v2210_v39  ;;  %v2780_v54 = vunpack.c.h.bf16 %v3643_v9  ;;  %v2908_v55 = vunpack.c.h.bf16 %v3675_v14  ;;  %v2214_v56 = vsel %vm1161_vm0, %v3544_v30, -inf }
 0x1aa   :  { %2375 = vst.msk [vmem:[#allocation2 + $0xf0] sm:$0xf] %vm2314_vm1, %v2310_v47  ;;  %v3419_v57 = vunpack.c.l.bf16 %v3803_v45  ;;  %v2222_v58 = vmax.f32 %v2220_v48, %v2221_v46  ;;  %v2225_v59 = vsel %vm1161_vm0, %v3163_v40, -inf  ;;  %v3036_v61 = vunpack.c.h.bf16 %v3707_v23 }
 0x1ab   :  { %v2213_v60 = vmax.f32 %v2211_v51, %v2212_v43  ;;  %v2233_v62 = vsel %vm1161_vm0, %v2524_v49, -inf  ;;  %v2234_v63 = vsel %vm1161_vm0, %v2652_v50, -inf  ;;  %v3547_v0 = vunpack.c.l.bf16 %v3835_v52 }
 0x1ac   :  { %v2224_v1 = vmax.f32 %v2222_v58, %v2223_v53  ;;  %v2235_v2 = vmax.f32 %v2233_v62, %v2234_v63  ;;  %v2236_v3 = vsel %vm1161_vm0, %v2780_v54, -inf  ;;  %v2227_v5 = vsel %vm1161_vm0, %v3291_v44, -inf }
 0x1ad   :  { %v2215_v4 = vmax.f32 %v2213_v60, %v2214_v56  ;;  %v3164_v6 = vunpack.c.h.bf16 %v3739_v28  ;;  %v2238_v7 = vsel %vm1161_vm0, %v2908_v55, -inf  ;;  %v2229_v11 = vsel %vm1161_vm0, %v3419_v57, -inf }
 0x1ae   :  { %v2226_v8 = vmax.f32 %v2224_v1, %v2225_v59  ;;  %v2237_v9 = vmax.f32 %v2235_v2, %v2236_v3  ;;  %v3292_v12 = vunpack.c.h.bf16 %v3771_v32  ;;  %v2240_v13 = vsel %vm1161_vm0, %v3036_v61, -inf }
 0x1af   :  { %v2311_v10 = vpack.c.bf16 %v2215_v4, %v2215_v4  ;;  %v2231_v16 = vsel %vm1161_vm0, %v3547_v0, -inf  ;;  %v3420_v17 = vunpack.c.h.bf16 %v3803_v45  ;;  %v2242_v18 = vsel %vm1161_vm0, %v3164_v6, -inf }
 0x1b0   :  { %v2228_v14 = vmax.f32 %v2226_v8, %v2227_v5  ;;  %v2239_v15 = vmax.f32 %v2237_v9, %v2238_v7  ;;  %v3548_v21 = vunpack.c.h.bf16 %v3835_v52  ;;  %v2244_v22 = vsel %vm1161_vm0, %v3292_v12, -inf }
 0x1b1   :  { %2376 = vst.msk [vmem:[#allocation2 + $0xf4] sm:$0xf] %vm2314_vm1, %v2311_v10  ;;  %v2246_v25 = vsel %vm1161_vm0, %v3420_v17, -inf }
 0x1b2   :  { %v2230_v19 = vmax.f32 %v2228_v14, %v2229_v11  ;;  %v2241_v20 = vmax.f32 %v2239_v15, %v2240_v13  ;;  %v2248_v28 = vsel %vm1161_vm0, %v3548_v21, -inf }
 0x1b4   :  { %v2232_v23 = vmax.f32 %v2230_v19, %v2231_v16  ;;  %v2243_v24 = vmax.f32 %v2241_v20, %v2242_v18 }
 0x1b6   :  { %v2312_v26 = vpack.c.bf16 %v2232_v23, %v2232_v23  ;;  %v2245_v27 = vmax.f32 %v2243_v24, %v2244_v22 }
 0x1b8   :  { %2377 = vst.msk [vmem:[#allocation2 + $0xf8] sm:$0xf] %vm2314_vm1, %v2312_v26  ;;  %v2247_v29 = vmax.f32 %v2245_v27, %v2246_v25 }
 0x1ba   :  { %v2249_v30 = vmax.f32 %v2247_v29, %v2248_v28 }
 0x1bc   :  { %v2313_v31 = vpack.c.bf16 %v2249_v30, %v2249_v30 }
 0x1be   :  { %2378 = vst.msk [vmem:[#allocation2 + $0xfc] sm:$0xf] %vm2314_vm1, %v2313_v31 }
 0x1bf   :  { %2391 = dma.vmem_to_hbm [thread:$0]  %s2384_s2, 4096, %s2386_s5, [#allocation3], %s3866_s6, %s3866_s6, %s3867_s7  }
 0x1c0   :  { %3863 = dma.done.wait [#allocation3], 4096  }
 0x1c1   :  { %3864 = vsyncadd [#allocation3], 4294963200 }
 0x1c2   :  { %2396 = vsyncpa [#allocation3], 1 }

</bundles_post_ra>
